<compile_context>
chip_gen: v5e
topology: v5e:2x2
jax: 0.10.0
libtpu: 0.0.40
codegen_flags: <defaults>
</compile_context>

<pallas_src>
import jax
import jax.numpy as jnp
from jax.experimental import pallas as pl
from jax.experimental.pallas import tpu as pltpu

N_EMBD = 384                      # matches the PyTorch module (n_embd = 384)
DROPOUT = 0.2
_KEEP_PROB = 1.0 - DROPOUT
_KEEP_THRESHOLD = int(_KEEP_PROB * (1 << 32))   # uint32 compare threshold
_INV_KEEP = 1.0 / _KEEP_PROB


def _ffn_body(x_ref, w1_ref, b1_ref, w2_ref, b2_ref):
    """Linear -> ReLU -> Linear; bf16 MXU matmuls with f32 accumulation."""
    x = x_ref[...].astype(jnp.bfloat16)
    h = jnp.dot(x, w1_ref[...], preferred_element_type=jnp.float32)
    h = jnp.maximum(h + b1_ref[...], jnp.float32(0.0))
    y = jnp.dot(h.astype(jnp.bfloat16), w2_ref[...],
                preferred_element_type=jnp.float32)
    return y + b2_ref[...]


def ffn_eval_kernel(x_ref, w1_ref, b1_ref, w2_ref, b2_ref, o_ref):
    o_ref[...] = _ffn_body(x_ref, w1_ref, b1_ref, w2_ref, b2_ref).astype(o_ref.dtype)


def ffn_train_kernel(x_ref, w1_ref, b1_ref, w2_ref, b2_ref, bits_ref, o_ref):
    y = _ffn_body(x_ref, w1_ref, b1_ref, w2_ref, b2_ref)
    # Dropout(p=0.2): integer-compare keep mask, scale survivors by 1/keep_prob.
    # (Matches torch training-mode semantics statistically, not its RNG stream.)
    keep = bits_ref[...] < jnp.uint32(_KEEP_THRESHOLD)
    y = jnp.where(keep, y * jnp.float32(_INV_KEEP), jnp.float32(0.0))
    o_ref[...] = y.astype(o_ref.dtype)


def _round_up(n, m):
    return (n + m - 1) // m * m


def ffn_pallas(x, w1, b1, w2, b2, *, rng_key=None, training=True, tm_max=512):
    """Fused FFN forward.  x: (B, T, C) f32.  w1: (C, 4C), w2: (4C, C)."""
    B, T, C = x.shape
    H = w1.shape[1]
    M = B * T

    # Tile the token axis; pad M so the grid divides evenly.
    tm = min(tm_max, _round_up(M, 8))
    m_pad = _round_up(M, tm)

    x2 = x.reshape(M, C)
    if m_pad != M:
        x2 = jnp.pad(x2, ((0, m_pad - M), (0, 0)))

    # bf16 weights feed the MXU; biases stay f32 (added after the accumulate).
    w1b = w1.astype(jnp.bfloat16)
    w2b = w2.astype(jnp.bfloat16)
    b1r = b1.reshape(1, H).astype(jnp.float32)
    b2r = b2.reshape(1, C).astype(jnp.float32)

    grid = (pl.cdiv(m_pad, tm),)
    x_spec = pl.BlockSpec((tm, C), lambda i: (i, 0))
    w1_spec = pl.BlockSpec((C, H), lambda i: (0, 0))
    b1_spec = pl.BlockSpec((1, H), lambda i: (0, 0))
    w2_spec = pl.BlockSpec((H, C), lambda i: (0, 0))
    b2_spec = pl.BlockSpec((1, C), lambda i: (0, 0))
    out_spec = pl.BlockSpec((tm, C), lambda i: (i, 0))

    compiler_params = pltpu.CompilerParams(dimension_semantics=("parallel",))

    if training:
        if rng_key is None:
            rng_key = jax.random.PRNGKey(0)
        bits = jax.random.bits(rng_key, (m_pad, C), dtype=jnp.uint32)
        out2 = pl.pallas_call(
            ffn_train_kernel,
            out_shape=jax.ShapeDtypeStruct((m_pad, C), x.dtype),
            grid=grid,
            in_specs=[x_spec, w1_spec, b1_spec, w2_spec, b2_spec, x_spec],
            out_specs=out_spec,
            compiler_params=compiler_params,
        )(x2, w1b, b1r, w2b, b2r, bits)
    else:
        out2 = pl.pallas_call(
            ffn_eval_kernel,
            out_shape=jax.ShapeDtypeStruct((m_pad, C), x.dtype),
            grid=grid,
            in_specs=[x_spec, w1_spec, b1_spec, w2_spec, b2_spec],
            out_specs=out_spec,
            compiler_params=compiler_params,
        )(x2, w1b, b1r, w2b, b2r)

    return out2[:M].reshape(B, T, C)


def ffn_reference_eval(x, w1, b1, w2, b2):
    # Pure-JAX reference with the same bf16-operand / f32-accumulate math.
    xb = x.astype(jnp.bfloat16)
    h = jnp.dot(xb, w1.astype(jnp.bfloat16), preferred_element_type=jnp.float32)
    h = jnp.maximum(h + b1, 0.0)
    y = jnp.dot(h.astype(jnp.bfloat16), w2.astype(jnp.bfloat16),
                preferred_element_type=jnp.float32)
    return y + b2


if __name__ == "__main__":
    key = jax.random.PRNGKey(0)
    k_x, k_w1, k_b1, k_w2, k_b2, k_drop = jax.random.split(key, 6)

    B, T, C = 2, 8, N_EMBD
    H = 4 * C

    x = jax.random.normal(k_x, (B, T, C), dtype=jnp.float32)
    # torch.nn.Linear-style init: U(-1/sqrt(fan_in), 1/sqrt(fan_in)).
    lim1 = 1.0 / jnp.sqrt(jnp.float32(C))
    lim2 = 1.0 / jnp.sqrt(jnp.float32(H))
    w1 = jax.random.uniform(k_w1, (C, H), jnp.float32, -lim1, lim1)
    b1 = jax.random.uniform(k_b1, (H,), jnp.float32, -lim1, lim1)
    w2 = jax.random.uniform(k_w2, (H, C), jnp.float32, -lim2, lim2)
    b2 = jax.random.uniform(k_b2, (C,), jnp.float32, -lim2, lim2)

    # Eval-mode (dropout = identity) check against the reference.
    y_eval = jax.block_until_ready(
        ffn_pallas(x, w1, b1, w2, b2, training=False))
    y_ref = ffn_reference_eval(x, w1, b1, w2, b2)
    assert jnp.allclose(y_eval, y_ref, atol=2e-2, rtol=2e-2), "eval mismatch"

    # Training-mode run (stochastic dropout applied inside the kernel).
    y_train = jax.block_until_ready(
        ffn_pallas(x, w1, b1, w2, b2, rng_key=k_drop, training=True))
    assert y_train.shape == (B, T, C)
    drop_frac = float(jnp.mean((y_train == 0.0).astype(jnp.float32)))
    assert 0.05 < drop_frac < 0.40, f"unexpected drop fraction {drop_frac}"

    print("KERNEL_OK")
</pallas_src>

<mosaic_0001>
module attributes {stable_mosaic.version = 11 : i64} {
  func.func @ffn_eval_kernel(%arg0: i32, %arg1: memref<16x384xf32, #tpu.memory_space<vmem>>, %arg2: memref<384x1536xbf16, #tpu.memory_space<vmem>>, %arg3: memref<1x1536xf32, #tpu.memory_space<vmem>>, %arg4: memref<1536x384xbf16, #tpu.memory_space<vmem>>, %arg5: memref<1x384xf32, #tpu.memory_space<vmem>>, %arg6: memref<16x384xf32, #tpu.memory_space<vmem>>) attributes {dimension_semantics = [#tpu.dimension_semantics<parallel>], iteration_bounds = array<i64: 1>, scalar_prefetch = 0 : i64, scratch_operands = 0 : i64, tpu.core_type = #tpu.core_type<tc>, window_params = [{transform_indices = @transform_0, window_bounds = array<i64: 16, 384>}, {pipeline_mode = #tpu.pipeline_mode<synchronous>, transform_indices = @transform_1, window_bounds = array<i64: 384, 1536>}, {pipeline_mode = #tpu.pipeline_mode<synchronous>, transform_indices = @transform_2, window_bounds = array<i64: 1, 1536>}, {pipeline_mode = #tpu.pipeline_mode<synchronous>, transform_indices = @transform_3, window_bounds = array<i64: 1536, 384>}, {pipeline_mode = #tpu.pipeline_mode<synchronous>, transform_indices = @transform_4, window_bounds = array<i64: 1, 384>}, {transform_indices = @transform_5, window_bounds = array<i64: 16, 384>}]} {
    %c0 = arith.constant 0 : index
    %c0_0 = arith.constant 0 : index
    %0 = vector.load %arg1[%c0, %c0_0] : memref<16x384xf32, #tpu.memory_space<vmem>>, vector<16x384xf32>
    %1 = arith.truncf %0 : vector<16x384xf32> to vector<16x384xbf16>
    %c0_1 = arith.constant 0 : index
    %c0_2 = arith.constant 0 : index
    %2 = vector.load %arg2[%c0_1, %c0_2] : memref<384x1536xbf16, #tpu.memory_space<vmem>>, vector<384x1536xbf16>
    %cst = arith.constant dense<0.000000e+00> : vector<16x1536xf32>
    %3 = tpu.matmul %1, %2, %cst {dimension_numbers = #tpu.dot_dimension_numbers<[1], [0], [0], [1], [0, 0, 1, 1], [], []>} : vector<16x384xbf16>, vector<384x1536xbf16>, vector<16x1536xf32> -> vector<16x1536xf32>
    %c0_3 = arith.constant 0 : index
    %c0_4 = arith.constant 0 : index
    %4 = vector.load %arg3[%c0_3, %c0_4] : memref<1x1536xf32, #tpu.memory_space<vmem>>, vector<1x1536xf32>
    %5 = vector.broadcast %4 : vector<1x1536xf32> to vector<16x1536xf32>
    %6 = arith.addf %3, %5 : vector<16x1536xf32>
    %cst_5 = arith.constant 0.000000e+00 : f32
    %7 = vector.broadcast %cst_5 : f32 to vector<16x1536xf32>
    %8 = arith.maximumf %6, %7 : vector<16x1536xf32>
    %9 = arith.truncf %8 : vector<16x1536xf32> to vector<16x1536xbf16>
    %c0_6 = arith.constant 0 : index
    %c0_7 = arith.constant 0 : index
    %10 = vector.load %arg4[%c0_6, %c0_7] : memref<1536x384xbf16, #tpu.memory_space<vmem>>, vector<1536x384xbf16>
    %cst_8 = arith.constant dense<0.000000e+00> : vector<16x384xf32>
    %11 = tpu.matmul %9, %10, %cst_8 {dimension_numbers = #tpu.dot_dimension_numbers<[1], [0], [0], [1], [0, 0, 1, 1], [], []>} : vector<16x1536xbf16>, vector<1536x384xbf16>, vector<16x384xf32> -> vector<16x384xf32>
    %c0_9 = arith.constant 0 : index
    %c0_10 = arith.constant 0 : index
    %12 = vector.load %arg5[%c0_9, %c0_10] : memref<1x384xf32, #tpu.memory_space<vmem>>, vector<1x384xf32>
    %13 = vector.broadcast %12 : vector<1x384xf32> to vector<16x384xf32>
    %14 = arith.addf %11, %13 : vector<16x384xf32>
    %c0_11 = arith.constant 0 : index
    %c0_12 = arith.constant 0 : index
    %15 = vector.load %arg6[%c0_11, %c0_12] : memref<16x384xf32, #tpu.memory_space<vmem>>, vector<16x384xf32>
    tpu.vector_store %arg6[%c0_11, %c0_12], %14 {strides = array<i32>} : memref<16x384xf32, #tpu.memory_space<vmem>>, vector<16x384xf32>,
    return
  }
  func.func @transform_0(%arg0: i32) -> (i32, i32) {
    %c0_i32 = arith.constant 0 : i32
    %c0_i32_0 = arith.constant 0 : i32
    return %arg0, %c0_i32 : i32, i32
  }
  func.func @transform_1(%arg0: i32) -> (i32, i32) {
    %c0_i32 = arith.constant 0 : i32
    %c0_i32_0 = arith.constant 0 : i32
    %c0_i32_1 = arith.constant 0 : i32
    return %c0_i32, %c0_i32_0 : i32, i32
  }
  func.func @transform_2(%arg0: i32) -> (i32, i32) {
    %c0_i32 = arith.constant 0 : i32
    %c0_i32_0 = arith.constant 0 : i32
    %c0_i32_1 = arith.constant 0 : i32
    return %c0_i32, %c0_i32_0 : i32, i32
  }
  func.func @transform_3(%arg0: i32) -> (i32, i32) {
    %c0_i32 = arith.constant 0 : i32
    %c0_i32_0 = arith.constant 0 : i32
    %c0_i32_1 = arith.constant 0 : i32
    return %c0_i32, %c0_i32_0 : i32, i32
  }
  func.func @transform_4(%arg0: i32) -> (i32, i32) {
    %c0_i32 = arith.constant 0 : i32
    %c0_i32_0 = arith.constant 0 : i32
    %c0_i32_1 = arith.constant 0 : i32
    return %c0_i32, %c0_i32_0 : i32, i32
  }
  func.func @transform_5(%arg0: i32) -> (i32, i32) {
    %c0_i32 = arith.constant 0 : i32
    %c0_i32_0 = arith.constant 0 : i32
    return %arg0, %c0_i32 : i32, i32
  }
}

</mosaic_0001>

<bundles_post_ra>
// kernel: tpu_custom_call.1
= control target key start
LH: loop header
LB: loop body
LE: loop exit
PB: predicated region body
PF: predicated region fallthrough
CT: control target
= control target key end

     0   :  { %10 = vsyncpa [#allocation3], 0  ;;  %s8260_s0 = inlined_call_operand.hbm [shape: f32[16,384], index: 0, kind: input, shape index: {}]   ;;  %s8261_s1 = inlined_call_operand.hbm [shape: bf16[384,1536], index: 1, kind: input, shape index: {}]   ;;  %s8262_s2 = inlined_call_operand.hbm [shape: f32[1,1536], index: 2, kind: input, shape index: {}]   ;;  %s8263_s3 = inlined_call_operand.hbm [shape: bf16[1536,384], index: 3, kind: input, shape index: {}]   ;;  %s8264_s4 = inlined_call_operand.hbm [shape: f32[1,384], index: 4, kind: input, shape index: {}]   ;;  %s8265_s5 = inlined_call_operand.hbm [shape: f32[16,384], index: 5, kind: output, shape index: {}]  }
   0x1   :  { %11 = vsyncpa [#allocation6], 0 }
   0x2   :  { %12 = vsyncpa [#allocation9], 0  ;;  %s31_s20 = sshll.u32 %s8261_s1, 4  ;;  %s32_s20 = int_to_ptr.hbm [resolvable:$true] %s31_s20 }
   0x3   :  { %13 = vsyncpa [#allocation4], 0  ;;  %s7903_s21 = smov [#allocation5]   ;;  %s55_s25 = sshll.u32 %s8263_s3, 4  ;;  %s56_s25 = int_to_ptr.hbm [resolvable:$true] %s55_s25 }
   0x4   :  { %s33_s22 = sshll.u32 %s7903_s21, 4  ;;  %s7904_s26 = smov 768   ;;  %s34_s22 = int_to_ptr.vmem [resolvable:$true] %s33_s22 }
   0x5   :  { %s7905_s27 = smov 48   ;;  %s7906_s28 = smov [#allocation8]  }
   0x6   :  { %39 = dma.hbm_to_vmem [thread:$0]  %s32_s20, 36864, %s34_s22, [#allocation6], %s7904_s26, %s7904_s26, %s7905_s27  }
   0x7   :  { %s57_s29 = sshll.u32 %s7906_s28, 4  ;;  %s7907_s30 = smov 192   ;;  %s58_s29 = int_to_ptr.vmem [resolvable:$true] %s57_s29 }
   0x8   :  { %s7908_s6 = smov 12   ;;  %s18_s8 = sshll.u32 %s8260_s0, 4  ;;  %s19_s8 = int_to_ptr.hbm [resolvable:$true] %s18_s8 }
   0x9   :  { %63 = dma.hbm_to_vmem [thread:$0]  %s56_s25, 36864, %s58_s29, [#allocation9], %s7907_s30, %s7907_s30, %s7908_s6  }
   0xa   :  { %s7909_s9 = smov [#allocation2]   ;;  %s45_s12 = sshll.u32 %s8262_s2, 4  ;;  %s46_s12 = int_to_ptr.hbm [resolvable:$true] %s45_s12 }
   0xb   :  { %s20_s10 = sshll.u32 %s7909_s9, 4  ;;  %s7910_s13 = smov 384   ;;  %s21_s10 = int_to_ptr.vmem [resolvable:$true] %s20_s10 }
   0xc   :  { %s7911_s14 = smov 24   ;;  %s7912_s15 = smov [#allocation7]  }
   0xd   :  { %26 = dma.hbm_to_vmem [thread:$0]  %s19_s8, 768, %s21_s10, [#allocation3], %s7910_s13, %s7910_s13, %s7911_s14  }
   0xe   :  { %s47_s16 = sshll.u32 %s7912_s15, 4  ;;  %s69_s0 = sshll.u32 %s8264_s4, 4  ;;  %s48_s16 = int_to_ptr.vmem [resolvable:$true] %s47_s16  ;;  %s70_s0 = int_to_ptr.hbm [resolvable:$true] %s69_s0 }
   0xf   :  { %50 = dma.hbm_to_vmem [thread:$0]  %s46_s12, 192, %s48_s16, [#allocation6]  }
  0x10   :  { %s7913_s19 = smov [#allocation10]  }
  0x11   :  { %s71_s20 = sshll.u32 %s7913_s19, 4  ;;  %s72_s20 = int_to_ptr.vmem [resolvable:$true] %s71_s20 }
  0x12   :  { %74 = dma.hbm_to_vmem [thread:$0]  %s70_s0, 48, %s72_s20, [#allocation9]  }
  0x13   :  { %7895 = dma.done.wait [#allocation3], 768  }
  0x14   :  { %7896 = vsyncadd [#allocation3], 4294966528 }
  0x15   :  { %7897 = dma.done.wait [#allocation6], 37056  }
  0x16   :  { %7898 = vsyncadd [#allocation6], 4294930240 }
  0x17   :  { %7899 = dma.done.wait [#allocation9], 36912  }
  0x18   :  { %7900 = vsyncadd [#allocation9], 4294930384  ;;  %v5197_v0 = vld [vmem:[#allocation5 + $0x2a0] sm:$0xf]  ;;  %v7253_v1 = vld [vmem:[#allocation5 + $0x2cc] sm:$0xf0] }
  0x19   :  { %v5581_v2 = vld [vmem:[#allocation5 + $0x5a0] sm:$0xf]  ;;  %v5198_v3 = vor.u32 %v7253_v1, %v5197_v0  ;;  %v7349_v4 = vld [vmem:[#allocation5 + $0x5cc] sm:$0xf0]  ;;  %v7247_v9 = vld [vmem:[#allocation5 + $0x2a4] sm:$0xf] }
  0x1a   :  { %v5965_v5 = vld [vmem:[#allocation5 + $0x8a0] sm:$0xf]  ;;  %v7445_v6 = vld [vmem:[#allocation5 + $0x8cc] sm:$0xf0]  ;;  %v5582_v7 = vor.u32 %v7349_v4, %v5581_v2  ;;  %v5199_v10 = vld [vmem:[#allocation5 + $0x2d0] sm:$0xf0] }
  0x1b   :  { %v5966_v8 = vor.u32 %v7445_v6, %v5965_v5  ;;  %v5149_v11 = vld [vmem:[#allocation5 + $0x240] sm:$0xf]  ;;  %1860 = vmatpush.bf16.msra.mxu0 %v5198_v3  ;;  %v5202_v12 = vor.u32 %v7247_v9, %v5199_v10  ;;  %v7241_v13 = vld [vmem:[#allocation5 + $0x26c] sm:$0xf0]  ;;  %v7235_v20 = vld [vmem:[#allocation5 + $0x244] sm:$0xf] }
  0x1c   :  { %v5533_v14 = vld [vmem:[#allocation5 + $0x540] sm:$0xf]  ;;  %v7337_v15 = vld [vmem:[#allocation5 + $0x56c] sm:$0xf0]  ;;  %1874 = vmatpush.bf16.msra.mxu1 %v5582_v7  ;;  %v5150_v16 = vor.u32 %v7241_v13, %v5149_v11  ;;  %v5151_v22 = vld [vmem:[#allocation5 + $0x270] sm:$0xf0] }
  0x1d   :  { %1888 = vmatpush.bf16.msra.mxu2 %v5966_v8  ;;  %v5534_v17 = vor.u32 %v7337_v15, %v5533_v14  ;;  %v5917_v18 = vld [vmem:[#allocation5 + $0x840] sm:$0xf]  ;;  %v7433_v19 = vld [vmem:[#allocation5 + $0x86c] sm:$0xf0]  ;;  %1902 = vmatpush.bf16.msra.mxu3 %v5202_v12  ;;  %v5154_v25 = vor.u32 %v7235_v20, %v5151_v22  ;;  %v7223_v31 = vld [vmem:[#allocation5 + $0x1e4] sm:$0xf] }
  0x1e   :  { %v5918_v21 = vor.u32 %v7433_v19, %v5917_v18  ;;  %v5101_v23 = vld [vmem:[#allocation5 + $0x1e0] sm:$0xf]  ;;  %v7229_v24 = vld [vmem:[#allocation5 + $0x20c] sm:$0xf0]  ;;  %v5103_v32 = vld [vmem:[#allocation5 + $0x210] sm:$0xf0] }
  0x1f   :  { %v5485_v26 = vld [vmem:[#allocation5 + $0x4e0] sm:$0xf]  ;;  %v7325_v27 = vld [vmem:[#allocation5 + $0x50c] sm:$0xf0]  ;;  %1861 = vmatpush.bf16.msra.mxu0 %v5150_v16  ;;  %v5102_v29 = vor.u32 %v7229_v24, %v5101_v23  ;;  %v5106_v38 = vor.u32 %v7223_v31, %v5103_v32  ;;  %v7211_v42 = vld [vmem:[#allocation5 + $0x184] sm:$0xf] }
  0x20   :  { %v5869_v28 = vld [vmem:[#allocation5 + $0x7e0] sm:$0xf]  ;;  %v7421_v30 = vld [vmem:[#allocation5 + $0x80c] sm:$0xf0]  ;;  %1875 = vmatpush.bf16.msra.mxu1 %v5534_v17  ;;  %v5486_v33 = vor.u32 %v7325_v27, %v5485_v26  ;;  %v5055_v43 = vld [vmem:[#allocation5 + $0x1b0] sm:$0xf0] }
  0x21   :  { %1889 = vmatpush.bf16.msra.mxu2 %v5918_v21  ;;  %v5870_v34 = vor.u32 %v7421_v30, %v5869_v28  ;;  %v5053_v35 = vld [vmem:[#allocation5 + $0x180] sm:$0xf]  ;;  %v7217_v36 = vld [vmem:[#allocation5 + $0x1ac] sm:$0xf0]  ;;  %1903 = vmatpush.bf16.msra.mxu3 %v5154_v25  ;;  %v5058_v50 = vor.u32 %v7211_v42, %v5055_v43  ;;  %v7199_v54 = vld [vmem:[#allocation5 + $0x124] sm:$0xf] }
  0x22   :  { %v5437_v37 = vld [vmem:[#allocation5 + $0x480] sm:$0xf]  ;;  %v7313_v39 = vld [vmem:[#allocation5 + $0x4ac] sm:$0xf0]  ;;  %v5054_v44 = vor.u32 %v7217_v36, %v5053_v35  ;;  %v5007_v55 = vld [vmem:[#allocation5 + $0x150] sm:$0xf0] }
  0x23   :  { %v5821_v40 = vld [vmem:[#allocation5 + $0x780] sm:$0xf]  ;;  %v7409_v41 = vld [vmem:[#allocation5 + $0x7ac] sm:$0xf0]  ;;  %1862 = vmatpush.bf16.msra.mxu0 %v5102_v29  ;;  %v5438_v45 = vor.u32 %v7313_v39, %v5437_v37  ;;  %v5010_v62 = vor.u32 %v7199_v54, %v5007_v55  ;;  %v7187_v2 = vld [vmem:[#allocation5 + $0xc4] sm:$0xf] }
  0x24   :  { %1876 = vmatpush.bf16.msra.mxu1 %v5486_v33  ;;  %v5822_v46 = vor.u32 %v7409_v41, %v5821_v40  ;;  %v5005_v47 = vld [vmem:[#allocation5 + $0x120] sm:$0xf]  ;;  %v7205_v48 = vld [vmem:[#allocation5 + $0x14c] sm:$0xf0]  ;;  %v4959_v3 = vld [vmem:[#allocation5 + $0xf0] sm:$0xf0] }
  0x25   :  { %1890 = vmatpush.bf16.msra.mxu2 %v5870_v34  ;;  %v5389_v49 = vld [vmem:[#allocation5 + $0x420] sm:$0xf]  ;;  %1904 = vmatpush.bf16.msra.mxu3 %v5106_v38  ;;  %v7301_v51 = vld [vmem:[#allocation5 + $0x44c] sm:$0xf0]  ;;  %v5006_v56 = vor.u32 %v7205_v48, %v5005_v47  ;;  %v4962_v10 = vor.u32 %v7187_v2, %v4959_v3  ;;  %v7175_v14 = vld [vmem:[#allocation5 + $0x64] sm:$0xf] }
  0x26   :  { %v5773_v52 = vld [vmem:[#allocation5 + $0x720] sm:$0xf]  ;;  %v7397_v53 = vld [vmem:[#allocation5 + $0x74c] sm:$0xf0]  ;;  %v5390_v57 = vor.u32 %v7301_v51, %v5389_v49  ;;  %v4911_v15 = vld [vmem:[#allocation5 + $0x90] sm:$0xf0] }
  0x27   :  { %1863 = vmatpush.bf16.msra.mxu0 %v5054_v44  ;;  %v5774_v58 = vor.u32 %v7397_v53, %v5773_v52  ;;  %v4957_v59 = vld [vmem:[#allocation5 + $0xc0] sm:$0xf]  ;;  %v7193_v60 = vld [vmem:[#allocation5 + $0xec] sm:$0xf0]  ;;  %v4914_v24 = vor.u32 %v7175_v14, %v4911_v15  ;;  %v7163_v26 = vld [vmem:[#allocation5 + $0x4] sm:$0xf] }
  0x28   :  { %1877 = vmatpush.bf16.msra.mxu1 %v5438_v45  ;;  %v5341_v61 = vld [vmem:[#allocation5 + $0x3c0] sm:$0xf]  ;;  %v7289_v63 = vld [vmem:[#allocation5 + $0x3ec] sm:$0xf0]  ;;  %v4958_v4 = vor.u32 %v7193_v60, %v4957_v59  ;;  %v4863_v27 = vld [vmem:[#allocation5 + $0x30] sm:$0xf0] }
  0x29   :  { %1891 = vmatpush.bf16.msra.mxu2 %v5822_v46  ;;  %1905 = vmatpush.bf16.msra.mxu3 %v5058_v50  ;;  %v5725_v0 = vld [vmem:[#allocation5 + $0x6c0] sm:$0xf]  ;;  %v7385_v1 = vld [vmem:[#allocation5 + $0x6ec] sm:$0xf0]  ;;  %v5342_v5 = vor.u32 %v7289_v63, %v5341_v61  ;;  %v7343_v28 = vld [vmem:[#allocation5 + $0x5a4] sm:$0xf]  ;;  %v4866_v39 = vor.u32 %v7163_v26, %v4863_v27 }
  0x2a   :  { %v5726_v6 = vor.u32 %v7385_v1, %v5725_v0  ;;  %v4909_v7 = vld [vmem:[#allocation5 + $0x60] sm:$0xf]  ;;  %v7181_v8 = vld [vmem:[#allocation5 + $0x8c] sm:$0xf0]  ;;  %v5583_v29 = vld [vmem:[#allocation5 + $0x5d0] sm:$0xf0] }
  0x2b   :  { %1864 = vmatpush.bf16.msra.mxu0 %v5006_v56  ;;  %v5293_v9 = vld [vmem:[#allocation5 + $0x360] sm:$0xf]  ;;  %v7277_v11 = vld [vmem:[#allocation5 + $0x38c] sm:$0xf0]  ;;  %v4910_v16 = vor.u32 %v7181_v8, %v4909_v7  ;;  %v7439_v30 = vld [vmem:[#allocation5 + $0x8a4] sm:$0xf]  ;;  %v5586_v40 = vor.u32 %v7343_v28, %v5583_v29 }
  0x2c   :  { %1878 = vmatpush.bf16.msra.mxu1 %v5390_v57  ;;  %v5677_v12 = vld [vmem:[#allocation5 + $0x660] sm:$0xf]  ;;  %v7373_v13 = vld [vmem:[#allocation5 + $0x68c] sm:$0xf0]  ;;  %v5294_v19 = vor.u32 %v7277_v11, %v5293_v9  ;;  %v5967_v32 = vld [vmem:[#allocation5 + $0x8d0] sm:$0xf0] }
  0x2d   :  { %1892 = vmatpush.bf16.msra.mxu2 %v5774_v58  ;;  %1906 = vmatpush.bf16.msra.mxu3 %v5010_v62  ;;  %v4861_v17 = vld [vmem:[#allocation5] sm:$0xf]  ;;  %v7169_v18 = vld [vmem:[#allocation5 + $0x2c] sm:$0xf0]  ;;  %v5678_v20 = vor.u32 %v7373_v13, %v5677_v12  ;;  %v5205_v33 = vld [vmem:[#allocation5 + $0x2a8] sm:$0xf]  ;;  %v5970_v42 = vor.u32 %v7439_v30, %v5967_v32 }
  0x2e   :  { %v5245_v21 = vld [vmem:[#allocation5 + $0x300] sm:$0xf]  ;;  %v7265_v22 = vld [vmem:[#allocation5 + $0x32c] sm:$0xf0]  ;;  %v4862_v31 = vor.u32 %v7169_v18, %v4861_v17  ;;  %v7254_v34 = vld [vmem:[#allocation5 + $0x2d4] sm:$0xf0] }
  0x2f   :  { %1865 = vmatpush.bf16.msra.mxu0 %v4958_v4  ;;  %v5629_v23 = vld [vmem:[#allocation5 + $0x600] sm:$0xf]  ;;  %v7361_v25 = vld [vmem:[#allocation5 + $0x62c] sm:$0xf0]  ;;  %v5246_v35 = vor.u32 %v7265_v22, %v5245_v21  ;;  %v5589_v37 = vld [vmem:[#allocation5 + $0x5a8] sm:$0xf]  ;;  %v5206_v43 = vor.u32 %v7254_v34, %v5205_v33 }
  0x30   :  { %1879 = vmatpush.bf16.msra.mxu1 %v5342_v5  ;;  %v5630_v36 = vor.u32 %v7361_v25, %v5629_v23  ;;  %v7350_v38 = vld [vmem:[#allocation5 + $0x5d4] sm:$0xf0]  ;;  %v7331_v41 = vld [vmem:[#allocation5 + $0x544] sm:$0xf]  ;;  %v5535_v44 = vld [vmem:[#allocation5 + $0x570] sm:$0xf0] }
  0x31   :  { %1893 = vmatpush.bf16.msra.mxu2 %v5726_v6  ;;  %1907 = vmatpush.bf16.msra.mxu3 %v4962_v10  ;;  %v7427_v45 = vld [vmem:[#allocation5 + $0x844] sm:$0xf]  ;;  %v5919_v46 = vld [vmem:[#allocation5 + $0x870] sm:$0xf0]  ;;  %v5590_v47 = vor.u32 %v7350_v38, %v5589_v37  ;;  %v5157_v48 = vld [vmem:[#allocation5 + $0x248] sm:$0xf]  ;;  %v5538_v54 = vor.u32 %v7331_v41, %v5535_v44 }
  0x32   :  { %v7242_v49 = vld [vmem:[#allocation5 + $0x274] sm:$0xf0]  ;;  %v5541_v50 = vld [vmem:[#allocation5 + $0x548] sm:$0xf]  ;;  %v95_v52 = vld [vmem:[#allocation2] sm:$0xff]  ;;  %v5922_v58 = vor.u32 %v7427_v45, %v5919_v46  ;;  %s7914_s2 = smov [#allocation11]  }
  0x33   :  { %1866 = vmatpush.bf16.msra.mxu0 %v4910_v16  ;;  %v7338_v51 = vld [vmem:[#allocation5 + $0x574] sm:$0xf0]  ;;  %v98_v53 = vld [vmem:[#allocation2 + $0x18] sm:$0xff]  ;;  %v7319_v55 = vld [vmem:[#allocation5 + $0x4e4] sm:$0xf]  ;;  %v5158_v59 = vor.u32 %v7242_v49, %v5157_v48  ;;  %s4842_s4 = sshll.u32 %s7914_s2, 4  ;;  %s4843_s4 = int_to_ptr.vmem [resolvable:$true] %s4842_s4 }
  0x34   :  { %1880 = vmatpush.bf16.msra.mxu1 %v5294_v19  ;;  %v5487_v56 = vld [vmem:[#allocation5 + $0x510] sm:$0xf0]  ;;  %v7963_v57 = vpack.c.bf16 %v98_v53, %v95_v52  ;;  %v7415_v60 = vld [vmem:[#allocation5 + $0x7e4] sm:$0xf]  ;;  %v5109_v62 = vld [vmem:[#allocation5 + $0x1e8] sm:$0xf]  ;;  %v5542_v63 = vor.u32 %v7338_v51, %v5541_v50 }
  0x35   :  { %1894 = vmatpush.bf16.msra.mxu2 %v5678_v20  ;;  %1908 = vmatpush.bf16.msra.mxu3 %v4914_v24  ;;  %v5871_v61 = vld [vmem:[#allocation5 + $0x810] sm:$0xf0]  ;;  %v7230_v0 = vld [vmem:[#allocation5 + $0x214] sm:$0xf0]  ;;  %v5493_v3 = vld [vmem:[#allocation5 + $0x4e8] sm:$0xf]  ;;  %v5490_v6 = vor.u32 %v7319_v55, %v5487_v56 }
  0x36   :  { %v96_v1 = vld [vmem:[#allocation2 + $0x8] sm:$0xff]  ;;  %v99_v2 = vld [vmem:[#allocation2 + $0x20] sm:$0xff]  ;;  %v7307_v7 = vld [vmem:[#allocation5 + $0x484] sm:$0xf]  ;;  %v5874_v9 = vor.u32 %v7415_v60, %v5871_v61  ;;  %v5110_v10 = vor.u32 %v7230_v0, %v5109_v62  ;;  %s4844_s23 = sshll.u32 %s8265_s5, 4  ;;  %s4845_s23 = int_to_ptr.hbm [resolvable:$true] %s4844_s23 }
  0x37   :  { %1867 = vmatpush.bf16.msra.mxu0 %v4862_v31  ;;  %v7326_v4 = vld [vmem:[#allocation5 + $0x514] sm:$0xf0]  ;;  %v7966_v5 = vpack.c.bf16 %v99_v2, %v96_v1  ;;  %v5439_v8 = vld [vmem:[#allocation5 + $0x4b0] sm:$0xf0]  ;;  %v7403_v11 = vld [vmem:[#allocation5 + $0x784] sm:$0xf] }
  0x38   :  { %1881 = vmatpush.bf16.msra.mxu1 %v5246_v35  ;;  %v5823_v12 = vld [vmem:[#allocation5 + $0x7b0] sm:$0xf0]  ;;  %v97_v13 = vld [vmem:[#allocation2 + $0x10] sm:$0xff]  ;;  %v5494_v14 = vor.u32 %v7326_v4, %v5493_v3  ;;  %v5061_v15 = vld [vmem:[#allocation5 + $0x188] sm:$0xf]  ;;  %v5442_v21 = vor.u32 %v7307_v7, %v5439_v8 }
  0x39   :  { %1895 = vmatpush.bf16.msra.mxu2 %v5630_v36  ;;  %1909 = vmatpush.bf16.msra.mxu3 %v4866_v39  ;;  %v7218_v16 = vld [vmem:[#allocation5 + $0x1b4] sm:$0xf0]  ;;  %v5445_v18 = vld [vmem:[#allocation5 + $0x488] sm:$0xf]  ;;  %v5826_v22 = vor.u32 %v7403_v11, %v5823_v12  ;;  %v7295_v24 = vld [vmem:[#allocation5 + $0x424] sm:$0xf] }
  0x3a   :  { %1868 = vmatmul.bf16.vlgmr.msra.gmra.mxu0 %v7963_v57  ;;  %v100_v17 = vld [vmem:[#allocation2 + $0x28] sm:$0xff]  ;;  %v5062_v23 = vor.u32 %v7218_v16, %v5061_v15  ;;  %v5391_v25 = vld [vmem:[#allocation5 + $0x450] sm:$0xf0]  ;;  %v7391_v26 = vld [vmem:[#allocation5 + $0x724] sm:$0xf] }
  0x3b   :  { %1916 = vmatpush.bf16.msrb.mxu0 %v5586_v40  ;;  %1882 = vmatmul.bf16.vlgmr.msra.gmra.mxu1 %v7966_v5  ;;  %v7314_v19 = vld [vmem:[#allocation5 + $0x4b4] sm:$0xf0]  ;;  %v7970_v20 = vpack.c.bf16 %v100_v17, %v97_v13  ;;  %v5775_v28 = vld [vmem:[#allocation5 + $0x750] sm:$0xf0]  ;;  %v5013_v29 = vld [vmem:[#allocation5 + $0x128] sm:$0xf]  ;;  %v5394_v33 = vor.u32 %v7295_v24, %v5391_v25 }
  0x3c   :  { %1930 = vmatpush.bf16.msrb.mxu1 %v5970_v42  ;;  %1910 = vmatmul.bf16.vlgmr.msra.gmra.mxu3 %v7963_v57  ;;  %v5446_v27 = vor.u32 %v7314_v19, %v5445_v18  ;;  %v7206_v30 = vld [vmem:[#allocation5 + $0x154] sm:$0xf0]  ;;  %v5397_v31 = vld [vmem:[#allocation5 + $0x428] sm:$0xf]  ;;  %v5778_v34 = vor.u32 %v7391_v26, %v5775_v28  ;;  %v7283_v36 = vld [vmem:[#allocation5 + $0x3c4] sm:$0xf] }
  0x3d   :  { %1944 = vmatpush.bf16.msrb.mxu2 %v5206_v43  ;;  %1958 = vmatpush.bf16.msrb.mxu3 %v5590_v47  ;;  %v7302_v32 = vld [vmem:[#allocation5 + $0x454] sm:$0xf0]  ;;  %v5014_v35 = vor.u32 %v7206_v30, %v5013_v29  ;;  %v5343_v37 = vld [vmem:[#allocation5 + $0x3f0] sm:$0xf0]  ;;  %v7379_v38 = vld [vmem:[#allocation5 + $0x6c4] sm:$0xf] }
  0x3e   :  { %1896 = vmatmul.bf16.vlgmr.msra.gmra.mxu2 %v7970_v20  ;;  %v5398_v39 = vor.u32 %v7302_v32, %v5397_v31  ;;  %v5727_v40 = vld [vmem:[#allocation5 + $0x6f0] sm:$0xf0]  ;;  %v4965_v41 = vld [vmem:[#allocation5 + $0xc8] sm:$0xf]  ;;  %v7194_v42 = vld [vmem:[#allocation5 + $0xf4] sm:$0xf0]  ;;  %v5346_v45 = vor.u32 %v7283_v36, %v5343_v37 }
  0x3f   :  { %1917 = vmatpush.bf16.msrb.mxu0 %v5538_v54  ;;  %v5349_v43 = vld [vmem:[#allocation5 + $0x3c8] sm:$0xf]  ;;  %v7290_v44 = vld [vmem:[#allocation5 + $0x3f4] sm:$0xf0]  ;;  %v5730_v46 = vor.u32 %v7379_v38, %v5727_v40  ;;  %v4966_v47 = vor.u32 %v7194_v42, %v4965_v41  ;;  %v7271_v48 = vld [vmem:[#allocation5 + $0x364] sm:$0xf] }
  0x40   :  { %1931 = vmatpush.bf16.msrb.mxu1 %v5922_v58  ;;  %v5295_v49 = vld [vmem:[#allocation5 + $0x390] sm:$0xf0]  ;;  %v7367_v50 = vld [vmem:[#allocation5 + $0x664] sm:$0xf]  ;;  %v5350_v51 = vor.u32 %v7290_v44, %v5349_v43  ;;  %v4917_v53 = vld [vmem:[#allocation5 + $0x68] sm:$0xf] }
  0x41   :  { %1945 = vmatpush.bf16.msrb.mxu2 %v5158_v59  ;;  %1959 = vmatpush.bf16.msrb.mxu3 %v5542_v63  ;;  %v5679_v52 = vld [vmem:[#allocation5 + $0x690] sm:$0xf0]  ;;  %v7182_v54 = vld [vmem:[#allocation5 + $0x94] sm:$0xf0]  ;;  %v5301_v55 = vld [vmem:[#allocation5 + $0x368] sm:$0xf]  ;;  %v5298_v58 = vor.u32 %v7271_v48, %v5295_v49 }
  0x42   :  { %v7278_v56 = vld [vmem:[#allocation5 + $0x394] sm:$0xf0]  ;;  %v7259_v59 = vld [vmem:[#allocation5 + $0x304] sm:$0xf]  ;;  %v5247_v60 = vld [vmem:[#allocation5 + $0x330] sm:$0xf0]  ;;  %v5682_v61 = vor.u32 %v7367_v50, %v5679_v52  ;;  %v4918_v62 = vor.u32 %v7182_v54, %v4917_v53 }
  0x43   :  { %1918 = vmatpush.bf16.msrb.mxu0 %v5490_v6  ;;  %v7355_v63 = vld [vmem:[#allocation5 + $0x604] sm:$0xf]  ;;  %v5631_v0 = vld [vmem:[#allocation5 + $0x630] sm:$0xf0]  ;;  %v4869_v1 = vld [vmem:[#allocation5 + $0x8] sm:$0xf]  ;;  %v5302_v2 = vor.u32 %v7278_v56, %v5301_v55 }
  0x44   :  { %1932 = vmatpush.bf16.msrb.mxu1 %v5874_v9  ;;  %v7170_v3 = vld [vmem:[#allocation5 + $0x34] sm:$0xf0]  ;;  %v5253_v4 = vld [vmem:[#allocation5 + $0x308] sm:$0xf]  ;;  %v7248_v9 = vld [vmem:[#allocation5 + $0x2ac] sm:$0xf] }
  0x45   :  { %1946 = vmatpush.bf16.msrb.mxu2 %v5110_v10  ;;  %1960 = vmatpush.bf16.msrb.mxu3 %v5494_v14  ;;  %v7266_v6 = vld [vmem:[#allocation5 + $0x334] sm:$0xf0]  ;;  %v5973_v7 = vld [vmem:[#allocation5 + $0x8a8] sm:$0xf]  ;;  %v5250_v10 = vor.u32 %v7259_v59, %v5247_v60  ;;  %v5207_v11 = vld [vmem:[#allocation5 + $0x2d8] sm:$0xf0]  ;;  %v5634_v14 = vor.u32 %v7355_v63, %v5631_v0  ;;  %v4870_v15 = vor.u32 %v7170_v3, %v4869_v1 }
  0x46   :  { %v7446_v8 = vld [vmem:[#allocation5 + $0x8d4] sm:$0xf0]  ;;  %v7344_v12 = vld [vmem:[#allocation5 + $0x5ac] sm:$0xf]  ;;  %v5591_v13 = vld [vmem:[#allocation5 + $0x5d8] sm:$0xf0]  ;;  %v5254_v18 = vor.u32 %v7266_v6, %v5253_v4 }
  0x47   :  { %1919 = vmatpush.bf16.msrb.mxu0 %v5442_v21  ;;  %v7440_v16 = vld [vmem:[#allocation5 + $0x8ac] sm:$0xf]  ;;  %v5975_v17 = vld [vmem:[#allocation5 + $0x8d8] sm:$0xf0]  ;;  %v5974_v19 = vor.u32 %v7446_v8, %v5973_v7  ;;  %v5210_v21 = vor.u32 %v7248_v9, %v5207_v11  ;;  %v7434_v24 = vld [vmem:[#allocation5 + $0x874] sm:$0xf0] }
  0x48   :  { %1933 = vmatpush.bf16.msrb.mxu1 %v5826_v22  ;;  %v5594_v22 = vor.u32 %v7344_v12, %v5591_v13  ;;  %v7236_v25 = vld [vmem:[#allocation5 + $0x24c] sm:$0xf]  ;;  %v5978_v26 = vor.u32 %v7440_v16, %v5975_v17  ;;  %v5543_v29 = vld [vmem:[#allocation5 + $0x578] sm:$0xf0]  ;;  %v7422_v36 = vld [vmem:[#allocation5 + $0x814] sm:$0xf0] }
  0x49   :  { %1947 = vmatpush.bf16.msrb.mxu2 %v5062_v23  ;;  %1961 = vmatpush.bf16.msrb.mxu3 %v5446_v27  ;;  %v5925_v23 = vld [vmem:[#allocation5 + $0x848] sm:$0xf]  ;;  %v5159_v27 = vld [vmem:[#allocation5 + $0x278] sm:$0xf0]  ;;  %v7332_v28 = vld [vmem:[#allocation5 + $0x54c] sm:$0xf] }
  0x4a   :  { %v7428_v30 = vld [vmem:[#allocation5 + $0x84c] sm:$0xf]  ;;  %v5927_v31 = vld [vmem:[#allocation5 + $0x878] sm:$0xf0]  ;;  %v5926_v32 = vor.u32 %v7434_v24, %v5925_v23  ;;  %v7410_v48 = vld [vmem:[#allocation5 + $0x7b4] sm:$0xf0] }
  0x4b   :  { %1920 = vmatpush.bf16.msrb.mxu0 %v5394_v33  ;;  %v5162_v33 = vor.u32 %v7236_v25, %v5159_v27  ;;  %v7224_v37 = vld [vmem:[#allocation5 + $0x1ec] sm:$0xf]  ;;  %v5930_v38 = vor.u32 %v7428_v30, %v5927_v31  ;;  %v5495_v41 = vld [vmem:[#allocation5 + $0x518] sm:$0xf0]  ;;  %v5781_v60 = vld [vmem:[#allocation5 + $0x728] sm:$0xf] }
  0x4c   :  { %1934 = vmatpush.bf16.msrb.mxu1 %v5778_v34  ;;  %v5546_v34 = vor.u32 %v7332_v28, %v5543_v29  ;;  %v7320_v40 = vld [vmem:[#allocation5 + $0x4ec] sm:$0xf]  ;;  %v5879_v43 = vld [vmem:[#allocation5 + $0x818] sm:$0xf0]  ;;  %v5733_v9 = vld [vmem:[#allocation5 + $0x6c8] sm:$0xf] }
  0x4d   :  { %1948 = vmatpush.bf16.msrb.mxu2 %v5014_v35  ;;  %1962 = vmatpush.bf16.msrb.mxu3 %v5398_v39  ;;  %v5877_v35 = vld [vmem:[#allocation5 + $0x7e8] sm:$0xf]  ;;  %v5111_v39 = vld [vmem:[#allocation5 + $0x218] sm:$0xf0]  ;;  %v7416_v42 = vld [vmem:[#allocation5 + $0x7ec] sm:$0xf] }
  0x4e   :  { %v5878_v44 = vor.u32 %v7422_v36, %v5877_v35  ;;  %v7212_v49 = vld [vmem:[#allocation5 + $0x18c] sm:$0xf]  ;;  %v5882_v50 = vor.u32 %v7416_v42, %v5879_v43  ;;  %v5447_v53 = vld [vmem:[#allocation5 + $0x4b8] sm:$0xf0]  ;;  %v7374_v23 = vld [vmem:[#allocation5 + $0x694] sm:$0xf0] }
  0x4f   :  { %1921 = vmatpush.bf16.msrb.mxu0 %v5346_v45  ;;  %v5114_v45 = vor.u32 %v7224_v37, %v5111_v39  ;;  %v7308_v52 = vld [vmem:[#allocation5 + $0x48c] sm:$0xf]  ;;  %v5831_v55 = vld [vmem:[#allocation5 + $0x7b8] sm:$0xf0]  ;;  %v5213_v43 = vld [vmem:[#allocation5 + $0x2b0] sm:$0xf] }
  0x50   :  { %1935 = vmatpush.bf16.msrb.mxu1 %v5730_v46  ;;  %v5498_v46 = vor.u32 %v7320_v40, %v5495_v41  ;;  %v7404_v54 = vld [vmem:[#allocation5 + $0x78c] sm:$0xf]  ;;  %v5450_v59 = vor.u32 %v7308_v52, %v5447_v53  ;;  %v5015_v0 = vld [vmem:[#allocation5 + $0x158] sm:$0xf0]  ;;  %v7249_v52 = vld [vmem:[#allocation5 + $0x2b4] sm:$0xf] }
  0x51   :  { %1949 = vmatpush.bf16.msrb.mxu2 %v4966_v47  ;;  %1963 = vmatpush.bf16.msrb.mxu3 %v5350_v51  ;;  %v5829_v47 = vld [vmem:[#allocation5 + $0x788] sm:$0xf]  ;;  %v5063_v51 = vld [vmem:[#allocation5 + $0x1b8] sm:$0xf0]  ;;  %v5834_v63 = vor.u32 %v7404_v54, %v5831_v55  ;;  %v7296_v1 = vld [vmem:[#allocation5 + $0x42c] sm:$0xf] }
  0x52   :  { %v5830_v56 = vor.u32 %v7410_v48, %v5829_v47  ;;  %v7392_v3 = vld [vmem:[#allocation5 + $0x72c] sm:$0xf]  ;;  %v5783_v4 = vld [vmem:[#allocation5 + $0x758] sm:$0xf0]  ;;  %v7351_v47 = vld [vmem:[#allocation5 + $0x5dc] sm:$0xf0] }
  0x53   :  { %1922 = vmatpush.bf16.msrb.mxu0 %v5298_v58  ;;  %v5066_v58 = vor.u32 %v7212_v49, %v5063_v51  ;;  %v7188_v11 = vld [vmem:[#allocation5 + $0xcc] sm:$0xf]  ;;  %v5786_v12 = vor.u32 %v7392_v3, %v5783_v4  ;;  %v4967_v13 = vld [vmem:[#allocation5 + $0xf8] sm:$0xf0]  ;;  %v5981_v48 = vld [vmem:[#allocation5 + $0x8b0] sm:$0xf] }
  0x54   :  { %1936 = vmatpush.bf16.msrb.mxu1 %v5682_v61  ;;  %v7398_v61 = vld [vmem:[#allocation5 + $0x754] sm:$0xf0]  ;;  %v7380_v16 = vld [vmem:[#allocation5 + $0x6cc] sm:$0xf]  ;;  %v5735_v17 = vld [vmem:[#allocation5 + $0x6f8] sm:$0xf0] }
  0x55   :  { %1950 = vmatpush.bf16.msrb.mxu2 %v4918_v62  ;;  %1964 = vmatpush.bf16.msrb.mxu3 %v5302_v2  ;;  %v7200_v62 = vld [vmem:[#allocation5 + $0x12c] sm:$0xf]  ;;  %v5399_v2 = vld [vmem:[#allocation5 + $0x458] sm:$0xf0]  ;;  %v5782_v6 = vor.u32 %v7398_v61, %v5781_v60  ;;  %v5738_v25 = vor.u32 %v7380_v16, %v5735_v17  ;;  %v7447_v49 = vld [vmem:[#allocation5 + $0x8dc] sm:$0xf0] }
  0x56   :  { %v5018_v7 = vor.u32 %v7200_v62, %v5015_v0  ;;  %v5402_v8 = vor.u32 %v7296_v1, %v5399_v2  ;;  %v7176_v24 = vld [vmem:[#allocation5 + $0x6c] sm:$0xf]  ;;  %v5303_v28 = vld [vmem:[#allocation5 + $0x398] sm:$0xf0]  ;;  %v5215_v53 = vld [vmem:[#allocation5 + $0x2e0] sm:$0xf0] }
  0x57   :  { %1923 = vmatpush.bf16.msrb.mxu0 %v5250_v10  ;;  %v7386_v10 = vld [vmem:[#allocation5 + $0x6f4] sm:$0xf0]  ;;  %v7272_v27 = vld [vmem:[#allocation5 + $0x36c] sm:$0xf]  ;;  %v5687_v30 = vld [vmem:[#allocation5 + $0x698] sm:$0xf0]  ;;  %v5218_v62 = vor.u32 %v7249_v52, %v5215_v53 }
  0x58   :  { %1937 = vmatpush.bf16.msrb.mxu1 %v5634_v14  ;;  %v7284_v14 = vld [vmem:[#allocation5 + $0x3cc] sm:$0xf]  ;;  %v5306_v35 = vor.u32 %v7272_v27, %v5303_v28  ;;  %v4871_v37 = vld [vmem:[#allocation5 + $0x38] sm:$0xf0]  ;;  %v7243_v60 = vld [vmem:[#allocation5 + $0x27c] sm:$0xf0] }
  0x59   :  { %1951 = vmatpush.bf16.msrb.mxu2 %v4870_v15  ;;  %1965 = vmatpush.bf16.msrb.mxu3 %v5254_v18  ;;  %v5351_v15 = vld [vmem:[#allocation5 + $0x3f8] sm:$0xf0]  ;;  %v5734_v18 = vor.u32 %v7386_v10, %v5733_v9  ;;  %v7368_v29 = vld [vmem:[#allocation5 + $0x66c] sm:$0xf]  ;;  %v5549_v61 = vld [vmem:[#allocation5 + $0x550] sm:$0xf] }
  0x5a   :  { %1924 = vmatmul.bf16.vlgmr.msrb.gmra.mxu0 %v7966_v5  ;;  %v7164_v36 = vld [vmem:[#allocation5 + $0xc] sm:$0xf]  ;;  %v5690_v39 = vor.u32 %v7368_v29, %v5687_v30  ;;  %v5255_v40 = vld [vmem:[#allocation5 + $0x338] sm:$0xf0]  ;;  %v5933_v0 = vld [vmem:[#allocation5 + $0x850] sm:$0xf] }
  0x5b   :  { %1972 = vmatpush.bf16.msra.mxu0 %v5974_v19  ;;  %1938 = vmatmul.bf16.vlgmr.msrb.gmra.mxu1 %v7970_v20  ;;  %v4970_v19 = vor.u32 %v7188_v11, %v4967_v13  ;;  %v7356_v41 = vld [vmem:[#allocation5 + $0x60c] sm:$0xf]  ;;  %v5639_v42 = vld [vmem:[#allocation5 + $0x638] sm:$0xf0]  ;;  %v7435_v1 = vld [vmem:[#allocation5 + $0x87c] sm:$0xf0] }
  0x5c   :  { %1986 = vmatpush.bf16.msra.mxu1 %v5210_v21  ;;  %1952 = vmatmul.bf16.vlgmr.msrb.gmra.mxu2 %v7963_v57  ;;  %v5354_v21 = vor.u32 %v7284_v14, %v5351_v15  ;;  %v5642_v54 = vor.u32 %v7356_v41, %v5639_v42  ;;  %v7237_v2 = vld [vmem:[#allocation5 + $0x254] sm:$0xf]  ;;  %v5167_v3 = vld [vmem:[#allocation5 + $0x280] sm:$0xf0]  ;;  %v7231_v9 = vld [vmem:[#allocation5 + $0x21c] sm:$0xf0] }
  0x5d   :  { %2000 = vmatpush.bf16.msra.mxu2 %v5594_v22  ;;  %2014 = vmatpush.bf16.msra.mxu3 %v5978_v26  ;;  %v5685_v22 = vld [vmem:[#allocation5 + $0x668] sm:$0xf]  ;;  %v4919_v26 = vld [vmem:[#allocation5 + $0x98] sm:$0xf0]  ;;  %v5501_v10 = vld [vmem:[#allocation5 + $0x4f0] sm:$0xf]  ;;  %v5170_v11 = vor.u32 %v7237_v2, %v5167_v3 }
  0x5e   :  { %1966 = vmatmul.bf16.vlgmr.msrb.gmra.mxu3 %v7966_v5  ;;  %v5686_v31 = vor.u32 %v7374_v23, %v5685_v22  ;;  %v5885_v13 = vld [vmem:[#allocation5 + $0x7f0] sm:$0xf]  ;;  %v7423_v14 = vld [vmem:[#allocation5 + $0x81c] sm:$0xf0]  ;;  %v7225_v15 = vld [vmem:[#allocation5 + $0x1f4] sm:$0xf] }
  0x5f   :  { %1973 = vmatpush.bf16.msra.mxu0 %v5926_v32  ;;  %v5637_v32 = vld [vmem:[#allocation5 + $0x608] sm:$0xf]  ;;  %v5119_v16 = vld [vmem:[#allocation5 + $0x220] sm:$0xf0]  ;;  %v7219_v22 = vld [vmem:[#allocation5 + $0x1bc] sm:$0xf0] }
  0x60   :  { %1987 = vmatpush.bf16.msra.mxu1 %v5162_v33  ;;  %v7362_v33 = vld [vmem:[#allocation5 + $0x634] sm:$0xf0]  ;;  %v5453_v23 = vld [vmem:[#allocation5 + $0x490] sm:$0xf]  ;;  %v7411_v27 = vld [vmem:[#allocation5 + $0x7bc] sm:$0xf0] }
  0x61   :  { %2001 = vmatpush.bf16.msra.mxu2 %v5546_v34  ;;  %2015 = vmatpush.bf16.msra.mxu3 %v5930_v38  ;;  %v4922_v34 = vor.u32 %v7176_v24, %v4919_v26  ;;  %v7260_v38 = vld [vmem:[#allocation5 + $0x30c] sm:$0xf]  ;;  %v5122_v24 = vor.u32 %v7225_v15, %v5119_v16  ;;  %v5837_v26 = vld [vmem:[#allocation5 + $0x790] sm:$0xf]  ;;  %v7213_v28 = vld [vmem:[#allocation5 + $0x194] sm:$0xf] }
  0x62   :  { %v5258_v51 = vor.u32 %v7260_v38, %v5255_v40  ;;  %v5071_v29 = vld [vmem:[#allocation5 + $0x1c0] sm:$0xf0]  ;;  %v5789_v38 = vld [vmem:[#allocation5 + $0x730] sm:$0xf]  ;;  %v7201_v40 = vld [vmem:[#allocation5 + $0x134] sm:$0xf] }
  0x63   :  { %1974 = vmatpush.bf16.msra.mxu0 %v5878_v44  ;;  %v7255_v44 = vld [vmem:[#allocation5 + $0x2dc] sm:$0xf0]  ;;  %v5023_v41 = vld [vmem:[#allocation5 + $0x160] sm:$0xf0]  ;;  %v7189_v52 = vld [vmem:[#allocation5 + $0xd4] sm:$0xf] }
  0x64   :  { %1988 = vmatpush.bf16.msra.mxu1 %v5114_v45  ;;  %v5597_v45 = vld [vmem:[#allocation5 + $0x5b0] sm:$0xf]  ;;  %v5214_v55 = vor.u32 %v7255_v44, %v5213_v43  ;;  %v4975_v53 = vld [vmem:[#allocation5 + $0x100] sm:$0xf0]  ;;  %v7345_v16 = vld [vmem:[#allocation5 + $0x5b4] sm:$0xf] }
  0x65   :  { %2002 = vmatpush.bf16.msra.mxu2 %v5498_v46  ;;  %2016 = vmatpush.bf16.msra.mxu3 %v5882_v50  ;;  %v5638_v46 = vor.u32 %v7362_v33, %v5637_v32  ;;  %v4874_v50 = vor.u32 %v7164_v36, %v4871_v37  ;;  %v5838_v32 = vor.u32 %v7411_v27, %v5837_v26  ;;  %v5021_v33 = vld [vmem:[#allocation5 + $0x130] sm:$0xf]  ;;  %v7303_v37 = vld [vmem:[#allocation5 + $0x45c] sm:$0xf0]  ;;  %v4927_v2 = vld [vmem:[#allocation5 + $0xa0] sm:$0xf0] }
  0x66   :  { %v5074_v36 = vor.u32 %v7213_v28, %v5071_v29  ;;  %v4879_v15 = vld [vmem:[#allocation5 + $0x40] sm:$0xf0]  ;;  %v5605_v26 = vld [vmem:[#allocation5 + $0x5b8] sm:$0xf]  ;;  %v7352_v27 = vld [vmem:[#allocation5 + $0x5e4] sm:$0xf0] }
  0x67   :  { %1975 = vmatpush.bf16.msra.mxu0 %v5830_v56  ;;  %v5598_v56 = vor.u32 %v7351_v47, %v5597_v45  ;;  %v4973_v45 = vld [vmem:[#allocation5 + $0xd0] sm:$0xf] }
  0x68   :  { %1989 = vmatpush.bf16.msra.mxu1 %v5066_v58  ;;  %v5982_v58 = vor.u32 %v7447_v49, %v5981_v48  ;;  %v5357_v47 = vld [vmem:[#allocation5 + $0x3d0] sm:$0xf]  ;;  %v5026_v48 = vor.u32 %v7201_v40, %v5023_v41  ;;  %v7291_v49 = vld [vmem:[#allocation5 + $0x3fc] sm:$0xf0]  ;;  %v7340_v40 = vld [vmem:[#allocation5 + $0x584] sm:$0xf0] }
  0x69   :  { %2003 = vmatpush.bf16.msra.mxu2 %v5450_v59  ;;  %2017 = vmatpush.bf16.msra.mxu3 %v5834_v63  ;;  %v5165_v59 = vld [vmem:[#allocation5 + $0x250] sm:$0xf]  ;;  %v7339_v63 = vld [vmem:[#allocation5 + $0x57c] sm:$0xf0] }
  0x6a   :  { %v5166_v4 = vor.u32 %v7243_v60, %v5165_v59  ;;  %v7183_v59 = vld [vmem:[#allocation5 + $0x9c] sm:$0xf0]  ;;  %v5309_v60 = vld [vmem:[#allocation5 + $0x370] sm:$0xf] }
  0x6b   :  { %1976 = vmatpush.bf16.msra.mxu0 %v5782_v6  ;;  %v5550_v6 = vor.u32 %v7339_v63, %v5549_v61  ;;  %v4978_v61 = vor.u32 %v7189_v52, %v4975_v53  ;;  %v5693_v63 = vld [vmem:[#allocation5 + $0x670] sm:$0xf]  ;;  %v7328_v52 = vld [vmem:[#allocation5 + $0x524] sm:$0xf0] }
  0x6c   :  { %1990 = vmatpush.bf16.msra.mxu1 %v5018_v7  ;;  %v5934_v7 = vor.u32 %v7435_v1, %v5933_v0  ;;  %v7375_v0 = vld [vmem:[#allocation5 + $0x69c] sm:$0xf0]  ;;  %v7177_v1 = vld [vmem:[#allocation5 + $0x74] sm:$0xf] }
  0x6d   :  { %2004 = vmatpush.bf16.msra.mxu2 %v5402_v8  ;;  %2018 = vmatpush.bf16.msra.mxu3 %v5786_v12  ;;  %v5117_v8 = vld [vmem:[#allocation5 + $0x1f0] sm:$0xf]  ;;  %v7327_v12 = vld [vmem:[#allocation5 + $0x51c] sm:$0xf0] }
  0x6e   :  { %v5118_v17 = vor.u32 %v7231_v9, %v5117_v8  ;;  %v5694_v8 = vor.u32 %v7375_v0, %v5693_v63  ;;  %v5261_v9 = vld [vmem:[#allocation5 + $0x310] sm:$0xf]  ;;  %v7220_v63 = vld [vmem:[#allocation5 + $0x1c4] sm:$0xf0]  ;;  %v5461_v0 = vld [vmem:[#allocation5 + $0x498] sm:$0xf] }
  0x6f   :  { %1977 = vmatpush.bf16.msra.mxu0 %v5734_v18  ;;  %v5502_v18 = vor.u32 %v7327_v12, %v5501_v10  ;;  %v7267_v10 = vld [vmem:[#allocation5 + $0x33c] sm:$0xf0]  ;;  %v4930_v12 = vor.u32 %v7177_v1, %v4927_v2  ;;  %v7316_v1 = vld [vmem:[#allocation5 + $0x4c4] sm:$0xf0] }
  0x70   :  { %1991 = vmatpush.bf16.msra.mxu1 %v4970_v19  ;;  %v5886_v19 = vor.u32 %v7423_v14, %v5885_v13  ;;  %v7363_v13 = vld [vmem:[#allocation5 + $0x63c] sm:$0xf0]  ;;  %v7165_v14 = vld [vmem:[#allocation5 + $0x14] sm:$0xf] }
  0x71   :  { %2005 = vmatpush.bf16.msra.mxu2 %v5354_v21  ;;  %2019 = vmatpush.bf16.msra.mxu3 %v5738_v25  ;;  %v5069_v21 = vld [vmem:[#allocation5 + $0x190] sm:$0xf]  ;;  %v7315_v25 = vld [vmem:[#allocation5 + $0x4bc] sm:$0xf0]  ;;  %v4882_v28 = vor.u32 %v7165_v14, %v4879_v15  ;;  %v7304_v14 = vld [vmem:[#allocation5 + $0x464] sm:$0xf0] }
  0x72   :  { %v5070_v30 = vor.u32 %v7219_v22, %v5069_v21  ;;  %v5983_v21 = vld [vmem:[#allocation5 + $0x8e0] sm:$0xf0]  ;;  %v5221_v22 = vld [vmem:[#allocation5 + $0x2b8] sm:$0xf] }
  0x73   :  { %1978 = vmatpush.bf16.msra.mxu0 %v5686_v31  ;;  %v5454_v31 = vor.u32 %v7315_v25, %v5453_v23  ;;  %v7256_v23 = vld [vmem:[#allocation5 + $0x2e4] sm:$0xf0] }
  0x74   :  { %1992 = vmatpush.bf16.msra.mxu1 %v4922_v34  ;;  %v7207_v34 = vld [vmem:[#allocation5 + $0x15c] sm:$0xf0] }
  0x75   :  { %2006 = vmatpush.bf16.msra.mxu2 %v5306_v35  ;;  %2020 = vmatpush.bf16.msra.mxu3 %v5690_v39  ;;  %v5405_v35 = vld [vmem:[#allocation5 + $0x430] sm:$0xf]  ;;  %v7399_v39 = vld [vmem:[#allocation5 + $0x75c] sm:$0xf0]  ;;  %v5022_v42 = vor.u32 %v7207_v34, %v5021_v33  ;;  %v5551_v33 = vld [vmem:[#allocation5 + $0x580] sm:$0xf0] }
  0x76   :  { %v5406_v43 = vor.u32 %v7303_v37, %v5405_v35  ;;  %v5790_v44 = vor.u32 %v7399_v39, %v5789_v38  ;;  %v7429_v34 = vld [vmem:[#allocation5 + $0x854] sm:$0xf]  ;;  %v5606_v35 = vor.u32 %v7352_v27, %v5605_v26  ;;  %v5173_v37 = vld [vmem:[#allocation5 + $0x258] sm:$0xf]  ;;  %v7244_v38 = vld [vmem:[#allocation5 + $0x284] sm:$0xf0] }
  0x77   :  { %1979 = vmatpush.bf16.msra.mxu0 %v5638_v46  ;;  %v7195_v46 = vld [vmem:[#allocation5 + $0xfc] sm:$0xf0]  ;;  %v5557_v39 = vld [vmem:[#allocation5 + $0x558] sm:$0xf]  ;;  %v7292_v27 = vld [vmem:[#allocation5 + $0x404] sm:$0xf0] }
  0x78   :  { %1993 = vmatpush.bf16.msra.mxu1 %v4874_v50  ;;  %v5741_v50 = vld [vmem:[#allocation5 + $0x6d0] sm:$0xf]  ;;  %v5365_v26 = vld [vmem:[#allocation5 + $0x3d8] sm:$0xf] }
  0x79   :  { %2007 = vmatpush.bf16.msra.mxu2 %v5258_v51  ;;  %2021 = vmatpush.bf16.msra.mxu3 %v5642_v54  ;;  %v7387_v51 = vld [vmem:[#allocation5 + $0x6fc] sm:$0xf0]  ;;  %v4974_v54 = vor.u32 %v7195_v46, %v4973_v45  ;;  %v5503_v45 = vld [vmem:[#allocation5 + $0x520] sm:$0xf0]  ;;  %v7417_v46 = vld [vmem:[#allocation5 + $0x7f4] sm:$0xf] }
  0x7a   :  { %1980 = vmatmul.bf16.vlgmr.msra.gmra.mxu0 %v7970_v20 }
  0x7b   :  { %2028 = vmatpush.bf16.msrb.mxu0 %v5214_v55  ;;  %1994 = vmatmul.bf16.vlgmr.msra.gmra.mxu1 %v7963_v57  ;;  %v5358_v55 = vor.u32 %v7291_v49, %v5357_v47  ;;  %v5558_v47 = vor.u32 %v7340_v40, %v5557_v39  ;;  %v5125_v49 = vld [vmem:[#allocation5 + $0x1f8] sm:$0xf]  ;;  %v7280_v39 = vld [vmem:[#allocation5 + $0x3a4] sm:$0xf0] }
  0x7c   :  { %2042 = vmatpush.bf16.msrb.mxu1 %v5598_v56  ;;  %2008 = vmatmul.bf16.vlgmr.msra.gmra.mxu2 %v7966_v5  ;;  %v5742_v56 = vor.u32 %v7387_v51, %v5741_v50  ;;  %v7232_v50 = vld [vmem:[#allocation5 + $0x224] sm:$0xf0]  ;;  %v5509_v51 = vld [vmem:[#allocation5 + $0x4f8] sm:$0xf] }
  0x7d   :  { %2056 = vmatpush.bf16.msrb.mxu2 %v5982_v58  ;;  %2070 = vmatpush.bf16.msrb.mxu3 %v5218_v62  ;;  %v4925_v58 = vld [vmem:[#allocation5 + $0x70] sm:$0xf]  ;;  %v7279_v62 = vld [vmem:[#allocation5 + $0x39c] sm:$0xf0] }
  0x7e   :  { %2022 = vmatmul.bf16.vlgmr.msra.gmra.mxu3 %v7970_v20  ;;  %v4926_v3 = vor.u32 %v7183_v59, %v4925_v58  ;;  %v5455_v58 = vld [vmem:[#allocation5 + $0x4c0] sm:$0xf0]  ;;  %v7405_v59 = vld [vmem:[#allocation5 + $0x794] sm:$0xf] }
  0x7f   :  { %2029 = vmatpush.bf16.msrb.mxu0 %v5166_v4  ;;  %v4877_v4 = vld [vmem:[#allocation5 + $0x10] sm:$0xf] }
  0x80   :  { %2043 = vmatpush.bf16.msrb.mxu1 %v5550_v6  ;;  %v7171_v6 = vld [vmem:[#allocation5 + $0x3c] sm:$0xf0] }
  0x81   :  { %2057 = vmatpush.bf16.msrb.mxu2 %v5934_v7  ;;  %2071 = vmatpush.bf16.msrb.mxu3 %v5170_v11  ;;  %v5310_v7 = vor.u32 %v7279_v62, %v5309_v60  ;;  %v5645_v11 = vld [vmem:[#allocation5 + $0x610] sm:$0xf]  ;;  %v5510_v60 = vor.u32 %v7328_v52, %v5509_v51  ;;  %v5077_v62 = vld [vmem:[#allocation5 + $0x198] sm:$0xf]  ;;  %v7268_v51 = vld [vmem:[#allocation5 + $0x344] sm:$0xf0] }
  0x82   :  { %v5646_v25 = vor.u32 %v7363_v13, %v5645_v11  ;;  %v5029_v11 = vld [vmem:[#allocation5 + $0x138] sm:$0xf] }
  0x83   :  { %2030 = vmatpush.bf16.msrb.mxu0 %v5118_v17  ;;  %v5599_v17 = vld [vmem:[#allocation5 + $0x5e0] sm:$0xf0]  ;;  %v5413_v13 = vld [vmem:[#allocation5 + $0x438] sm:$0xf] }
  0x84   :  { %2044 = vmatpush.bf16.msrb.mxu1 %v5502_v18  ;;  %v7441_v18 = vld [vmem:[#allocation5 + $0x8b4] sm:$0xf]  ;;  %v5602_v29 = vor.u32 %v7345_v16, %v5599_v17  ;;  %v5989_v52 = vld [vmem:[#allocation5 + $0x8b8] sm:$0xf] }
  0x85   :  { %2058 = vmatpush.bf16.msrb.mxu2 %v5886_v19  ;;  %2072 = vmatpush.bf16.msrb.mxu3 %v5122_v24  ;;  %v4878_v19 = vor.u32 %v7171_v6, %v4877_v4  ;;  %v5262_v24 = vor.u32 %v7267_v10, %v5261_v9  ;;  %v5078_v4 = vor.u32 %v7220_v63, %v5077_v62  ;;  %v7297_v6 = vld [vmem:[#allocation5 + $0x434] sm:$0xf]  ;;  %v5791_v10 = vld [vmem:[#allocation5 + $0x760] sm:$0xf0]  ;;  %v7442_v62 = vld [vmem:[#allocation5 + $0x8bc] sm:$0xf] }
  0x86   :  { %v5462_v9 = vor.u32 %v7316_v1, %v5461_v0  ;;  %v5991_v63 = vld [vmem:[#allocation5 + $0x8e8] sm:$0xf0] }
  0x87   :  { %2031 = vmatpush.bf16.msrb.mxu0 %v5070_v30  ;;  %v5986_v30 = vor.u32 %v7441_v18, %v5983_v21  ;;  %v7285_v18 = vld [vmem:[#allocation5 + $0x3d4] sm:$0xf] }
  0x88   :  { %2045 = vmatpush.bf16.msrb.mxu1 %v5454_v31  ;;  %v5222_v31 = vor.u32 %v7256_v23, %v5221_v22  ;;  %v7381_v21 = vld [vmem:[#allocation5 + $0x6d4] sm:$0xf]  ;;  %v5414_v22 = vor.u32 %v7304_v14, %v5413_v13  ;;  %v5743_v23 = vld [vmem:[#allocation5 + $0x700] sm:$0xf0]  ;;  %v5943_v13 = vld [vmem:[#allocation5 + $0x888] sm:$0xf0] }
  0x89   :  { %2059 = vmatpush.bf16.msrb.mxu2 %v5838_v32  ;;  %2073 = vmatpush.bf16.msrb.mxu3 %v5074_v36  ;;  %v7333_v32 = vld [vmem:[#allocation5 + $0x554] sm:$0xf]  ;;  %v5935_v36 = vld [vmem:[#allocation5 + $0x880] sm:$0xf0] }
  0x8a   :  { %v5554_v41 = vor.u32 %v7333_v32, %v5551_v33  ;;  %v5311_v32 = vld [vmem:[#allocation5 + $0x3a0] sm:$0xf0]  ;;  %v7369_v33 = vld [vmem:[#allocation5 + $0x674] sm:$0xf] }
  0x8b   :  { %2032 = vmatpush.bf16.msrb.mxu0 %v5022_v42  ;;  %v5938_v42 = vor.u32 %v7429_v34, %v5935_v36  ;;  %v5366_v34 = vor.u32 %v7292_v27, %v5365_v26  ;;  %v4933_v36 = vld [vmem:[#allocation5 + $0x78] sm:$0xf]  ;;  %v5895_v26 = vld [vmem:[#allocation5 + $0x828] sm:$0xf0] }
  0x8c   :  { %2046 = vmatpush.bf16.msrb.mxu1 %v5406_v43  ;;  %v5174_v43 = vor.u32 %v7244_v38, %v5173_v37  ;;  %v7184_v37 = vld [vmem:[#allocation5 + $0xa4] sm:$0xf0]  ;;  %v5317_v38 = vld [vmem:[#allocation5 + $0x378] sm:$0xf] }
  0x8d   :  { %2060 = vmatpush.bf16.msrb.mxu2 %v5790_v44  ;;  %2074 = vmatpush.bf16.msrb.mxu3 %v5026_v48  ;;  %v7321_v44 = vld [vmem:[#allocation5 + $0x4f4] sm:$0xf]  ;;  %v5887_v48 = vld [vmem:[#allocation5 + $0x820] sm:$0xf0] }
  0x8e   :  { %v5506_v53 = vor.u32 %v7321_v44, %v5503_v45  ;;  %v4934_v44 = vor.u32 %v7184_v37, %v4933_v36  ;;  %v7357_v45 = vld [vmem:[#allocation5 + $0x614] sm:$0xf]  ;;  %v5463_v36 = vld [vmem:[#allocation5 + $0x4c8] sm:$0xf0]  ;;  %v7406_v37 = vld [vmem:[#allocation5 + $0x79c] sm:$0xf] }
  0x8f   :  { %2033 = vmatpush.bf16.msrb.mxu0 %v4974_v54  ;;  %v5890_v54 = vor.u32 %v7417_v46, %v5887_v48  ;;  %v5647_v46 = vld [vmem:[#allocation5 + $0x640] sm:$0xf0]  ;;  %v5318_v48 = vor.u32 %v7280_v39, %v5317_v38  ;;  %v5847_v38 = vld [vmem:[#allocation5 + $0x7c8] sm:$0xf0] }
  0x90   :  { %2047 = vmatpush.bf16.msrb.mxu1 %v5358_v55  ;;  %v5126_v55 = vor.u32 %v7232_v50, %v5125_v49  ;;  %v7172_v49 = vld [vmem:[#allocation5 + $0x44] sm:$0xf0]  ;;  %v5269_v50 = vld [vmem:[#allocation5 + $0x318] sm:$0xf] }
  0x91   :  { %2061 = vmatpush.bf16.msrb.mxu2 %v5742_v56  ;;  %2075 = vmatpush.bf16.msrb.mxu3 %v4978_v61  ;;  %v7309_v56 = vld [vmem:[#allocation5 + $0x494] sm:$0xf]  ;;  %v5839_v61 = vld [vmem:[#allocation5 + $0x7c0] sm:$0xf0]  ;;  %v5270_v0 = vor.u32 %v7268_v51, %v5269_v50  ;;  %v5799_v50 = vld [vmem:[#allocation5 + $0x768] sm:$0xf0] }
  0x92   :  { %v5458_v2 = vor.u32 %v7309_v56, %v5455_v58  ;;  %v5223_v56 = vld [vmem:[#allocation5 + $0x2e8] sm:$0xf0]  ;;  %v7346_v58 = vld [vmem:[#allocation5 + $0x5bc] sm:$0xf] }
  0x93   :  { %2034 = vmatpush.bf16.msrb.mxu0 %v4926_v3  ;;  %v5842_v3 = vor.u32 %v7405_v59, %v5839_v61  ;;  %v5607_v59 = vld [vmem:[#allocation5 + $0x5e8] sm:$0xf0] }
  0x94   :  { %2048 = vmatpush.bf16.msrb.mxu1 %v5310_v7  ;;  %v5407_v7 = vld [vmem:[#allocation5 + $0x460] sm:$0xf0] }
  0x95   :  { %2062 = vmatpush.bf16.msrb.mxu2 %v5694_v8  ;;  %2076 = vmatpush.bf16.msrb.mxu3 %v4930_v12  ;;  %v7393_v8 = vld [vmem:[#allocation5 + $0x734] sm:$0xf]  ;;  %v7208_v12 = vld [vmem:[#allocation5 + $0x164] sm:$0xf0]  ;;  %v5410_v15 = vor.u32 %v7297_v6, %v5407_v7  ;;  %v7238_v7 = vld [vmem:[#allocation5 + $0x25c] sm:$0xf] }
  0x96   :  { %v5794_v16 = vor.u32 %v7393_v8, %v5791_v10  ;;  %v5030_v17 = vor.u32 %v7208_v12, %v5029_v11  ;;  %v7436_v6 = vld [vmem:[#allocation5 + $0x884] sm:$0xf0]  ;;  %v5994_v8 = vor.u32 %v7442_v62, %v5991_v63  ;;  %v7334_v10 = vld [vmem:[#allocation5 + $0x55c] sm:$0xf]  ;;  %v5559_v11 = vld [vmem:[#allocation5 + $0x588] sm:$0xf0] }
  0x97   :  { %2035 = vmatpush.bf16.msrb.mxu0 %v4878_v19  ;;  %v5359_v19 = vld [vmem:[#allocation5 + $0x400] sm:$0xf0]  ;;  %v7430_v12 = vld [vmem:[#allocation5 + $0x85c] sm:$0xf]  ;;  %v5751_v63 = vld [vmem:[#allocation5 + $0x708] sm:$0xf0] }
  0x98   :  { %2049 = vmatpush.bf16.msrb.mxu1 %v5262_v24  ;;  %v4981_v24 = vld [vmem:[#allocation5 + $0xd8] sm:$0xf]  ;;  %v7382_v62 = vld [vmem:[#allocation5 + $0x6dc] sm:$0xf] }
  0x99   :  { %2063 = vmatpush.bf16.msrb.mxu2 %v5646_v25  ;;  %2077 = vmatpush.bf16.msrb.mxu3 %v4882_v28  ;;  %v7196_v25 = vld [vmem:[#allocation5 + $0x104] sm:$0xf0]  ;;  %v5362_v28 = vor.u32 %v7285_v18, %v5359_v19  ;;  %v7226_v19 = vld [vmem:[#allocation5 + $0x1fc] sm:$0xf] }
  0x9a   :  { %2036 = vmatmul.bf16.vlgmr.msrb.gmra.mxu0 %v7963_v57  ;;  %v7424_v18 = vld [vmem:[#allocation5 + $0x824] sm:$0xf0] }
  0x9b   :  { %2084 = vmatpush.bf16.msra.mxu0 %v5602_v29  ;;  %2050 = vmatmul.bf16.vlgmr.msrb.gmra.mxu1 %v7966_v5  ;;  %v5746_v29 = vor.u32 %v7381_v21, %v5743_v23  ;;  %v5946_v21 = vor.u32 %v7430_v12, %v5943_v13  ;;  %v7322_v23 = vld [vmem:[#allocation5 + $0x4fc] sm:$0xf]  ;;  %v5703_v12 = vld [vmem:[#allocation5 + $0x6a8] sm:$0xf0] }
  0x9c   :  { %2098 = vmatpush.bf16.msra.mxu1 %v5986_v30  ;;  %2064 = vmatmul.bf16.vlgmr.msrb.gmra.mxu2 %v7970_v20  ;;  %v4982_v30 = vor.u32 %v7196_v25, %v4981_v24  ;;  %v5511_v24 = vld [vmem:[#allocation5 + $0x528] sm:$0xf0]  ;;  %v7418_v25 = vld [vmem:[#allocation5 + $0x7fc] sm:$0xf] }
  0x9d   :  { %2112 = vmatpush.bf16.msra.mxu2 %v5222_v31  ;;  %2126 = vmatpush.bf16.msra.mxu3 %v5606_v35  ;;  %v7273_v31 = vld [vmem:[#allocation5 + $0x374] sm:$0xf]  ;;  %v5695_v35 = vld [vmem:[#allocation5 + $0x6a0] sm:$0xf0] }
  0x9e   :  { %2078 = vmatmul.bf16.vlgmr.msrb.gmra.mxu3 %v7963_v57  ;;  %v5314_v40 = vor.u32 %v7273_v31, %v5311_v32  ;;  %v7412_v31 = vld [vmem:[#allocation5 + $0x7c4] sm:$0xf0]  ;;  %v7214_v32 = vld [vmem:[#allocation5 + $0x19c] sm:$0xf] }
  0x9f   :  { %2085 = vmatpush.bf16.msra.mxu0 %v5554_v41  ;;  %v7261_v41 = vld [vmem:[#allocation5 + $0x314] sm:$0xf] }
  0xa0   :  { %2099 = vmatpush.bf16.msra.mxu1 %v5938_v42  ;;  %v5263_v42 = vld [vmem:[#allocation5 + $0x340] sm:$0xf0] }
  0xa1   :  { %2113 = vmatpush.bf16.msra.mxu2 %v5174_v43  ;;  %2127 = vmatpush.bf16.msra.mxu3 %v5558_v47  ;;  %v5698_v43 = vor.u32 %v7369_v33, %v5695_v35  ;;  %v4885_v47 = vld [vmem:[#allocation5 + $0x18] sm:$0xf]  ;;  %v5898_v33 = vor.u32 %v7418_v25, %v5895_v26  ;;  %v7310_v35 = vld [vmem:[#allocation5 + $0x49c] sm:$0xf]  ;;  %v5655_v25 = vld [vmem:[#allocation5 + $0x648] sm:$0xf0] }
  0xa2   :  { %v4886_v61 = vor.u32 %v7172_v49, %v4885_v47  ;;  %v7298_v47 = vld [vmem:[#allocation5 + $0x43c] sm:$0xf]  ;;  %v5229_v26 = vld [vmem:[#allocation5 + $0x2c0] sm:$0xf] }
  0xa3   :  { %2086 = vmatpush.bf16.msra.mxu0 %v5506_v53  ;;  %v7448_v53 = vld [vmem:[#allocation5 + $0x8e4] sm:$0xf0]  ;;  %v7394_v49 = vld [vmem:[#allocation5 + $0x73c] sm:$0xf] }
  0xa4   :  { %2100 = vmatpush.bf16.msra.mxu1 %v5890_v54  ;;  %v7250_v54 = vld [vmem:[#allocation5 + $0x2bc] sm:$0xf]  ;;  %v5990_v1 = vor.u32 %v7448_v53, %v5989_v52 }
  0xa5   :  { %2114 = vmatpush.bf16.msra.mxu2 %v5126_v55  ;;  %2128 = vmatpush.bf16.msra.mxu3 %v5510_v60  ;;  %v5266_v55 = vor.u32 %v7261_v41, %v5263_v42  ;;  %v5650_v60 = vor.u32 %v7357_v45, %v5647_v46  ;;  %v5466_v41 = vor.u32 %v7310_v35, %v5463_v36  ;;  %v5797_v42 = vld [vmem:[#allocation5 + $0x738] sm:$0xf]  ;;  %v5031_v46 = vld [vmem:[#allocation5 + $0x168] sm:$0xf0]  ;;  %v7251_v35 = vld [vmem:[#allocation5 + $0x2c4] sm:$0xf] }
  0xa6   :  { %v5850_v45 = vor.u32 %v7406_v37, %v5847_v38  ;;  %v5231_v36 = vld [vmem:[#allocation5 + $0x2f0] sm:$0xf0] }
  0xa7   :  { %2087 = vmatpush.bf16.msra.mxu0 %v5458_v2  ;;  %v5226_v2 = vor.u32 %v7250_v54, %v5223_v56  ;;  %v5749_v54 = vld [vmem:[#allocation5 + $0x6d8] sm:$0xf]  ;;  %v7190_v56 = vld [vmem:[#allocation5 + $0xdc] sm:$0xf] }
  0xa8   :  { %2101 = vmatpush.bf16.msra.mxu1 %v5842_v3  ;;  %v5610_v3 = vor.u32 %v7346_v58, %v5607_v59  ;;  %v5802_v58 = vor.u32 %v7394_v49, %v5799_v50  ;;  %v4983_v59 = vld [vmem:[#allocation5 + $0x108] sm:$0xf0]  ;;  %v5183_v49 = vld [vmem:[#allocation5 + $0x290] sm:$0xf0] }
  0xa9   :  { %2115 = vmatpush.bf16.msra.mxu2 %v5078_v4  ;;  %2129 = vmatpush.bf16.msra.mxu3 %v5462_v9  ;;  %v5941_v4 = vld [vmem:[#allocation5 + $0x858] sm:$0xf]  ;;  %v5175_v9 = vld [vmem:[#allocation5 + $0x288] sm:$0xf0] }
  0xaa   :  { %v5942_v14 = vor.u32 %v7436_v6, %v5941_v4  ;;  %v7376_v4 = vld [vmem:[#allocation5 + $0x6a4] sm:$0xf0]  ;;  %v7178_v6 = vld [vmem:[#allocation5 + $0x7c] sm:$0xf] }
  0xab   :  { %2088 = vmatpush.bf16.msra.mxu0 %v5410_v15  ;;  %v5178_v15 = vor.u32 %v7238_v7, %v5175_v9  ;;  %v5754_v7 = vor.u32 %v7382_v62, %v5751_v63  ;;  %v7274_v9 = vld [vmem:[#allocation5 + $0x37c] sm:$0xf]  ;;  %v5135_v62 = vld [vmem:[#allocation5 + $0x230] sm:$0xf0] }
  0xac   :  { %2102 = vmatpush.bf16.msra.mxu1 %v5794_v16  ;;  %v5562_v16 = vor.u32 %v7334_v10, %v5559_v11  ;;  %v5319_v10 = vld [vmem:[#allocation5 + $0x3a8] sm:$0xf0]  ;;  %v7370_v11 = vld [vmem:[#allocation5 + $0x67c] sm:$0xf] }
  0xad   :  { %2116 = vmatpush.bf16.msra.mxu2 %v5030_v17  ;;  %2130 = vmatpush.bf16.msra.mxu3 %v5414_v22  ;;  %v5893_v17 = vld [vmem:[#allocation5 + $0x7f8] sm:$0xf]  ;;  %v5127_v22 = vld [vmem:[#allocation5 + $0x228] sm:$0xf0] }
  0xae   :  { %v5894_v27 = vor.u32 %v7424_v18, %v5893_v17  ;;  %v5322_v17 = vor.u32 %v7274_v9, %v5319_v10  ;;  %v7166_v18 = vld [vmem:[#allocation5 + $0x1c] sm:$0xf]  ;;  %v7413_v9 = vld [vmem:[#allocation5 + $0x7cc] sm:$0xf0]  ;;  %v7215_v10 = vld [vmem:[#allocation5 + $0x1a4] sm:$0xf] }
  0xaf   :  { %2089 = vmatpush.bf16.msra.mxu0 %v5362_v28  ;;  %v5130_v28 = vor.u32 %v7226_v19, %v5127_v22  ;;  %v4887_v19 = vld [vmem:[#allocation5 + $0x48] sm:$0xf0]  ;;  %v5706_v22 = vor.u32 %v7370_v11, %v5703_v12  ;;  %v5087_v11 = vld [vmem:[#allocation5 + $0x1d0] sm:$0xf0] }
  0xb0   :  { %2103 = vmatpush.bf16.msra.mxu1 %v5746_v29  ;;  %v5514_v29 = vor.u32 %v7322_v23, %v5511_v24  ;;  %v5271_v23 = vld [vmem:[#allocation5 + $0x348] sm:$0xf0]  ;;  %v7358_v24 = vld [vmem:[#allocation5 + $0x61c] sm:$0xf] }
  0xb1   :  { %2117 = vmatpush.bf16.msra.mxu2 %v4982_v30  ;;  %2131 = vmatpush.bf16.msra.mxu3 %v5366_v34  ;;  %v5845_v30 = vld [vmem:[#allocation5 + $0x798] sm:$0xf]  ;;  %v5079_v34 = vld [vmem:[#allocation5 + $0x1c8] sm:$0xf0]  ;;  %v5658_v37 = vor.u32 %v7358_v24, %v5655_v25  ;;  %v5039_v24 = vld [vmem:[#allocation5 + $0x170] sm:$0xf0] }
  0xb2   :  { %v5846_v39 = vor.u32 %v7412_v31, %v5845_v30  ;;  %v7353_v30 = vld [vmem:[#allocation5 + $0x5ec] sm:$0xf0]  ;;  %v5997_v31 = vld [vmem:[#allocation5 + $0x8c0] sm:$0xf] }
  0xb3   :  { %2090 = vmatpush.bf16.msra.mxu0 %v5314_v40  ;;  %v5082_v40 = vor.u32 %v7214_v32, %v5079_v34  ;;  %v7449_v32 = vld [vmem:[#allocation5 + $0x8ec] sm:$0xf0] }
  0xb4   :  { %2104 = vmatpush.bf16.msra.mxu1 %v5698_v43  ;;  %v7400_v43 = vld [vmem:[#allocation5 + $0x764] sm:$0xf0] }
  0xb5   :  { %2118 = vmatpush.bf16.msra.mxu2 %v4934_v44  ;;  %2132 = vmatpush.bf16.msra.mxu3 %v5318_v48  ;;  %v7202_v44 = vld [vmem:[#allocation5 + $0x13c] sm:$0xf]  ;;  %v5415_v48 = vld [vmem:[#allocation5 + $0x468] sm:$0xf0]  ;;  %v5798_v51 = vor.u32 %v7400_v43, %v5797_v42  ;;  %v7245_v42 = vld [vmem:[#allocation5 + $0x28c] sm:$0xf0] }
  0xb6   :  { %v5034_v52 = vor.u32 %v7202_v44, %v5031_v46  ;;  %v5418_v53 = vor.u32 %v7298_v47, %v5415_v48  ;;  %v5565_v43 = vld [vmem:[#allocation5 + $0x560] sm:$0xf]  ;;  %v5234_v44 = vor.u32 %v7251_v35, %v5231_v36  ;;  %v7437_v47 = vld [vmem:[#allocation5 + $0x88c] sm:$0xf0]  ;;  %v7239_v48 = vld [vmem:[#allocation5 + $0x264] sm:$0xf] }
  0xb7   :  { %2091 = vmatpush.bf16.msra.mxu0 %v5266_v55  ;;  %v7388_v55 = vld [vmem:[#allocation5 + $0x704] sm:$0xf0]  ;;  %v5949_v46 = vld [vmem:[#allocation5 + $0x860] sm:$0xf]  ;;  %v7191_v35 = vld [vmem:[#allocation5 + $0xe4] sm:$0xf] }
  0xb8   :  { %2105 = vmatpush.bf16.msra.mxu1 %v5650_v60  ;;  %v7286_v60 = vld [vmem:[#allocation5 + $0x3dc] sm:$0xf]  ;;  %v4991_v36 = vld [vmem:[#allocation5 + $0x110] sm:$0xf0] }
  0xb9   :  { %2119 = vmatpush.bf16.msra.mxu2 %v4886_v61  ;;  %2133 = vmatpush.bf16.msra.mxu3 %v5270_v0  ;;  %v5367_v61 = vld [vmem:[#allocation5 + $0x408] sm:$0xf0]  ;;  %v5750_v0 = vor.u32 %v7388_v55, %v5749_v54  ;;  %v7233_v54 = vld [vmem:[#allocation5 + $0x22c] sm:$0xf0]  ;;  %v5517_v55 = vld [vmem:[#allocation5 + $0x500] sm:$0xf] }
  0xba   :  { %2092 = vmatmul.bf16.vlgmr.msra.gmra.mxu0 %v7966_v5 }
  0xbb   :  { %2140 = vmatpush.bf16.msrb.mxu0 %v5990_v1  ;;  %2106 = vmatmul.bf16.vlgmr.msra.gmra.mxu1 %v7970_v20  ;;  %v4986_v1 = vor.u32 %v7190_v56, %v4983_v59  ;;  %v5186_v56 = vor.u32 %v7239_v48, %v5183_v49  ;;  %v5901_v59 = vld [vmem:[#allocation5 + $0x800] sm:$0xf]  ;;  %v4943_v48 = vld [vmem:[#allocation5 + $0xb0] sm:$0xf0] }
  0xbc   :  { %2154 = vmatpush.bf16.msrb.mxu1 %v5226_v2  ;;  %2120 = vmatmul.bf16.vlgmr.msra.gmra.mxu2 %v7963_v57  ;;  %v5370_v2 = vor.u32 %v7286_v60, %v5367_v61  ;;  %v7425_v60 = vld [vmem:[#allocation5 + $0x82c] sm:$0xf0]  ;;  %v7227_v61 = vld [vmem:[#allocation5 + $0x204] sm:$0xf] }
  0xbd   :  { %2168 = vmatpush.bf16.msrb.mxu2 %v5610_v3  ;;  %2182 = vmatpush.bf16.msrb.mxu3 %v5994_v8  ;;  %v5701_v3 = vld [vmem:[#allocation5 + $0x678] sm:$0xf]  ;;  %v4935_v8 = vld [vmem:[#allocation5 + $0xa8] sm:$0xf0] }
  0xbe   :  { %2134 = vmatmul.bf16.vlgmr.msra.gmra.mxu3 %v7966_v5  ;;  %v5702_v13 = vor.u32 %v7376_v4, %v5701_v3  ;;  %v7221_v3 = vld [vmem:[#allocation5 + $0x1cc] sm:$0xf0]  ;;  %v5469_v4 = vld [vmem:[#allocation5 + $0x4a0] sm:$0xf] }
  0xbf   :  { %2141 = vmatpush.bf16.msrb.mxu0 %v5942_v14  ;;  %v5653_v14 = vld [vmem:[#allocation5 + $0x618] sm:$0xf] }
  0xc0   :  { %2155 = vmatpush.bf16.msrb.mxu1 %v5178_v15  ;;  %v7364_v15 = vld [vmem:[#allocation5 + $0x644] sm:$0xf0] }
  0xc1   :  { %2169 = vmatpush.bf16.msrb.mxu2 %v5562_v16  ;;  %2183 = vmatpush.bf16.msrb.mxu3 %v5946_v21  ;;  %v4938_v16 = vor.u32 %v7178_v6, %v4935_v8  ;;  %v7262_v21 = vld [vmem:[#allocation5 + $0x31c] sm:$0xf]  ;;  %v5138_v6 = vor.u32 %v7227_v61, %v5135_v62  ;;  %v5853_v8 = vld [vmem:[#allocation5 + $0x7a0] sm:$0xf]  ;;  %v4895_v61 = vld [vmem:[#allocation5 + $0x50] sm:$0xf0] }
  0xc2   :  { %v5274_v34 = vor.u32 %v7262_v21, %v5271_v23  ;;  %v5805_v21 = vld [vmem:[#allocation5 + $0x740] sm:$0xf]  ;;  %v7203_v23 = vld [vmem:[#allocation5 + $0x144] sm:$0xf] }
  0xc3   :  { %2142 = vmatpush.bf16.msrb.mxu0 %v5894_v27  ;;  %v7257_v27 = vld [vmem:[#allocation5 + $0x2ec] sm:$0xf0]  ;;  %v7347_v62 = vld [vmem:[#allocation5 + $0x5c4] sm:$0xf] }
  0xc4   :  { %2156 = vmatpush.bf16.msrb.mxu1 %v5130_v28  ;;  %v5613_v28 = vld [vmem:[#allocation5 + $0x5c0] sm:$0xf]  ;;  %v5230_v38 = vor.u32 %v7257_v27, %v5229_v26 }
  0xc5   :  { %2170 = vmatpush.bf16.msrb.mxu2 %v5514_v29  ;;  %2184 = vmatpush.bf16.msrb.mxu3 %v5898_v33  ;;  %v5654_v29 = vor.u32 %v7364_v15, %v5653_v14  ;;  %v4890_v33 = vor.u32 %v7166_v18, %v4887_v19  ;;  %v5854_v14 = vor.u32 %v7413_v9, %v5853_v8  ;;  %v5037_v15 = vld [vmem:[#allocation5 + $0x140] sm:$0xf]  ;;  %v7305_v19 = vld [vmem:[#allocation5 + $0x46c] sm:$0xf0]  ;;  %v5621_v8 = vld [vmem:[#allocation5 + $0x5c8] sm:$0xf] }
  0xc6   :  { %v5090_v18 = vor.u32 %v7215_v10, %v5087_v11  ;;  %v7354_v9 = vld [vmem:[#allocation5 + $0x5f4] sm:$0xf0] }
  0xc7   :  { %2143 = vmatpush.bf16.msrb.mxu0 %v5846_v39  ;;  %v5614_v39 = vor.u32 %v7353_v30, %v5613_v28  ;;  %v4989_v28 = vld [vmem:[#allocation5 + $0xe0] sm:$0xf] }
  0xc8   :  { %2157 = vmatpush.bf16.msrb.mxu1 %v5082_v40  ;;  %v5998_v40 = vor.u32 %v7449_v32, %v5997_v31  ;;  %v5373_v30 = vld [vmem:[#allocation5 + $0x3e0] sm:$0xf]  ;;  %v5042_v31 = vor.u32 %v7203_v23, %v5039_v24  ;;  %v7293_v32 = vld [vmem:[#allocation5 + $0x40c] sm:$0xf0]  ;;  %v7342_v23 = vld [vmem:[#allocation5 + $0x594] sm:$0xf0] }
  0xc9   :  { %2171 = vmatpush.bf16.msrb.mxu2 %v5466_v41  ;;  %2185 = vmatpush.bf16.msrb.mxu3 %v5850_v45  ;;  %v5181_v41 = vld [vmem:[#allocation5 + $0x260] sm:$0xf]  ;;  %v7341_v45 = vld [vmem:[#allocation5 + $0x58c] sm:$0xf0] }
  0xca   :  { %v5182_v50 = vor.u32 %v7245_v42, %v5181_v41  ;;  %v7185_v41 = vld [vmem:[#allocation5 + $0xac] sm:$0xf0]  ;;  %v5325_v42 = vld [vmem:[#allocation5 + $0x380] sm:$0xf] }
  0xcb   :  { %2144 = vmatpush.bf16.msrb.mxu0 %v5798_v51  ;;  %v5566_v51 = vor.u32 %v7341_v45, %v5565_v43  ;;  %v4994_v43 = vor.u32 %v7191_v35, %v4991_v36  ;;  %v5709_v45 = vld [vmem:[#allocation5 + $0x680] sm:$0xf]  ;;  %v7330_v35 = vld [vmem:[#allocation5 + $0x534] sm:$0xf0] }
  0xcc   :  { %2158 = vmatpush.bf16.msrb.mxu1 %v5034_v52  ;;  %v5950_v52 = vor.u32 %v7437_v47, %v5949_v46  ;;  %v7377_v46 = vld [vmem:[#allocation5 + $0x6ac] sm:$0xf0]  ;;  %v7179_v47 = vld [vmem:[#allocation5 + $0x84] sm:$0xf] }
  0xcd   :  { %2172 = vmatpush.bf16.msrb.mxu2 %v5418_v53  ;;  %2186 = vmatpush.bf16.msrb.mxu3 %v5802_v58  ;;  %v5133_v53 = vld [vmem:[#allocation5 + $0x200] sm:$0xf]  ;;  %v7329_v58 = vld [vmem:[#allocation5 + $0x52c] sm:$0xf0] }
  0xce   :  { %v5134_v63 = vor.u32 %v7233_v54, %v5133_v53  ;;  %v5710_v53 = vor.u32 %v7377_v46, %v5709_v45  ;;  %v5277_v54 = vld [vmem:[#allocation5 + $0x320] sm:$0xf]  ;;  %v5855_v45 = vld [vmem:[#allocation5 + $0x7d0] sm:$0xf0]  ;;  %v5093_v46 = vld [vmem:[#allocation5 + $0x1a8] sm:$0xf] }
  0xcf   :  { %2145 = vmatpush.bf16.msrb.mxu0 %v5750_v0  ;;  %v5518_v0 = vor.u32 %v7329_v58, %v5517_v55  ;;  %v7269_v55 = vld [vmem:[#allocation5 + $0x34c] sm:$0xf0]  ;;  %v4946_v58 = vor.u32 %v7179_v47, %v4943_v48  ;;  %v7222_v47 = vld [vmem:[#allocation5 + $0x1d4] sm:$0xf0]  ;;  %v5477_v48 = vld [vmem:[#allocation5 + $0x4a8] sm:$0xf] }
  0xd0   :  { %2159 = vmatpush.bf16.msrb.mxu1 %v4986_v1  ;;  %v5902_v1 = vor.u32 %v7425_v60, %v5901_v59  ;;  %v7365_v59 = vld [vmem:[#allocation5 + $0x64c] sm:$0xf0]  ;;  %v7167_v60 = vld [vmem:[#allocation5 + $0x24] sm:$0xf] }
  0xd1   :  { %2173 = vmatpush.bf16.msrb.mxu2 %v5370_v2  ;;  %2187 = vmatpush.bf16.msrb.mxu3 %v5754_v7  ;;  %v5085_v2 = vld [vmem:[#allocation5 + $0x1a0] sm:$0xf]  ;;  %v7317_v7 = vld [vmem:[#allocation5 + $0x4cc] sm:$0xf0]  ;;  %v4898_v10 = vor.u32 %v7167_v60, %v4895_v61  ;;  %v7210_v60 = vld [vmem:[#allocation5 + $0x174] sm:$0xf0] }
  0xd2   :  { %v5086_v12 = vor.u32 %v7221_v3, %v5085_v2  ;;  %v5999_v2 = vld [vmem:[#allocation5 + $0x8f0] sm:$0xf0]  ;;  %v5237_v3 = vld [vmem:[#allocation5 + $0x2c8] sm:$0xf] }
  0xd3   :  { %2146 = vmatpush.bf16.msrb.mxu0 %v5702_v13  ;;  %v5470_v13 = vor.u32 %v7317_v7, %v5469_v4  ;;  %v7258_v4 = vld [vmem:[#allocation5 + $0x2f4] sm:$0xf0]  ;;  %v5429_v61 = vld [vmem:[#allocation5 + $0x448] sm:$0xf] }
  0xd4   :  { %2160 = vmatpush.bf16.msrb.mxu1 %v4938_v16  ;;  %v7209_v16 = vld [vmem:[#allocation5 + $0x16c] sm:$0xf0] }
  0xd5   :  { %2174 = vmatpush.bf16.msrb.mxu2 %v5322_v17  ;;  %2188 = vmatpush.bf16.msrb.mxu3 %v5706_v22  ;;  %v5421_v17 = vld [vmem:[#allocation5 + $0x440] sm:$0xf]  ;;  %v7401_v22 = vld [vmem:[#allocation5 + $0x76c] sm:$0xf0]  ;;  %v5038_v25 = vor.u32 %v7209_v16, %v5037_v15  ;;  %v5567_v15 = vld [vmem:[#allocation5 + $0x590] sm:$0xf0] }
  0xd6   :  { %v5422_v26 = vor.u32 %v7305_v19, %v5421_v17  ;;  %v5806_v27 = vor.u32 %v7401_v22, %v5805_v21  ;;  %v7431_v16 = vld [vmem:[#allocation5 + $0x864] sm:$0xf]  ;;  %v5622_v17 = vor.u32 %v7354_v9, %v5621_v8  ;;  %v5189_v19 = vld [vmem:[#allocation5 + $0x268] sm:$0xf]  ;;  %v7246_v21 = vld [vmem:[#allocation5 + $0x294] sm:$0xf0] }
  0xd7   :  { %2147 = vmatpush.bf16.msrb.mxu0 %v5654_v29  ;;  %v7197_v29 = vld [vmem:[#allocation5 + $0x10c] sm:$0xf0]  ;;  %v5573_v22 = vld [vmem:[#allocation5 + $0x568] sm:$0xf]  ;;  %v5759_v9 = vld [vmem:[#allocation5 + $0x710] sm:$0xf0] }
  0xd8   :  { %2161 = vmatpush.bf16.msrb.mxu1 %v4890_v33  ;;  %v5757_v33 = vld [vmem:[#allocation5 + $0x6e0] sm:$0xf] }
  0xd9   :  { %2175 = vmatpush.bf16.msrb.mxu2 %v5274_v34  ;;  %2189 = vmatpush.bf16.msrb.mxu3 %v5658_v37  ;;  %v7389_v34 = vld [vmem:[#allocation5 + $0x70c] sm:$0xf0]  ;;  %v4990_v37 = vor.u32 %v7197_v29, %v4989_v28  ;;  %v5519_v28 = vld [vmem:[#allocation5 + $0x530] sm:$0xf0]  ;;  %v7419_v29 = vld [vmem:[#allocation5 + $0x804] sm:$0xf] }
  0xda   :  { %2148 = vmatmul.bf16.vlgmr.msrb.gmra.mxu0 %v7970_v20 }
  0xdb   :  { %2196 = vmatpush.bf16.msra.mxu0 %v5230_v38  ;;  %2162 = vmatmul.bf16.vlgmr.msrb.gmra.mxu1 %v7963_v57  ;;  %v5374_v38 = vor.u32 %v7293_v32, %v5373_v30  ;;  %v5574_v30 = vor.u32 %v7342_v23, %v5573_v22  ;;  %v5141_v32 = vld [vmem:[#allocation5 + $0x208] sm:$0xf]  ;;  %v7371_v22 = vld [vmem:[#allocation5 + $0x684] sm:$0xf] }
  0xdc   :  { %2210 = vmatpush.bf16.msra.mxu1 %v5614_v39  ;;  %2176 = vmatmul.bf16.vlgmr.msrb.gmra.mxu2 %v7966_v5  ;;  %v5758_v39 = vor.u32 %v7389_v34, %v5757_v33  ;;  %v7234_v33 = vld [vmem:[#allocation5 + $0x234] sm:$0xf0]  ;;  %v5525_v34 = vld [vmem:[#allocation5 + $0x508] sm:$0xf] }
  0xdd   :  { %2224 = vmatpush.bf16.msra.mxu2 %v5998_v40  ;;  %2238 = vmatpush.bf16.msra.mxu3 %v5234_v44  ;;  %v4941_v40 = vld [vmem:[#allocation5 + $0x80] sm:$0xf]  ;;  %v7281_v44 = vld [vmem:[#allocation5 + $0x3ac] sm:$0xf0] }
  0xde   :  { %2190 = vmatmul.bf16.vlgmr.msrb.gmra.mxu3 %v7970_v20  ;;  %v4942_v49 = vor.u32 %v7185_v41, %v4941_v40  ;;  %v5142_v40 = vor.u32 %v7234_v33, %v5141_v32  ;;  %v7311_v41 = vld [vmem:[#allocation5 + $0x4a4] sm:$0xf] }
  0xdf   :  { %2197 = vmatpush.bf16.msra.mxu0 %v5182_v50  ;;  %v4893_v50 = vld [vmem:[#allocation5 + $0x20] sm:$0xf] }
  0xe0   :  { %2211 = vmatpush.bf16.msra.mxu1 %v5566_v51  ;;  %v7173_v51 = vld [vmem:[#allocation5 + $0x4c] sm:$0xf0] }
  0xe1   :  { %2225 = vmatpush.bf16.msra.mxu2 %v5950_v52  ;;  %2239 = vmatpush.bf16.msra.mxu3 %v5186_v56  ;;  %v5326_v52 = vor.u32 %v7281_v44, %v5325_v42  ;;  %v5661_v56 = vld [vmem:[#allocation5 + $0x620] sm:$0xf]  ;;  %v5471_v42 = vld [vmem:[#allocation5 + $0x4d0] sm:$0xf0]  ;;  %v5526_v44 = vor.u32 %v7330_v35, %v5525_v34  ;;  %v7359_v34 = vld [vmem:[#allocation5 + $0x624] sm:$0xf] }
  0xe2   :  { %v5662_v7 = vor.u32 %v7365_v59, %v5661_v56  ;;  %v5045_v59 = vld [vmem:[#allocation5 + $0x148] sm:$0xf]  ;;  %v5663_v35 = vld [vmem:[#allocation5 + $0x650] sm:$0xf0] }
  0xe3   :  { %2198 = vmatpush.bf16.msra.mxu0 %v5134_v63  ;;  %v5615_v63 = vld [vmem:[#allocation5 + $0x5f0] sm:$0xf0] }
  0xe4   :  { %2212 = vmatpush.bf16.msra.mxu1 %v5518_v0  ;;  %v7443_v0 = vld [vmem:[#allocation5 + $0x8c4] sm:$0xf]  ;;  %v5618_v11 = vor.u32 %v7347_v62, %v5615_v63  ;;  %v7306_v62 = vld [vmem:[#allocation5 + $0x474] sm:$0xf0]  ;;  %v8001_v63 = vpop.f32.mrf.mxu2 }
  0xe5   :  { %2226 = vmatpush.bf16.msra.mxu2 %v5902_v1  ;;  %2240 = vmatpush.bf16.msra.mxu3 %v5138_v6  ;;  %v4894_v1 = vor.u32 %v7173_v51, %v4893_v50  ;;  %v5278_v6 = vor.u32 %v7269_v55, %v5277_v54  ;;  %v5474_v50 = vor.u32 %v7311_v41, %v5471_v42  ;;  %v5423_v54 = vld [vmem:[#allocation5 + $0x470] sm:$0xf0]  ;;  %v7395_v55 = vld [vmem:[#allocation5 + $0x744] sm:$0xf]  ;;  %v7174_v42 = vld [vmem:[#allocation5 + $0x54] sm:$0xf0] }
  0xe6   :  { %v5430_v8 = vor.u32 %v7306_v62, %v5429_v61 }
  0xe7   :  { %2199 = vmatpush.bf16.msra.mxu0 %v5086_v12  ;;  %v6002_v12 = vor.u32 %v7443_v0, %v5999_v2  ;;  %v8003_v0 = vpop.f32.mrf.mxu3 }
  0xe8   :  { %2213 = vmatpush.bf16.msra.mxu1 %v5470_v13  ;;  %v5238_v13 = vor.u32 %v7258_v4, %v5237_v3  ;;  %v5046_v3 = vor.u32 %v7210_v60, %v5045_v59  ;;  %v7287_v4 = vld [vmem:[#allocation5 + $0x3e4] sm:$0xf] }
  0xe9   :  { %2227 = vmatpush.bf16.msra.mxu2 %v5854_v14  ;;  %2241 = vmatpush.bf16.msra.mxu3 %v5090_v18  ;;  %v7335_v14 = vld [vmem:[#allocation5 + $0x564] sm:$0xf]  ;;  %v5951_v18 = vld [vmem:[#allocation5 + $0x890] sm:$0xf0] }
  0xea   :  { %v5570_v24 = vor.u32 %v7335_v14, %v5567_v15  ;;  %v5381_v14 = vld [vmem:[#allocation5 + $0x3e8] sm:$0xf]  ;;  %v7294_v15 = vld [vmem:[#allocation5 + $0x414] sm:$0xf0] }
  0xeb   :  { %2200 = vmatpush.bf16.msra.mxu0 %v5038_v25  ;;  %v5954_v25 = vor.u32 %v7431_v16, %v5951_v18  ;;  %v5382_v23 = vor.u32 %v7294_v15, %v5381_v14 }
  0xec   :  { %2214 = vmatpush.bf16.msra.mxu1 %v5422_v26  ;;  %v5190_v26 = vor.u32 %v7246_v21, %v5189_v19  ;;  %v7275_v19 = vld [vmem:[#allocation5 + $0x384] sm:$0xf]  ;;  %v5327_v21 = vld [vmem:[#allocation5 + $0x3b0] sm:$0xf0] }
  0xed   :  { %2228 = vmatpush.bf16.msra.mxu2 %v5806_v27  ;;  %2242 = vmatpush.bf16.msra.mxu3 %v5042_v31  ;;  %v7323_v27 = vld [vmem:[#allocation5 + $0x504] sm:$0xf]  ;;  %v5903_v31 = vld [vmem:[#allocation5 + $0x830] sm:$0xf0] }
  0xee   :  { %v5522_v36 = vor.u32 %v7323_v27, %v5519_v28  ;;  %v5333_v27 = vld [vmem:[#allocation5 + $0x388] sm:$0xf]  ;;  %v7282_v28 = vld [vmem:[#allocation5 + $0x3b4] sm:$0xf0] }
  0xef   :  { %2201 = vmatpush.bf16.msra.mxu0 %v4990_v37  ;;  %v7997_v37 = vpop.f32.mrf.mxu0  ;;  %v5334_v41 = vor.u32 %v7282_v28, %v5333_v27  ;;  %v5911_v27 = vld [vmem:[#allocation5 + $0x838] sm:$0xf0] }
  0xf0   :  { %2215 = vmatpush.bf16.msra.mxu1 %v5374_v38  ;;  %v7999_v38 = vpop.f32.mrf.mxu1 }
  0xf1   :  { %2229 = vmatpush.bf16.msra.mxu2 %v5758_v39  ;;  %2243 = vmatpush.bf16.msra.mxu3 %v4994_v43  ;;  %v5906_v39 = vor.u32 %v7419_v29, %v5903_v31  ;;  %v7407_v43 = vld [vmem:[#allocation5 + $0x7a4] sm:$0xf]  ;;  %v5330_v29 = vor.u32 %v7275_v19, %v5327_v21  ;;  %v5279_v31 = vld [vmem:[#allocation5 + $0x350] sm:$0xf0]  ;;  %v7426_v19 = vld [vmem:[#allocation5 + $0x834] sm:$0xf0] }
  0xf2   :  { %v5858_v51 = vor.u32 %v7407_v43, %v5855_v45  ;;  %v5285_v43 = vld [vmem:[#allocation5 + $0x328] sm:$0xf]  ;;  %v7228_v21 = vld [vmem:[#allocation5 + $0x20c] sm:$0xf] }
  0xf3   :  { %2202 = vmatpush.bf16.msra.mxu0 %v4942_v49  ;;  %v7318_v49 = vld [vmem:[#allocation5 + $0x4d4] sm:$0xf0]  ;;  %v6005_v45 = vld [vmem:[#allocation5 + $0x8c8] sm:$0xf] }
  0xf4   :  { %2216 = vmatpush.bf16.msra.mxu1 %v5326_v52  ;;  %v5094_v52 = vor.u32 %v7222_v47, %v5093_v46  ;;  %v5478_v56 = vor.u32 %v7318_v49, %v5477_v48  ;;  %v7450_v46 = vld [vmem:[#allocation5 + $0x8f4] sm:$0xf0]  ;;  %v7252_v47 = vld [vmem:[#allocation5 + $0x2cc] sm:$0xf]  ;;  %v5239_v49 = vld [vmem:[#allocation5 + $0x2f8] sm:$0xf0] }
  0xf5   :  { %2230 = vmatpush.bf16.msra.mxu2 %v5710_v53  ;;  %2244 = vmatpush.bf16.msra.mxu3 %v4946_v58  ;;  %v7299_v53 = vld [vmem:[#allocation5 + $0x444] sm:$0xf]  ;;  %v5807_v58 = vld [vmem:[#allocation5 + $0x770] sm:$0xf0]  ;;  %v6006_v60 = vor.u32 %v7450_v46, %v6005_v45  ;;  %v5242_v61 = vor.u32 %v7252_v47, %v5239_v49  ;;  %v5863_v45 = vld [vmem:[#allocation5 + $0x7d8] sm:$0xf0] }
  0xf6   :  { %v5810_v2 = vor.u32 %v7395_v55, %v5807_v58  ;;  %v6007_v58 = vld [vmem:[#allocation5 + $0x8f8] sm:$0xf0]  ;;  %v5813_v49 = vld [vmem:[#allocation5 + $0x748] sm:$0xf] }
  0xf7   :  { %2203 = vmatpush.bf16.msra.mxu0 %v4894_v1  ;;  %v5426_v1 = vor.u32 %v7299_v53, %v5423_v54  ;;  %v5666_v54 = vor.u32 %v7359_v34, %v5663_v35  ;;  %v7414_v34 = vld [vmem:[#allocation5 + $0x7d4] sm:$0xf0]  ;;  %v7216_v35 = vld [vmem:[#allocation5 + $0x1ac] sm:$0xf] }
  0xf8   :  { %2217 = vmatpush.bf16.msra.mxu1 %v5278_v6  ;;  %v5375_v6 = vld [vmem:[#allocation5 + $0x410] sm:$0xf0] }
  0xf9   :  { %2231 = vmatpush.bf16.msra.mxu2 %v5662_v7  ;;  %2245 = vmatpush.bf16.msra.mxu3 %v4898_v10  ;;  %v7383_v7 = vld [vmem:[#allocation5 + $0x6e4] sm:$0xf]  ;;  %v4997_v10 = vld [vmem:[#allocation5 + $0xe8] sm:$0xf]  ;;  %v5378_v16 = vor.u32 %v7287_v4, %v5375_v6  ;;  %v5191_v6 = vld [vmem:[#allocation5 + $0x298] sm:$0xf0] }
  0xfa   :  { %2204 = vmatmul.bf16.vlgmr.msra.gmra.mxu0 %v7963_v57 }
  0xfb   :  { %2252 = vmatpush.bf16.msrb.mxu0 %v5618_v11  ;;  %2218 = vmatmul.bf16.vlgmr.msra.gmra.mxu1 %v7966_v5  ;;  %v7198_v11 = vld [vmem:[#allocation5 + $0x114] sm:$0xf0] }
  0xfc   :  { %2266 = vmatpush.bf16.msrb.mxu1 %v6002_v12  ;;  %2232 = vmatmul.bf16.vlgmr.msra.gmra.mxu2 %v7970_v20  ;;  %v8005_v12 = vpop.f32.mrf.mxu0  ;;  %v4998_v18 = vor.u32 %v7198_v11, %v4997_v10  ;;  %v5959_v10 = vld [vmem:[#allocation5 + $0x898] sm:$0xf0] }
  0xfd   :  { %2280 = vmatpush.bf16.msrb.mxu2 %v5238_v13  ;;  %2294 = vmatpush.bf16.msrb.mxu3 %v5622_v17  ;;  %v8007_v13 = vpop.f32.mrf.mxu1  ;;  %v5762_v17 = vor.u32 %v7383_v7, %v5759_v9  ;;  %v7336_v7 = vld [vmem:[#allocation5 + $0x56c] sm:$0xf] }
  0xfe   :  { %2246 = vmatmul.bf16.vlgmr.msra.gmra.mxu3 %v7963_v57  ;;  %v7432_v9 = vld [vmem:[#allocation5 + $0x86c] sm:$0xf] }
  0xff   :  { %2253 = vmatpush.bf16.msrb.mxu0 %v5570_v24  ;;  %v5711_v24 = vld [vmem:[#allocation5 + $0x6b0] sm:$0xf0] }
 0x100   :  { %2267 = vmatpush.bf16.msrb.mxu1 %v5954_v25  ;;  %v4949_v25 = vld [vmem:[#allocation5 + $0x88] sm:$0xf]  ;;  %v5714_v32 = vor.u32 %v7371_v22, %v5711_v24  ;;  %v5962_v22 = vor.u32 %v7432_v9, %v5959_v10  ;;  %v7324_v24 = vld [vmem:[#allocation5 + $0x50c] sm:$0xf] }
 0x101   :  { %2281 = vmatpush.bf16.msrb.mxu2 %v5190_v26  ;;  %2295 = vmatpush.bf16.msrb.mxu3 %v5574_v30  ;;  %v7186_v26 = vld [vmem:[#allocation5 + $0xb4] sm:$0xf0]  ;;  %v7263_v30 = vld [vmem:[#allocation5 + $0x324] sm:$0xf]  ;;  %v7192_v9 = vld [vmem:[#allocation5 + $0xec] sm:$0xf] }
 0x102   :  { %v4950_v33 = vor.u32 %v7186_v26, %v4949_v25  ;;  %v5282_v48 = vor.u32 %v7263_v30, %v5279_v31  ;;  %v5527_v25 = vld [vmem:[#allocation5 + $0x538] sm:$0xf0]  ;;  %v7420_v26 = vld [vmem:[#allocation5 + $0x80c] sm:$0xf] }
 0x103   :  { %2254 = vmatpush.bf16.msrb.mxu0 %v5522_v36  ;;  %v4901_v36 = vld [vmem:[#allocation5 + $0x28] sm:$0xf] }
 0x104   :  { %2268 = vmatpush.bf16.msrb.mxu1 %v5906_v39  ;;  %v8009_v39 = vpop.f32.mrf.mxu2  ;;  %v4902_v55 = vor.u32 %v7174_v42, %v4901_v36  ;;  %v5914_v36 = vor.u32 %v7420_v26, %v5911_v27  ;;  %v7312_v42 = vld [vmem:[#allocation5 + $0x4ac] sm:$0xf] }
 0x105   :  { %2282 = vmatpush.bf16.msrb.mxu2 %v5142_v40  ;;  %2296 = vmatpush.bf16.msrb.mxu3 %v5526_v44  ;;  %v8011_v40 = vpop.f32.mrf.mxu3  ;;  %v7270_v44 = vld [vmem:[#allocation5 + $0x354] sm:$0xf0]  ;;  %v8015_v53 = vpop.f32.mrf.mxu1  ;;  %v7180_v26 = vld [vmem:[#allocation5 + $0x8c] sm:$0xf] }
 0x106   :  { %v5286_v59 = vor.u32 %v7270_v44, %v5285_v43  ;;  %v5479_v43 = vld [vmem:[#allocation5 + $0x4d8] sm:$0xf0]  ;;  %v7408_v44 = vld [vmem:[#allocation5 + $0x7ac] sm:$0xf] }
 0x107   :  { %2255 = vmatpush.bf16.msrb.mxu0 %v5474_v50  ;;  %v7348_v50 = vld [vmem:[#allocation5 + $0x5cc] sm:$0xf] }
 0x108   :  { %2269 = vmatpush.bf16.msrb.mxu1 %v5858_v51  ;;  %v5623_v51 = vld [vmem:[#allocation5 + $0x5f8] sm:$0xf0] }
 0x109   :  { %2283 = vmatpush.bf16.msrb.mxu2 %v5094_v52  ;;  %2297 = vmatpush.bf16.msrb.mxu3 %v5478_v56  ;;  %v8013_v52 = vpop.f32.mrf.mxu0  ;;  %v7444_v56 = vld [vmem:[#allocation5 + $0x8cc] sm:$0xf]  ;;  %v5626_v62 = vor.u32 %v7348_v50, %v5623_v51  ;;  %v7402_v50 = vld [vmem:[#allocation5 + $0x774] sm:$0xf0] }
 0x10a   :  { %v6010_v4 = vor.u32 %v7444_v56, %v6007_v58  ;;  %v7204_v51 = vld [vmem:[#allocation5 + $0x14c] sm:$0xf]  ;;  %v5866_v56 = vor.u32 %v7408_v44, %v5863_v45  ;;  %v5047_v58 = vld [vmem:[#allocation5 + $0x178] sm:$0xf0] }
 0x10b   :  { %2256 = vmatpush.bf16.msrb.mxu0 %v5426_v1  ;;  %v5957_v1 = vld [vmem:[#allocation5 + $0x868] sm:$0xf] }
 0x10c   :  { %2270 = vmatpush.bf16.msrb.mxu1 %v5810_v2  ;;  %v7438_v2 = vld [vmem:[#allocation5 + $0x894] sm:$0xf0]  ;;  %v8017_v11 = vpop.f32.mrf.mxu2 }
 0x10d   :  { %2284 = vmatpush.bf16.msrb.mxu2 %v5046_v3  ;;  %2298 = vmatpush.bf16.msrb.mxu3 %v5430_v8  ;;  %v7240_v3 = vld [vmem:[#allocation5 + $0x26c] sm:$0xf]  ;;  %v5575_v8 = vld [vmem:[#allocation5 + $0x598] sm:$0xf0]  ;;  %v8019_v14 = vpop.f32.mrf.mxu3  ;;  %v5958_v15 = vor.u32 %v7438_v2, %v5957_v1  ;;  %v8027_v30 = vpop.f32.mrf.mxu1  ;;  %v5814_v1 = vor.u32 %v7402_v50, %v5813_v49 }
 0x10e   :  { %v5287_v50 = vld [vmem:[#allocation5 + $0x358] sm:$0xf0] }
 0x10f   :  { %2257 = vmatpush.bf16.msrb.mxu0 %v5378_v16  ;;  %v5194_v16 = vor.u32 %v7240_v3, %v5191_v6 }
 0x110   :  { %2271 = vmatpush.bf16.msrb.mxu1 %v5762_v17  ;;  %v5578_v17 = vor.u32 %v7336_v7, %v5575_v8  ;;  %v5765_v7 = vld [vmem:[#allocation5 + $0x6e8] sm:$0xf]  ;;  %v7390_v8 = vld [vmem:[#allocation5 + $0x714] sm:$0xf0] }
 0x111   :  { %2285 = vmatpush.bf16.msrb.mxu2 %v4998_v18  ;;  %2299 = vmatpush.bf16.msrb.mxu3 %v5382_v23  ;;  %v5909_v18 = vld [vmem:[#allocation5 + $0x808] sm:$0xf]  ;;  %v5143_v23 = vld [vmem:[#allocation5 + $0x238] sm:$0xf0] }
 0x112   :  { %v5910_v28 = vor.u32 %v7426_v19, %v5909_v18  ;;  %v5146_v31 = vor.u32 %v7228_v21, %v5143_v23  ;;  %v7384_v18 = vld [vmem:[#allocation5 + $0x6ec] sm:$0xf]  ;;  %v5767_v19 = vld [vmem:[#allocation5 + $0x718] sm:$0xf0]  ;;  %v5766_v21 = vor.u32 %v7390_v8, %v5765_v7  ;;  %v7521_v7 = vld [vmem:[#allocation8 + $0x230] sm:$0xf0] }
 0x113   :  { %2258 = vmatpush.bf16.msrb.mxu0 %v5330_v29  ;;  %v8025_v29 = vpop.f32.mrf.mxu0 }
 0x114   :  { %2272 = vmatpush.bf16.msrb.mxu1 %v5714_v32  ;;  %v5530_v32 = vor.u32 %v7324_v24, %v5527_v25  ;;  %v5717_v24 = vld [vmem:[#allocation5 + $0x688] sm:$0xf]  ;;  %v7378_v25 = vld [vmem:[#allocation5 + $0x6b4] sm:$0xf0] }
 0x115   :  { %2286 = vmatpush.bf16.msrb.mxu2 %v4950_v33  ;;  %2300 = vmatpush.bf16.msrb.mxu3 %v5334_v41  ;;  %v5861_v33 = vld [vmem:[#allocation5 + $0x7a8] sm:$0xf]  ;;  %v5095_v41 = vld [vmem:[#allocation5 + $0x1d8] sm:$0xf0]  ;;  %v8035_v3 = vpop.f32.mrf.mxu1 }
 0x116   :  { %v5862_v46 = vor.u32 %v7414_v34, %v5861_v33  ;;  %v5098_v47 = vor.u32 %v7216_v35, %v5095_v41  ;;  %v7276_v33 = vld [vmem:[#allocation5 + $0x38c] sm:$0xf]  ;;  %v5335_v34 = vld [vmem:[#allocation5 + $0x3b8] sm:$0xf0]  ;;  %v5718_v41 = vor.u32 %v7378_v25, %v5717_v24 }
 0x117   :  { %2259 = vmatpush.bf16.msrb.mxu0 %v5282_v48  ;;  %v5482_v48 = vor.u32 %v7312_v42, %v5479_v43  ;;  %v7372_v35 = vld [vmem:[#allocation5 + $0x68c] sm:$0xf]  ;;  %v5669_v42 = vld [vmem:[#allocation5 + $0x628] sm:$0xf]  ;;  %v7366_v43 = vld [vmem:[#allocation5 + $0x654] sm:$0xf0]  ;;  %v5338_v45 = vor.u32 %v7276_v33, %v5335_v34 }
 0x118   :  { %2273 = vmatpush.bf16.msrb.mxu1 %v5666_v54  ;;  %v8029_v54 = vpop.f32.mrf.mxu2  ;;  %v7518_v33 = vld [vmem:[#allocation8 + $0x218] sm:$0xf0]  ;;  %v6373_v34 = vld [vmem:[#allocation8 + $0x2d0] sm:$0xf] }
 0x119   :  { %2287 = vmatpush.bf16.msrb.mxu2 %v4902_v55  ;;  %2301 = vmatpush.bf16.msrb.mxu3 %v5286_v59  ;;  %v8031_v55 = vpop.f32.mrf.mxu3  ;;  %v7300_v59 = vld [vmem:[#allocation5 + $0x44c] sm:$0xf] }
 0x11a   :  { %2260 = vmatmul.bf16.vlgmr.msrb.gmra.mxu0 %v7966_v5 }
 0x11b   :  { %2308 = vmatpush.bf16.msra.mxu0 %v6006_v60  ;;  %2274 = vmatmul.bf16.vlgmr.msrb.gmra.mxu1 %v7970_v20  ;;  %v5431_v60 = vld [vmem:[#allocation5 + $0x478] sm:$0xf0]  ;;  %v8033_v2 = vpop.f32.mrf.mxu0 }
 0x11c   :  { %2322 = vmatpush.bf16.msra.mxu1 %v5242_v61  ;;  %2288 = vmatmul.bf16.vlgmr.msrb.gmra.mxu2 %v7963_v57  ;;  %v7396_v61 = vld [vmem:[#allocation5 + $0x74c] sm:$0xf]  ;;  %v5434_v6 = vor.u32 %v7300_v59, %v5431_v60  ;;  %v6097_v60 = vld [vmem:[#allocation8 + $0xa8] sm:$0xf] }
 0x11d   :  { %2336 = vmatpush.bf16.msra.mxu2 %v5626_v62  ;;  %2350 = vmatpush.bf16.msra.mxu3 %v6010_v4  ;;  %v5815_v62 = vld [vmem:[#allocation5 + $0x778] sm:$0xf0]  ;;  %v5050_v4 = vor.u32 %v7204_v51, %v5047_v58  ;;  %v7360_v51 = vld [vmem:[#allocation5 + $0x62c] sm:$0xf]  ;;  %v8043_v59 = vpop.f32.mrf.mxu1 }
 0x11e   :  { %2302 = vmatmul.bf16.vlgmr.msrb.gmra.mxu3 %v7966_v5  ;;  %v5818_v10 = vor.u32 %v7396_v61, %v5815_v62  ;;  %v7473_v61 = vld [vmem:[#allocation8 + $0xb0] sm:$0xf0]  ;;  %v6193_v62 = vld [vmem:[#allocation8 + $0x168] sm:$0xf] }
 0x11f   :  { %2309 = vmatpush.bf16.msra.mxu0 %v5958_v15  ;;  %v4999_v15 = vld [vmem:[#allocation5 + $0x118] sm:$0xf0] }
 0x120   :  { %2323 = vmatpush.bf16.msra.mxu1 %v5194_v16  ;;  %v7288_v16 = vld [vmem:[#allocation5 + $0x3ec] sm:$0xf]  ;;  %v8037_v27 = vpop.f32.mrf.mxu2 }
 0x121   :  { %2337 = vmatpush.bf16.msra.mxu2 %v5578_v17  ;;  %2351 = vmatpush.bf16.msra.mxu3 %v5962_v22  ;;  %v5383_v17 = vld [vmem:[#allocation5 + $0x418] sm:$0xf0]  ;;  %v5002_v22 = vor.u32 %v7192_v9, %v4999_v15  ;;  %v7545_v15 = vld [vmem:[#allocation8 + $0x2f0] sm:$0xf0] }
 0x122   :  { %v5386_v23 = vor.u32 %v7288_v16, %v5383_v17  ;;  %v6098_v17 = vor.u32 %v7473_v61, %v6097_v60 }
 0x123   :  { %2310 = vmatpush.bf16.msra.mxu0 %v5910_v28  ;;  %v8039_v28 = vpop.f32.mrf.mxu3  ;;  %v8041_v58 = vpop.f32.mrf.mxu0 }
 0x124   :  { %2324 = vmatpush.bf16.msra.mxu1 %v5146_v31  ;;  %v5770_v31 = vor.u32 %v7384_v18, %v5767_v19 }
 0x125   :  { %2338 = vmatpush.bf16.msra.mxu2 %v5530_v32  ;;  %2352 = vmatpush.bf16.msra.mxu3 %v5914_v36  ;;  %v4951_v32 = vld [vmem:[#allocation5 + $0xb8] sm:$0xf0] }
 0x126   :  { %v5719_v36 = vld [vmem:[#allocation5 + $0x6b8] sm:$0xf0]  ;;  %v4954_v44 = vor.u32 %v7180_v26, %v4951_v32 }
 0x127   :  { %2311 = vmatpush.bf16.msra.mxu0 %v5862_v46  ;;  %v7168_v46 = vld [vmem:[#allocation5 + $0x2c] sm:$0xf]  ;;  %v5722_v49 = vor.u32 %v7372_v35, %v5719_v36  ;;  %v6277_v32 = vld [vmem:[#allocation8 + $0x210] sm:$0xf]  ;;  %v7542_v35 = vld [vmem:[#allocation8 + $0x2d8] sm:$0xf0] }
 0x128   :  { %2325 = vmatpush.bf16.msra.mxu1 %v5098_v47  ;;  %v4903_v47 = vld [vmem:[#allocation5 + $0x58] sm:$0xf0]  ;;  %v8045_v24 = vpop.f32.mrf.mxu2  ;;  %v8049_v36 = vld [vmem:[#allocation7] sm:$0xff] }
 0x129   :  { %2339 = vmatpush.bf16.msra.mxu2 %v5482_v48  ;;  %2353 = vmatpush.bf16.msra.mxu3 %v5866_v56  ;;  %v7264_v48 = vld [vmem:[#allocation5 + $0x32c] sm:$0xf]  ;;  %v5671_v56 = vld [vmem:[#allocation5 + $0x658] sm:$0xf0]  ;;  %v4906_v8 = vor.u32 %v7168_v46, %v4903_v47  ;;  %v6073_v46 = vld [vmem:[#allocation8 + $0x78] sm:$0xf] }
 0x12a   :  { %v5290_v9 = vor.u32 %v7264_v48, %v5287_v50  ;;  %v5674_v16 = vor.u32 %v7360_v51, %v5671_v56  ;;  %v7467_v47 = vld [vmem:[#allocation8 + $0x80] sm:$0xf0]  ;;  %v6169_v48 = vld [vmem:[#allocation8 + $0x138] sm:$0xf]  ;;  %v396_v60 = vperm.slane %v8049_v36, 0  ;;  %v397_v61 = vperm.slane %v8049_v36, 1 }
 0x12b   :  { %2312 = vmatpush.bf16.msra.mxu0 %v5814_v1  ;;  %v5670_v1 = vor.u32 %v7366_v43, %v5669_v42  ;;  %v8047_v25 = vpop.f32.mrf.mxu3  ;;  %v8051_v42 = vpop.f32.mrf.mxu0  ;;  %v7491_v50 = vld [vmem:[#allocation8 + $0x140] sm:$0xf0]  ;;  %v6265_v51 = vld [vmem:[#allocation8 + $0x1f8] sm:$0xf] }
 0x12c   :  { %2326 = vmatpush.bf16.msra.mxu1 %v5050_v4  ;;  %v7497_v4 = vld [vmem:[#allocation8 + $0x170] sm:$0xf0]  ;;  %v8053_v43 = vpop.f32.mrf.mxu1  ;;  %v7515_v56 = vld [vmem:[#allocation8 + $0x200] sm:$0xf0] }
 0x12d   :  { %2340 = vmatpush.bf16.msra.mxu2 %v5434_v6  ;;  %2354 = vmatpush.bf16.msra.mxu3 %v5818_v10  ;;  %v6289_v6 = vld [vmem:[#allocation8 + $0x228] sm:$0xf]  ;;  %v6194_v18 = vor.u32 %v7497_v4, %v6193_v62  ;;  %v6361_v62 = vld [vmem:[#allocation8 + $0x2b8] sm:$0xf]  ;;  %v6074_v4 = vor.u32 %v7467_v47, %v6073_v46  ;;  %v7509_v46 = vld [vmem:[#allocation8 + $0x1d0] sm:$0xf0] }
 0x12e   :  { %v6385_v10 = vld [vmem:[#allocation8 + $0x2e8] sm:$0xf]  ;;  %v6290_v19 = vor.u32 %v7521_v7, %v6289_v6  ;;  %v6170_v6 = vor.u32 %v7491_v50, %v6169_v48  ;;  %v6266_v7 = vor.u32 %v7515_v56, %v6265_v51  ;;  %v7533_v51 = vld [vmem:[#allocation8 + $0x290] sm:$0xf0] }
 0x12f   :  { %2313 = vmatpush.bf16.msra.mxu0 %v5766_v21  ;;  %v6085_v21 = vld [vmem:[#allocation8 + $0x90] sm:$0xf]  ;;  %v6386_v26 = vor.u32 %v7545_v15, %v6385_v10  ;;  %v6157_v10 = vld [vmem:[#allocation8 + $0x120] sm:$0xf]  ;;  %v6337_v50 = vld [vmem:[#allocation8 + $0x288] sm:$0xf] }
 0x130   :  { %2327 = vmatpush.bf16.msra.mxu1 %v5002_v22  ;;  %v7470_v22 = vld [vmem:[#allocation8 + $0x98] sm:$0xf0]  ;;  %v8061_v15 = vpop.f32.mrf.mxu2 }
 0x131   :  { %2341 = vmatpush.bf16.msra.mxu2 %v5386_v23  ;;  %2355 = vmatpush.bf16.msra.mxu3 %v5770_v31  ;;  %v6181_v23 = vld [vmem:[#allocation8 + $0x150] sm:$0xf]  ;;  %v7494_v31 = vld [vmem:[#allocation8 + $0x158] sm:$0xf0] }
 0x133   :  { %2314 = vmatpush.bf16.msra.mxu0 %v5718_v41  ;;  %v6086_v41 = vor.u32 %v7470_v22, %v6085_v21  ;;  %v1912_v21 = vadd.f32 %v8003_v0, %v397_v61  ;;  %v6349_v22 = vld [vmem:[#allocation8 + $0x2a0] sm:$0xf]  ;;  %v7485_v0 = vld [vmem:[#allocation8 + $0x110] sm:$0xf0]  ;;  %v8073_v48 = vpop.f32.mrf.mxu0 }
 0x134   :  { %2328 = vmatpush.bf16.msra.mxu1 %v4954_v44  ;;  %v6182_v44 = vor.u32 %v7494_v31, %v6181_v23  ;;  %v7536_v23 = vld [vmem:[#allocation8 + $0x2a8] sm:$0xf0]  ;;  %v398_v31 = vperm.slane %v8049_v36, 2 }
 0x135   :  { %2342 = vmatpush.bf16.msra.mxu2 %v5338_v45  ;;  %2356 = vmatpush.bf16.msra.mxu3 %v5722_v49  ;;  %v6278_v45 = vor.u32 %v7518_v33, %v6277_v32  ;;  %v6374_v49 = vor.u32 %v7542_v35, %v6373_v34  ;;  %v399_v32 = vperm.slane %v8049_v36, 3  ;;  %v1926_v56 = vadd.f32 %v8013_v52, %v1912_v21 }
 0x136   :  { %v6338_v52 = vor.u32 %v7533_v51, %v6337_v50 }
 0x137   :  { %2315 = vmatpush.bf16.msra.mxu0 %v5670_v1  ;;  %v7539_v1 = vld [vmem:[#allocation8 + $0x2c0] sm:$0xf0] }
 0x138   :  { %2329 = vmatpush.bf16.msra.mxu1 %v4906_v8  ;;  %v6061_v8 = vld [vmem:[#allocation8 + $0x60] sm:$0xf] }
 0x139   :  { %2343 = vmatpush.bf16.msra.mxu2 %v5290_v9  ;;  %2357 = vmatpush.bf16.msra.mxu3 %v5674_v16  ;;  %v7464_v9 = vld [vmem:[#allocation8 + $0x68] sm:$0xf0]  ;;  %v6362_v16 = vor.u32 %v7539_v1, %v6361_v62  ;;  %v1956_v1 = vadd.f32 %v8029_v54, %v398_v31 }
 0x13a   :  { %2316 = vmatmul.bf16.vlgmr.msra.gmra.mxu0 %v7970_v20  ;;  %v6062_v33 = vor.u32 %v7464_v9, %v6061_v8  ;;  %v1996_v8 = vadd.f32 %v8035_v3, %v399_v32  ;;  %v1998_v9 = vadd.f32 %v8043_v59, %v399_v32  ;;  %v7479_v32 = vld [vmem:[#allocation8 + $0xe0] sm:$0xf0] }
 0x13b   :  { %4328 = vmatpush.bf16.msrb.mxu0 %v6098_v17  ;;  %2330 = vmatmul.bf16.vlgmr.msra.gmra.mxu1 %v7963_v57  ;;  %v8063_v57 = vpop.f32.mrf.mxu3  ;;  %v6253_v17 = vld [vmem:[#allocation8 + $0x1e0] sm:$0xf]  ;;  %v1970_v21 = vadd.f32 %v8031_v55, %v1956_v1 }
 0x13c   :  { %4342 = vmatpush.bf16.msrb.mxu1 %v6194_v18  ;;  %2344 = vmatmul.bf16.vlgmr.msra.gmra.mxu2 %v7966_v5  ;;  %v7488_v5 = vld [vmem:[#allocation8 + $0x128] sm:$0xf0] }
 0x13d   :  { %4356 = vmatpush.bf16.msrb.mxu2 %v6290_v19  ;;  %4370 = vmatpush.bf16.msrb.mxu3 %v6386_v26  ;;  %v7512_v18 = vld [vmem:[#allocation8 + $0x1e8] sm:$0xf0]  ;;  %v1872_v19 = vadd.f32 %v8005_v12, %v396_v60  ;;  %v1914_v26 = vadd.f32 %v8011_v40, %v397_v61  ;;  %v6158_v34 = vor.u32 %v7488_v5, %v6157_v10  ;;  %v6229_v10 = vld [vmem:[#allocation8 + $0x1b0] sm:$0xf] }
 0x13e   :  { %2358 = vmatmul.bf16.vlgmr.msra.gmra.mxu3 %v7970_v20  ;;  %v1870_v20 = vadd.f32 %v7997_v37, %v396_v60  ;;  %v6254_v35 = vor.u32 %v7512_v18, %v6253_v17  ;;  %v7461_v37 = vld [vmem:[#allocation8 + $0x50] sm:$0xf0]  ;;  %v6350_v12 = vor.u32 %v7536_v23, %v6349_v22  ;;  %v1954_v61 = vadd.f32 %v8017_v11, %v398_v31  ;;  %v7506_v11 = vld [vmem:[#allocation8 + $0x1b8] sm:$0xf0]  ;;  %v6325_v5 = vld [vmem:[#allocation8 + $0x270] sm:$0xf] }
 0x13f   :  { %4329 = vmatpush.bf16.msrb.mxu0 %v6086_v41  ;;  %v6049_v41 = vld [vmem:[#allocation8 + $0x48] sm:$0xf]  ;;  %v1886_v47 = vadd.f32 %v8007_v13, %v1872_v19  ;;  %v1928_v60 = vadd.f32 %v8025_v29, %v1914_v26  ;;  %v7482_v29 = vld [vmem:[#allocation8 + $0xf8] sm:$0xf0]  ;;  %v8090_v18 = vadd.f32 %v8015_v53, %v1926_v56  ;;  %v6230_v22 = vor.u32 %v7506_v11, %v6229_v10  ;;  %v6025_v23 = vld [vmem:[#allocation8 + $0x18] sm:$0xf] }
 0x140   :  { %4343 = vmatpush.bf16.msrb.mxu1 %v6182_v44  ;;  %v6145_v44 = vld [vmem:[#allocation8 + $0x108] sm:$0xf]  ;;  %v1884_v40 = vadd.f32 %v7999_v38, %v1870_v20  ;;  %v6050_v62 = vor.u32 %v7461_v37, %v6049_v41  ;;  %v7530_v17 = vld [vmem:[#allocation8 + $0x278] sm:$0xf0]  ;;  %v1968_v59 = vadd.f32 %v8019_v14, %v1954_v61  ;;  %v8096_v20 = vpop.f32.mrf.mxu2  ;;  %v7455_v53 = vld [vmem:[#allocation8 + $0x20] sm:$0xf0]  ;;  %v2012_v31 = vadd.f32 %v8045_v24, %v1998_v9 }
 0x141   :  { %4357 = vmatpush.bf16.msrb.mxu2 %v6278_v45  ;;  %4371 = vmatpush.bf16.msrb.mxu3 %v6374_v49  ;;  %v6241_v45 = vld [vmem:[#allocation8 + $0x1c8] sm:$0xf]  ;;  %v8075_v49 = vpop.f32.mrf.mxu1  ;;  %v6146_v38 = vor.u32 %v7485_v0, %v6145_v44  ;;  %v8087_v54 = vadd.f32 %v8009_v39, %v1886_v47  ;;  %v8093_v3 = vadd.f32 %v8027_v30, %v1928_v60  ;;  %v6121_v26 = vld [vmem:[#allocation8 + $0xd8] sm:$0xf]  ;;  %v7527_v37 = vld [vmem:[#allocation8 + $0x260] sm:$0xf0] }
 0x142   :  { %v6242_v13 = vor.u32 %v7509_v46, %v6241_v45  ;;  %v2010_v30 = vadd.f32 %v8037_v27, %v1996_v8  ;;  %v6326_v14 = vor.u32 %v7530_v17, %v6325_v5  ;;  %v6313_v41 = vld [vmem:[#allocation8 + $0x258] sm:$0xf]  ;;  %v2365_v44 = vmax.f32 %v8090_v18, 0.0  ;;  %v6013_v24 = vld [vmem:[#allocation8] sm:$0xf] }
 0x143   :  { %4330 = vmatpush.bf16.msrb.mxu0 %v6074_v4  ;;  %v6037_v4 = vld [vmem:[#allocation8 + $0x30] sm:$0xf]  ;;  %v8098_v19 = vpop.f32.mrf.mxu3  ;;  %v2376_v55 = vmax.f32 %v8087_v54, 0.0  ;;  %v1982_v0 = vadd.f32 %v8033_v2, %v1968_v59  ;;  %v6026_v27 = vor.u32 %v7455_v53, %v6025_v23  ;;  %v7452_v45 = vld [vmem:[#allocation8 + $0x8] sm:$0xf0]  ;;  %v1984_v46 = vadd.f32 %v8041_v58, %v1970_v21 }
 0x144   :  { %4344 = vmatpush.bf16.msrb.mxu1 %v6170_v6  ;;  %v7458_v6 = vld [vmem:[#allocation8 + $0x38] sm:$0xf0]  ;;  %v6122_v50 = vor.u32 %v7479_v32, %v6121_v26  ;;  %v6109_v56 = vld [vmem:[#allocation8 + $0xc0] sm:$0xf]  ;;  %v7476_v60 = vld [vmem:[#allocation8 + $0xc8] sm:$0xf0]  ;;  %v2026_v2 = vadd.f32 %v8047_v25, %v2012_v31  ;;  %v6314_v1 = vor.u32 %v7527_v37, %v6313_v41  ;;  %v6014_v8 = vor.u32 %v7452_v45, %v6013_v24 }
 0x145   :  { %4358 = vmatpush.bf16.msrb.mxu2 %v6266_v7  ;;  %4372 = vmatpush.bf16.msrb.mxu3 %v6362_v16  ;;  %v6133_v7 = vld [vmem:[#allocation8 + $0xf0] sm:$0xf]  ;;  %v8084_v16 = vadd.f32 %v8001_v63, %v1884_v40  ;;  %v6038_v63 = vor.u32 %v7458_v6, %v6037_v4  ;;  %v8109_v40 = vpop.f32.mrf.mxu0  ;;  %v6205_v61 = vld [vmem:[#allocation8 + $0x180] sm:$0xf]  ;;  %v7524_v58 = vld [vmem:[#allocation8 + $0x248] sm:$0xf0]  ;;  %v6110_v25 = vor.u32 %v7476_v60, %v6109_v56 }
 0x146   :  { %v6134_v39 = vor.u32 %v7482_v29, %v6133_v7  ;;  %v6481_v4 = vld [vmem:[#allocation8 + $0x3a8] sm:$0xf]  ;;  %v7569_v6 = vld [vmem:[#allocation8 + $0x3b0] sm:$0xf0]  ;;  %v2379_v17 = vmax.f32 %v2026_v2, 0.0  ;;  %v400_v60 = vperm.slane %v8049_v36, 4 }
 0x147   :  { %4331 = vmatpush.bf16.msrb.mxu0 %v6062_v33  ;;  %v6217_v33 = vld [vmem:[#allocation8 + $0x198] sm:$0xf]  ;;  %v6577_v7 = vld [vmem:[#allocation8 + $0x468] sm:$0xf]  ;;  %v7593_v9 = vld [vmem:[#allocation8 + $0x470] sm:$0xf0] }
 0x148   :  { %4345 = vmatpush.bf16.msrb.mxu1 %v6158_v34  ;;  %v7503_v34 = vld [vmem:[#allocation8 + $0x1a0] sm:$0xf0]  ;;  %v7617_v29 = vld [vmem:[#allocation8 + $0x530] sm:$0xf0]  ;;  %v8115_v10 = vpop.f32.mrf.mxu2  ;;  %v6769_v59 = vld [vmem:[#allocation8 + $0x5e8] sm:$0xf]  ;;  %v6578_v21 = vor.u32 %v7593_v9, %v6577_v7 }
 0x149   :  { %4359 = vmatpush.bf16.msrb.mxu2 %v6254_v35  ;;  %4373 = vmatpush.bf16.msrb.mxu3 %v6350_v12  ;;  %v2364_v35 = vmax.f32 %v8084_v16, 0.0  ;;  %v2377_v12 = vmax.f32 %v8093_v3, 0.0  ;;  %v8111_v47 = vpop.f32.mrf.mxu1  ;;  %v6218_v51 = vor.u32 %v7503_v34, %v6217_v33  ;;  %v2378_v16 = vmax.f32 %v1984_v46, 0.0  ;;  %v7566_v23 = vld [vmem:[#allocation8 + $0x398] sm:$0xf0] }
 0x14a   :  { %v6482_v3 = vor.u32 %v7569_v6, %v6481_v4  ;;  %v6565_v53 = vld [vmem:[#allocation8 + $0x450] sm:$0xf]  ;;  %v7590_v26 = vld [vmem:[#allocation8 + $0x458] sm:$0xf0]  ;;  %v6553_v46 = vld [vmem:[#allocation8 + $0x438] sm:$0xf] }
 0x14b   :  { %4332 = vmatpush.bf16.msrb.mxu0 %v6050_v62  ;;  %v2024_v62 = vadd.f32 %v8039_v28, %v2010_v30  ;;  %v8117_v11 = vpop.f32.mrf.mxu3  ;;  %v2366_v28 = vmax.f32 %v1982_v0, 0.0  ;;  %v6661_v30 = vld [vmem:[#allocation8 + $0x510] sm:$0xf]  ;;  %v7614_v31 = vld [vmem:[#allocation8 + $0x518] sm:$0xf0]  ;;  %v8121_v32 = vpack.c.bf16 %v2377_v12, %v2365_v44 }
 0x14c   :  { %4346 = vmatpush.bf16.msrb.mxu1 %v6146_v38  ;;  %v7500_v38 = vld [vmem:[#allocation8 + $0x188] sm:$0xf0]  ;;  %v6757_v37 = vld [vmem:[#allocation8 + $0x5d0] sm:$0xf]  ;;  %v7638_v0 = vld [vmem:[#allocation8 + $0x5d8] sm:$0xf0] }
 0x14d   :  { %4360 = vmatpush.bf16.msrb.mxu2 %v6242_v13  ;;  %4374 = vmatpush.bf16.msrb.mxu3 %v6338_v52  ;;  %v6301_v13 = vld [vmem:[#allocation8 + $0x240] sm:$0xf]  ;;  %v6673_v52 = vld [vmem:[#allocation8 + $0x528] sm:$0xf]  ;;  %v6206_v54 = vor.u32 %v7500_v38, %v6205_v61  ;;  %v2367_v5 = vmax.f32 %v2024_v62, 0.0  ;;  %v8123_v33 = vpack.c.bf16 %v2378_v16, %v2366_v28  ;;  %v8127_v24 = vpop.f32.mrf.mxu0  ;;  %v6758_v61 = vor.u32 %v7638_v0, %v6757_v37 }
 0x14e   :  { %v6302_v18 = vor.u32 %v7524_v58, %v6301_v13  ;;  %v6457_v44 = vld [vmem:[#allocation8 + $0x378] sm:$0xf]  ;;  %v7563_v12 = vld [vmem:[#allocation8 + $0x380] sm:$0xf0]  ;;  %v6445_v6 = vld [vmem:[#allocation8 + $0x360] sm:$0xf]  ;;  %v2038_v28 = vadd.f32 %v8051_v42, %v400_v60  ;;  %v2040_v16 = vadd.f32 %v8073_v48, %v400_v60 }
 0x14f   :  { %4333 = vmatpush.bf16.msrb.mxu0 %v6038_v63  ;;  %v7641_v63 = vld [vmem:[#allocation8 + $0x5f0] sm:$0xf0]  ;;  %v7611_v56 = vld [vmem:[#allocation8 + $0x500] sm:$0xf0]  ;;  %v6458_v62 = vor.u32 %v7563_v12, %v6457_v44  ;;  %v6745_v38 = vld [vmem:[#allocation8 + $0x5b8] sm:$0xf] }
 0x150   :  { %4347 = vmatpush.bf16.msrb.mxu1 %v6134_v39  ;;  %v6674_v39 = vor.u32 %v7617_v29, %v6673_v52  ;;  %v6770_v34 = vor.u32 %v7641_v63, %v6769_v59  ;;  %v2123_v2 = vpop.f32.mrf.mxu2  ;;  %v7635_v13 = vld [vmem:[#allocation8 + $0x5c0] sm:$0xf0]  ;;  %v7560_v7 = vld [vmem:[#allocation8 + $0x368] sm:$0xf0]  ;;  %v6637_v52 = vld [vmem:[#allocation8 + $0x4e0] sm:$0xf] }
 0x151   :  { %4361 = vmatpush.bf16.msrb.mxu2 %v6230_v22  ;;  %4375 = vmatpush.bf16.msrb.mxu3 %v6326_v14  ;;  %v6469_v22 = vld [vmem:[#allocation8 + $0x390] sm:$0xf]  ;;  %v8119_v14 = vpack.c.bf16 %v2376_v55, %v2364_v35  ;;  %v8129_v45 = vpop.f32.mrf.mxu1  ;;  %v6566_v35 = vor.u32 %v7590_v26, %v6565_v53  ;;  %v6662_v55 = vor.u32 %v7614_v31, %v6661_v30  ;;  %v7584_v9 = vld [vmem:[#allocation8 + $0x428] sm:$0xf0]  ;;  %v6433_v42 = vld [vmem:[#allocation8 + $0x348] sm:$0xf] }
 0x152   :  { %v6470_v41 = vor.u32 %v7566_v23, %v6469_v22  ;;  %v7608_v29 = vld [vmem:[#allocation8 + $0x4e8] sm:$0xf0]  ;;  %v7557_v22 = vld [vmem:[#allocation8 + $0x350] sm:$0xf0]  ;;  %v6529_v48 = vld [vmem:[#allocation8 + $0x408] sm:$0xf]  ;;  %v2052_v30 = vadd.f32 %v8053_v43, %v2038_v28  ;;  %v2054_v31 = vadd.f32 %v8075_v49, %v2040_v16 }
 0x153   :  { %4334 = vmatpush.bf16.msrb.mxu0 %v6026_v27  ;;  %v8125_v27 = vpack.c.bf16 %v2379_v17, %v2367_v5  ;;  %v6746_v5 = vor.u32 %v7635_v13, %v6745_v38  ;;  %v6446_v17 = vor.u32 %v7560_v7, %v6445_v6  ;;  %v7581_v23 = vld [vmem:[#allocation8 + $0x410] sm:$0xf0]  ;;  %v6625_v53 = vld [vmem:[#allocation8 + $0x4c8] sm:$0xf]  ;;  %v6434_v0 = vor.u32 %v7557_v22, %v6433_v42  ;;  %v7554_v43 = vld [vmem:[#allocation8 + $0x338] sm:$0xf0] }
 0x154   :  { %4348 = vmatpush.bf16.msrb.mxu1 %v6122_v50  ;;  %v7587_v50 = vld [vmem:[#allocation8 + $0x440] sm:$0xf0]  ;;  %v7605_v26 = vld [vmem:[#allocation8 + $0x4d0] sm:$0xf0]  ;;  %v6530_v12 = vor.u32 %v7581_v23, %v6529_v48  ;;  %v8151_v38 = vadd.f32 %v8061_v15, %v2052_v30  ;;  %v8155_v13 = vadd.f32 %v8096_v20, %v2054_v31 }
 0x155   :  { %4362 = vmatpush.bf16.msrb.mxu2 %v6218_v51  ;;  %4376 = vmatpush.bf16.msrb.mxu3 %v6314_v1  ;;  %v6649_v51 = vld [vmem:[#allocation8 + $0x4f8] sm:$0xf]  ;;  %v8136_v1 = vpop.f32.mrf.mxu3  ;;  %v6554_v58 = vor.u32 %v7587_v50, %v6553_v46  ;;  %v6626_v46 = vor.u32 %v7605_v26, %v6625_v53  ;;  %v6421_v50 = vld [vmem:[#allocation8 + $0x330] sm:$0xf]  ;;  %v7575_v16 = vld [vmem:[#allocation8 + $0x3e0] sm:$0xf0] }
 0x156   :  { %v6650_v4 = vor.u32 %v7611_v56, %v6649_v51  ;;  %v6517_v51 = vld [vmem:[#allocation8 + $0x3f0] sm:$0xf]  ;;  %v6422_v6 = vor.u32 %v7554_v43, %v6421_v50  ;;  %v7623_v42 = vld [vmem:[#allocation8 + $0x560] sm:$0xf0]  ;;  %v6493_v53 = vld [vmem:[#allocation8 + $0x3c0] sm:$0xf] }
 0x157   :  { %4335 = vmatpush.bf16.msrb.mxu0 %v6014_v8  ;;  %v6541_v8 = vld [vmem:[#allocation8 + $0x420] sm:$0xf]  ;;  %v8142_v59 = vpop.f32.mrf.mxu0  ;;  %v7572_v26 = vld [vmem:[#allocation8 + $0x3c8] sm:$0xf0] }
 0x158   :  { %4349 = vmatpush.bf16.msrb.mxu1 %v6110_v25  ;;  %v401_v25 = vperm.slane %v8049_v36, 5  ;;  %v6542_v63 = vor.u32 %v7584_v9, %v6541_v8 }
 0x159   :  { %4363 = vmatpush.bf16.msrb.mxu2 %v6206_v54  ;;  %4377 = vmatpush.bf16.msrb.mxu3 %v6302_v18  ;;  %v402_v54 = vperm.slane %v8049_v36, 6  ;;  %v6733_v18 = vld [vmem:[#allocation8 + $0x5a0] sm:$0xf] }
 0x15a   :  { %4336 = vmatmul.bf16.vlgmr.msrb.gmra.mxu0 %v8119_v14  ;;  %v2082_v44 = vadd.f32 %v8098_v19, %v401_v25 }
 0x15b   :  { %4384 = vmatpush.bf16.msra.mxu0 %v6482_v3  ;;  %4350 = vmatmul.bf16.vlgmr.msrb.gmra.mxu1 %v8121_v32  ;;  %v7632_v3 = vld [vmem:[#allocation8 + $0x5a8] sm:$0xf0]  ;;  %v2122_v49 = vadd.f32 %v8115_v10, %v402_v54  ;;  %v6709_v10 = vld [vmem:[#allocation8 + $0x570] sm:$0xf] }
 0x15c   :  { %4398 = vmatpush.bf16.msra.mxu1 %v6578_v21  ;;  %4364 = vmatmul.bf16.vlgmr.msrb.gmra.mxu2 %v8123_v33  ;;  %v6638_v21 = vor.u32 %v7608_v29, %v6637_v52  ;;  %v6734_v37 = vor.u32 %v7632_v3, %v6733_v18  ;;  %v2096_v7 = vadd.f32 %v8127_v24, %v2082_v44  ;;  %v6409_v52 = vld [vmem:[#allocation8 + $0x318] sm:$0xf]  ;;  %v7551_v29 = vld [vmem:[#allocation8 + $0x320] sm:$0xf0]  ;;  %v2380_v24 = vmax.f32 %v8155_v13, 0.0 }
 0x15d   :  { %4412 = vmatpush.bf16.msra.mxu2 %v6674_v39  ;;  %4378 = vmatmul.bf16.vlgmr.msrb.gmra.mxu3 %v8125_v27  ;;  %v2163_v39 = vpop.f32.mrf.mxu1  ;;  %v2136_v20 = vadd.f32 %v8117_v11, %v2122_v49  ;;  %v6697_v11 = vld [vmem:[#allocation8 + $0x558] sm:$0xf]  ;;  %v7665_v44 = vld [vmem:[#allocation8 + $0x6b0] sm:$0xf0]  ;;  %v7057_v49 = vld [vmem:[#allocation8 + $0x828] sm:$0xf] }
 0x15e   :  { %4426 = vmatpush.bf16.msra.mxu3 %v6770_v34  ;;  %v2080_v34 = vadd.f32 %v8063_v57, %v401_v25  ;;  %v2124_v57 = vadd.f32 %v2123_v2, %v402_v54  ;;  %v7626_v2 = vld [vmem:[#allocation8 + $0x578] sm:$0xf0]  ;;  %v6601_v25 = vld [vmem:[#allocation8 + $0x498] sm:$0xf]  ;;  %v7599_v54 = vld [vmem:[#allocation8 + $0x4a0] sm:$0xf0]  ;;  %v2110_v22 = vadd.f32 %v8129_v45, %v2096_v7  ;;  %v6698_v43 = vor.u32 %v7623_v42, %v6697_v11 }
 0x15f   :  { %4385 = vmatpush.bf16.msra.mxu0 %v6470_v41  ;;  %v403_v41 = vperm.slane %v8049_v36, 7  ;;  %v2177_v56 = vpop.f32.mrf.mxu2  ;;  %v6613_v36 = vld [vmem:[#allocation8 + $0x4b0] sm:$0xf]  ;;  %v2151_v18 = vpop.f32.mrf.mxu0  ;;  %v6602_v23 = vor.u32 %v7599_v54, %v6601_v25  ;;  %v2150_v30 = vadd.f32 %v8142_v59, %v2136_v20  ;;  %v7686_v7 = vld [vmem:[#allocation8 + $0x758] sm:$0xf0] }
 0x160   :  { %4399 = vmatpush.bf16.msra.mxu1 %v6566_v35  ;;  %v6721_v35 = vld [vmem:[#allocation8 + $0x588] sm:$0xf]  ;;  %v2094_v19 = vadd.f32 %v8109_v40, %v2080_v34  ;;  %v6505_v40 = vld [vmem:[#allocation8 + $0x3d8] sm:$0xf]  ;;  %v2138_v28 = vadd.f32 %v8136_v1, %v2124_v57  ;;  %v6397_v1 = vld [vmem:[#allocation8 + $0x300] sm:$0xf] }
 0x161   :  { %4413 = vmatpush.bf16.msra.mxu2 %v6662_v55  ;;  %v7629_v55 = vld [vmem:[#allocation8 + $0x590] sm:$0xf0]  ;;  %v2191_v60 = vpop.f32.mrf.mxu3  ;;  %v6506_v48 = vor.u32 %v7575_v16, %v6505_v40  ;;  %v2381_v59 = vmax.f32 %v2110_v22, 0.0  ;;  %v7707_v11 = vld [vmem:[#allocation8 + $0x800] sm:$0xf0] }
 0x162   :  { %4427 = vmatpush.bf16.msra.mxu3 %v6758_v61  ;;  %v7578_v61 = vld [vmem:[#allocation8 + $0x3f8] sm:$0xf0]  ;;  %v2152_v31 = vadd.f32 %v2151_v18, %v2138_v28  ;;  %v7713_v57 = vld [vmem:[#allocation8 + $0x830] sm:$0xf0]  ;;  %v7659_v18 = vld [vmem:[#allocation8 + $0x680] sm:$0xf0] }
 0x163   :  { %4386 = vmatpush.bf16.msra.mxu0 %v6458_v62  ;;  %v7602_v62 = vld [vmem:[#allocation8 + $0x4b8] sm:$0xf0]  ;;  %v6518_v8 = vor.u32 %v7578_v61, %v6517_v51  ;;  %v6494_v61 = vor.u32 %v7572_v26, %v6493_v53  ;;  %v7141_v53 = vld [vmem:[#allocation8 + $0x8d0] sm:$0xf]  ;;  %v6925_v26 = vld [vmem:[#allocation8 + $0x720] sm:$0xf] }
 0x164   :  { %4400 = vmatpush.bf16.msra.mxu1 %v6554_v58  ;;  %v2164_v58 = vadd.f32 %v2163_v39, %v403_v41  ;;  %v6614_v9 = vor.u32 %v7602_v62, %v6613_v36  ;;  %v6410_v39 = vor.u32 %v7551_v29, %v6409_v52  ;;  %v6685_v62 = vld [vmem:[#allocation8 + $0x540] sm:$0xf]  ;;  %v2382_v13 = vmax.f32 %v2152_v31, 0.0  ;;  %v7045_v52 = vld [vmem:[#allocation8 + $0x810] sm:$0xf] }
 0x165   :  { %4414 = vmatpush.bf16.msra.mxu2 %v6650_v4  ;;  %v6722_v4 = vor.u32 %v7629_v55, %v6721_v35  ;;  %v2165_v15 = vpop.f32.mrf.mxu1  ;;  %v6865_v35 = vld [vmem:[#allocation8 + $0x6a8] sm:$0xf]  ;;  %v7710_v29 = vld [vmem:[#allocation8 + $0x818] sm:$0xf0] }
 0x166   :  { %4428 = vmatpush.bf16.msra.mxu3 %v6746_v5  ;;  %v2368_v5 = vmax.f32 %v8151_v38, 0.0  ;;  %v2166_v3 = vadd.f32 %v2165_v15, %v403_v41  ;;  %v7046_v38 = vor.u32 %v7710_v29, %v7045_v52  ;;  %v7698_v52 = vld [vmem:[#allocation8 + $0x7b8] sm:$0xf0] }
 0x167   :  { %4387 = vmatpush.bf16.msra.mxu0 %v6446_v17  ;;  %v8162_v17 = vadd.f32 %v8111_v47, %v2094_v19  ;;  %v7548_v47 = vld [vmem:[#allocation8 + $0x308] sm:$0xf0]  ;;  %v2179_v34 = vpop.f32.mrf.mxu2  ;;  %v2370_v19 = vmax.f32 %v2150_v30, 0.0 }
 0x168   :  { %4401 = vmatpush.bf16.msra.mxu1 %v6542_v63  ;;  %v2178_v63 = vadd.f32 %v2177_v56, %v2164_v58  ;;  %v2180_v55 = vadd.f32 %v2179_v34, %v2166_v3  ;;  %v6398_v51 = vor.u32 %v7548_v47, %v6397_v1  ;;  %v6866_v58 = vor.u32 %v7665_v44, %v6865_v35  ;;  %v6937_v3 = vld [vmem:[#allocation8 + $0x738] sm:$0xf]  ;;  %v8181_v1 = vld [vmem:[#allocation7 + $0x8] sm:$0xf]  ;;  %v7656_v47 = vld [vmem:[#allocation8 + $0x668] sm:$0xf0] }
 0x169   :  { %4415 = vmatpush.bf16.msra.mxu2 %v6638_v21  ;;  %v6710_v21 = vor.u32 %v7626_v2, %v6709_v10  ;;  %v2193_v41 = vpop.f32.mrf.mxu3  ;;  %v2369_v45 = vmax.f32 %v8162_v17, 0.0  ;;  %v6853_v10 = vld [vmem:[#allocation8 + $0x690] sm:$0xf]  ;;  %v8170_v40 = vpack.c.bf16 %v2380_v24, %v2368_v5  ;;  %v8174_v16 = vpack.c.bf16 %v2382_v13, %v2370_v19  ;;  %v6841_v17 = vld [vmem:[#allocation8 + $0x678] sm:$0xf] }
 0x16a   :  { %4429 = vmatpush.bf16.msra.mxu3 %v6734_v37  ;;  %v6589_v37 = vld [vmem:[#allocation8 + $0x480] sm:$0xf]  ;;  %v2192_v50 = vadd.f32 %v2191_v60, %v2178_v63  ;;  %v2194_v56 = vadd.f32 %v2193_v41, %v2180_v55  ;;  %v7662_v60 = vld [vmem:[#allocation8 + $0x698] sm:$0xf0]  ;;  %v6949_v2 = vld [vmem:[#allocation8 + $0x750] sm:$0xf]  ;;  %v6842_v22 = vor.u32 %v7659_v18, %v6841_v17 }
 0x16b   :  { %4388 = vmatpush.bf16.msra.mxu0 %v6434_v0  ;;  %v7596_v0 = vld [vmem:[#allocation8 + $0x488] sm:$0xf0]  ;;  %v8172_v20 = vpack.c.bf16 %v2381_v59, %v2369_v45  ;;  %v6854_v25 = vor.u32 %v7662_v60, %v6853_v10  ;;  %v6950_v54 = vor.u32 %v7686_v7, %v6949_v2  ;;  %v7683_v63 = vld [vmem:[#allocation8 + $0x740] sm:$0xf0]  ;;  %v7153_v5 = vld [vmem:[#allocation8 + $0x8e8] sm:$0xf] }
 0x16c   :  { %4402 = vmatpush.bf16.msra.mxu1 %v6530_v12  ;;  %v6961_v12 = vld [vmem:[#allocation8 + $0x768] sm:$0xf]  ;;  %v6590_v36 = vor.u32 %v7596_v0, %v6589_v37  ;;  %v2383_v15 = vmax.f32 %v2194_v56, 0.0  ;;  %v7737_v24 = vld [vmem:[#allocation8 + $0x8f0] sm:$0xf0]  ;;  %v404_v41 = vperm.slane %v8181_v1, 0 }
 0x16d   :  { %4416 = vmatpush.bf16.msra.mxu2 %v6626_v46  ;;  %v7689_v46 = vld [vmem:[#allocation8 + $0x770] sm:$0xf0]  ;;  %v7154_v42 = vor.u32 %v7737_v24, %v7153_v5  ;;  %v7680_v30 = vld [vmem:[#allocation8 + $0x728] sm:$0xf0]  ;;  %v7734_v34 = vld [vmem:[#allocation8 + $0x8d8] sm:$0xf0] }
 0x16e   :  { %4430 = vmatpush.bf16.msra.mxu3 %v6722_v4  ;;  %v6962_v4 = vor.u32 %v7689_v46, %v6961_v12  ;;  %v7021_v37 = vld [vmem:[#allocation8 + $0x7e0] sm:$0xf]  ;;  %v7704_v0 = vld [vmem:[#allocation8 + $0x7e8] sm:$0xf0]  ;;  %v7142_v35 = vor.u32 %v7734_v34, %v7141_v53  ;;  %v6926_v44 = vor.u32 %v7680_v30, %v6925_v26  ;;  %v6817_v45 = vld [vmem:[#allocation8 + $0x648] sm:$0xf] }
 0x16f   :  { %4389 = vmatpush.bf16.msra.mxu0 %v6422_v6  ;;  %v7620_v6 = vld [vmem:[#allocation8 + $0x548] sm:$0xf0]  ;;  %v7731_v59 = vld [vmem:[#allocation8 + $0x8c0] sm:$0xf0]  ;;  %v6901_v60 = vld [vmem:[#allocation8 + $0x6f0] sm:$0xf] }
 0x170   :  { %4403 = vmatpush.bf16.msra.mxu1 %v6518_v8  ;;  %v7058_v8 = vor.u32 %v7713_v57, %v7057_v49  ;;  %v6686_v28 = vor.u32 %v7620_v6, %v6685_v62  ;;  %v7677_v49 = vld [vmem:[#allocation8 + $0x710] sm:$0xf0]  ;;  %v7022_v57 = vor.u32 %v7704_v0, %v7021_v37  ;;  %v7117_v6 = vld [vmem:[#allocation8 + $0x8a0] sm:$0xf]  ;;  %v7674_v2 = vld [vmem:[#allocation8 + $0x6f8] sm:$0xf0] }
 0x171   :  { %4417 = vmatpush.bf16.msra.mxu2 %v6614_v9  ;;  %v2371_v9 = vmax.f32 %v2192_v50, 0.0  ;;  %v7653_v50 = vld [vmem:[#allocation8 + $0x650] sm:$0xf0]  ;;  %v6793_v18 = vld [vmem:[#allocation8 + $0x618] sm:$0xf] }
 0x172   :  { %4431 = vmatpush.bf16.msra.mxu3 %v6710_v21  ;;  %v6818_v19 = vor.u32 %v7653_v50, %v6817_v45  ;;  %v7671_v5 = vld [vmem:[#allocation8 + $0x6e0] sm:$0xf0]  ;;  %v6781_v53 = vld [vmem:[#allocation8 + $0x600] sm:$0xf]  ;;  %v7644_v26 = vld [vmem:[#allocation8 + $0x608] sm:$0xf0] }
 0x173   :  { %4390 = vmatpush.bf16.msra.mxu0 %v6410_v39  ;;  %v8177_v21 = vpack.c.bf16 %v2383_v15, %v2371_v9  ;;  %v7033_v39 = vld [vmem:[#allocation8 + $0x7f8] sm:$0xf]  ;;  %v6997_v15 = vld [vmem:[#allocation8 + $0x7b0] sm:$0xf]  ;;  %v6877_v30 = vld [vmem:[#allocation8 + $0x6c0] sm:$0xf] }
 0x174   :  { %4404 = vmatpush.bf16.msra.mxu1 %v6506_v48  ;;  %v6938_v48 = vor.u32 %v7683_v63, %v6937_v3  ;;  %v7034_v31 = vor.u32 %v7707_v11, %v7033_v39  ;;  %v7647_v3 = vld [vmem:[#allocation8 + $0x620] sm:$0xf0]  ;;  %v6889_v63 = vld [vmem:[#allocation8 + $0x6d8] sm:$0xf]  ;;  %v6998_v24 = vor.u32 %v7698_v52, %v6997_v15  ;;  %v7105_v39 = vld [vmem:[#allocation8 + $0x888] sm:$0xf] }
 0x175   :  { %4418 = vmatpush.bf16.msra.mxu2 %v6602_v23  ;;  %v6829_v23 = vld [vmem:[#allocation8 + $0x660] sm:$0xf]  ;;  %v7725_v11 = vld [vmem:[#allocation8 + $0x890] sm:$0xf0]  ;;  %v6890_v34 = vor.u32 %v7671_v5, %v6889_v63  ;;  %v7668_v37 = vld [vmem:[#allocation8 + $0x6c8] sm:$0xf0] }
 0x176   :  { %4432 = vmatpush.bf16.msra.mxu3 %v6698_v43  ;;  %v6830_v55 = vor.u32 %v7656_v47, %v6829_v23  ;;  %v7129_v43 = vld [vmem:[#allocation8 + $0x8b8] sm:$0xf]  ;;  %v7106_v23 = vor.u32 %v7725_v11, %v7105_v39  ;;  %v7517_v52 = vld [vmem:[#allocation8 + $0x214] sm:$0xf]  ;;  %v6075_v63 = vld [vmem:[#allocation8 + $0x84] sm:$0xf0] }
 0x177   :  { %4391 = vmatpush.bf16.msra.mxu0 %v6398_v51  ;;  %v2205_v12 = vpop.f32.mrf.mxu0  ;;  %v6913_v51 = vld [vmem:[#allocation8 + $0x708] sm:$0xf]  ;;  %v7130_v62 = vor.u32 %v7731_v59, %v7129_v43  ;;  %v6099_v0 = vld [vmem:[#allocation8 + $0xb4] sm:$0xf0]  ;;  %v7520_v59 = vld [vmem:[#allocation8 + $0x22c] sm:$0xf] }
 0x178   :  { %4405 = vmatpush.bf16.msra.mxu1 %v6494_v61  ;;  %v2219_v46 = vpop.f32.mrf.mxu1  ;;  %v2206_v56 = vadd.f32 %v2205_v12, %v404_v41  ;;  %v7009_v61 = vld [vmem:[#allocation8 + $0x7c8] sm:$0xf]  ;;  %v6914_v13 = vor.u32 %v7677_v49, %v6913_v51  ;;  %v7093_v12 = vld [vmem:[#allocation8 + $0x870] sm:$0xf]  ;;  %v6195_v43 = vld [vmem:[#allocation8 + $0x174] sm:$0xf0] }
 0x179   :  { %4419 = vmatpush.bf16.msra.mxu2 %v6590_v36  ;;  %v7701_v36 = vld [vmem:[#allocation8 + $0x7d0] sm:$0xf0]  ;;  %v6973_v51 = vld [vmem:[#allocation8 + $0x780] sm:$0xf]  ;;  %v6171_v5 = vld [vmem:[#allocation8 + $0x144] sm:$0xf0] }
 0x17a   :  { %4392 = vmatmul.bf16.vlgmr.msra.gmra.mxu0 %v8170_v40  ;;  %4433 = vmatpush.bf16.msra.mxu3 %v6686_v28  ;;  %v7010_v7 = vor.u32 %v7701_v36, %v7009_v61  ;;  %v2220_v9 = vadd.f32 %v2219_v46, %v2206_v56  ;;  %v7722_v46 = vld [vmem:[#allocation8 + $0x878] sm:$0xf0]  ;;  %v6291_v56 = vld [vmem:[#allocation8 + $0x234] sm:$0xf0]  ;;  %v6782_v36 = vor.u32 %v7644_v26, %v6781_v53  ;;  %v7544_v39 = vld [vmem:[#allocation8 + $0x2ec] sm:$0xf] }
 0x17b   :  { %4440 = vmatpush.bf16.msrb.mxu0 %v6866_v58  ;;  %4406 = vmatmul.bf16.vlgmr.msra.gmra.mxu1 %v8172_v20  ;;  %v6805_v58 = vld [vmem:[#allocation8 + $0x630] sm:$0xf]  ;;  %v7094_v49 = vor.u32 %v7722_v46, %v7093_v12  ;;  %v6294_v15 = vor.u32 %v7520_v59, %v6291_v56  ;;  %v7511_v12 = vld [vmem:[#allocation8 + $0x1e4] sm:$0xf]  ;;  %v6147_v56 = vld [vmem:[#allocation8 + $0x114] sm:$0xf0] }
 0x17c   :  { %4454 = vmatpush.bf16.msrb.mxu1 %v6962_v4  ;;  %4420 = vmatmul.bf16.vlgmr.msra.gmra.mxu2 %v8174_v16  ;;  %v7650_v4 = vld [vmem:[#allocation8 + $0x638] sm:$0xf0]  ;;  %v6255_v46 = vld [vmem:[#allocation8 + $0x1ec] sm:$0xf0] }
 0x17d   :  { %4468 = vmatpush.bf16.msrb.mxu2 %v7058_v8  ;;  %4434 = vmatmul.bf16.vlgmr.msra.gmra.mxu3 %v8177_v21  ;;  %v7728_v8 = vld [vmem:[#allocation8 + $0x8a8] sm:$0xf0]  ;;  %v6806_v28 = vor.u32 %v7650_v4, %v6805_v58 }
 0x17e   :  { %4482 = vmatpush.bf16.msrb.mxu3 %v7154_v42  ;;  %v7118_v29 = vor.u32 %v7728_v8, %v7117_v6  ;;  %v7469_v6 = vld [vmem:[#allocation8 + $0x94] sm:$0xf] }
 0x17f   :  { %4441 = vmatpush.bf16.msrb.mxu0 %v6854_v25  ;;  %v2233_v10 = vpop.f32.mrf.mxu2  ;;  %v6902_v25 = vor.u32 %v7674_v2, %v6901_v60  ;;  %v7493_v60 = vld [vmem:[#allocation8 + $0x154] sm:$0xf]  ;;  %v6183_v2 = vld [vmem:[#allocation8 + $0x15c] sm:$0xf0] }
 0x180   :  { %4455 = vmatpush.bf16.msrb.mxu1 %v6950_v54  ;;  %v2207_v54 = vpop.f32.mrf.mxu0  ;;  %v2221_v17 = vpop.f32.mrf.mxu1  ;;  %v2234_v42 = vadd.f32 %v2233_v10, %v2220_v9  ;;  %v6087_v10 = vld [vmem:[#allocation8 + $0x9c] sm:$0xf0] }
 0x181   :  { %4469 = vmatpush.bf16.msrb.mxu2 %v7046_v38  ;;  %v2208_v38 = vadd.f32 %v2207_v54, %v404_v41  ;;  %v7472_v41 = vld [vmem:[#allocation8 + $0xac] sm:$0xf]  ;;  %v6090_v54 = vor.u32 %v7469_v6, %v6087_v10  ;;  %v6243_v6 = vld [vmem:[#allocation8 + $0x1d4] sm:$0xf0] }
 0x182   :  { %4483 = vmatpush.bf16.msrb.mxu3 %v7142_v35  ;;  %v2372_v45 = vmax.f32 %v2234_v42, 0.0  ;;  %v6102_v58 = vor.u32 %v7472_v41, %v6099_v0  ;;  %v6387_v42 = vld [vmem:[#allocation8 + $0x2f4] sm:$0xf0]  ;;  %v6159_v41 = vld [vmem:[#allocation8 + $0x12c] sm:$0xf0] }
 0x183   :  { %4442 = vmatpush.bf16.msrb.mxu0 %v6842_v22  ;;  %v6985_v22 = vld [vmem:[#allocation8 + $0x798] sm:$0xf]  ;;  %v2222_v47 = vadd.f32 %v2221_v17, %v2208_v38  ;;  %v6186_v17 = vor.u32 %v7493_v60, %v6183_v2  ;;  %v7490_v38 = vld [vmem:[#allocation8 + $0x13c] sm:$0xf]  ;;  %v6375_v0 = vld [vmem:[#allocation8 + $0x2dc] sm:$0xf0] }
 0x184   :  { %4456 = vmatpush.bf16.msrb.mxu1 %v6938_v48  ;;  %v7695_v48 = vld [vmem:[#allocation8 + $0x7a0] sm:$0xf0]  ;;  %v6174_v26 = vor.u32 %v7490_v38, %v6171_v5  ;;  %v7457_v2 = vld [vmem:[#allocation8 + $0x34] sm:$0xf] }
 0x185   :  { %4470 = vmatpush.bf16.msrb.mxu2 %v7034_v31  ;;  %v6794_v31 = vor.u32 %v7647_v3, %v6793_v18  ;;  %v2247_v18 = vpop.f32.mrf.mxu3  ;;  %v7466_v3 = vld [vmem:[#allocation8 + $0x7c] sm:$0xf] }
 0x186   :  { %4484 = vmatpush.bf16.msrb.mxu3 %v7130_v62  ;;  %v6878_v62 = vor.u32 %v7668_v37, %v6877_v30  ;;  %v6078_v53 = vor.u32 %v7466_v3, %v6075_v63  ;;  %v7463_v30 = vld [vmem:[#allocation8 + $0x64] sm:$0xf]  ;;  %v6231_v3 = vld [vmem:[#allocation8 + $0x1bc] sm:$0xf0] }
 0x187   :  { %4443 = vmatpush.bf16.msrb.mxu0 %v6830_v55  ;;  %v2235_v35 = vpop.f32.mrf.mxu2  ;;  %v7496_v55 = vld [vmem:[#allocation8 + $0x16c] sm:$0xf]  ;;  %v7487_v37 = vld [vmem:[#allocation8 + $0x124] sm:$0xf] }
 0x188   :  { %4457 = vmatpush.bf16.msrb.mxu1 %v6926_v44  ;;  %v6986_v44 = vor.u32 %v7695_v48, %v6985_v22  ;;  %v2236_v50 = vadd.f32 %v2235_v35, %v2222_v47  ;;  %v6198_v4 = vor.u32 %v7496_v55, %v6195_v43  ;;  %v405_v22 = vperm.slane %v8181_v1, 1  ;;  %v7514_v48 = vld [vmem:[#allocation8 + $0x1fc] sm:$0xf] }
 0x189   :  { %4471 = vmatpush.bf16.msrb.mxu2 %v7022_v57  ;;  %v7692_v57 = vld [vmem:[#allocation8 + $0x788] sm:$0xf0]  ;;  %v6390_v47 = vor.u32 %v7544_v39, %v6387_v42  ;;  %v6162_v43 = vor.u32 %v7487_v37, %v6159_v41  ;;  %v6027_v39 = vld [vmem:[#allocation8 + $0x24] sm:$0xf0]  ;;  %v6015_v37 = vld [vmem:[#allocation8 + $0xc] sm:$0xf0] }
 0x18a   :  { %4485 = vmatpush.bf16.msrb.mxu3 %v7118_v29  ;;  %v2384_v61 = vmax.f32 %v2236_v50, 0.0  ;;  %v6279_v29 = vld [vmem:[#allocation8 + $0x21c] sm:$0xf0]  ;;  %v7502_v41 = vld [vmem:[#allocation8 + $0x19c] sm:$0xf] }
 0x18b   :  { %4444 = vmatpush.bf16.msrb.mxu0 %v6818_v19  ;;  %v7081_v19 = vld [vmem:[#allocation8 + $0x858] sm:$0xf]  ;;  %v6282_v11 = vor.u32 %v7517_v52, %v6279_v29  ;;  %v7481_v52 = vld [vmem:[#allocation8 + $0xf4] sm:$0xf]  ;;  %v6135_v29 = vld [vmem:[#allocation8 + $0xfc] sm:$0xf0] }
 0x18c   :  { %4458 = vmatpush.bf16.msrb.mxu1 %v6914_v13  ;;  %v7719_v13 = vld [vmem:[#allocation8 + $0x860] sm:$0xf0]  ;;  %v8185_v9 = vpack.c.bf16 %v2384_v61, %v2372_v45  ;;  %v7538_v61 = vld [vmem:[#allocation8 + $0x2bc] sm:$0xf]  ;;  %v6138_v5 = vor.u32 %v7481_v52, %v6135_v29 }
 0x18d   :  { %4472 = vmatpush.bf16.msrb.mxu2 %v7010_v7  ;;  %v6974_v7 = vor.u32 %v7692_v57, %v6973_v51  ;;  %v7082_v8 = vor.u32 %v7719_v13, %v7081_v19  ;;  %v7460_v51 = vld [vmem:[#allocation8 + $0x4c] sm:$0xf]  ;;  %v6258_v19 = vor.u32 %v7511_v12, %v6255_v46  ;;  %v6111_v12 = vld [vmem:[#allocation8 + $0xcc] sm:$0xf0] }
 0x18e   :  { %4486 = vmatpush.bf16.msrb.mxu3 %v7106_v23  ;;  %v6267_v23 = vld [vmem:[#allocation8 + $0x204] sm:$0xf0]  ;;  %v7484_v57 = vld [vmem:[#allocation8 + $0x10c] sm:$0xf] }
 0x18f   :  { %4445 = vmatpush.bf16.msrb.mxu0 %v6806_v28  ;;  %v7069_v28 = vld [vmem:[#allocation8 + $0x840] sm:$0xf]  ;;  %v6270_v35 = vor.u32 %v7514_v48, %v6267_v23  ;;  %v6150_v60 = vor.u32 %v7484_v57, %v6147_v56  ;;  %v6123_v48 = vld [vmem:[#allocation8 + $0xe4] sm:$0xf0]  ;;  %v7532_v23 = vld [vmem:[#allocation8 + $0x28c] sm:$0xf] }
 0x190   :  { %4459 = vmatpush.bf16.msrb.mxu1 %v6902_v25  ;;  %v7716_v25 = vld [vmem:[#allocation8 + $0x848] sm:$0xf0]  ;;  %v6579_v57 = vld [vmem:[#allocation8 + $0x474] sm:$0xf0] }
 0x191   :  { %4473 = vmatpush.bf16.msrb.mxu2 %v6998_v24  ;;  %v7070_v24 = vor.u32 %v7716_v25, %v7069_v28  ;;  %v6351_v28 = vld [vmem:[#allocation8 + $0x2ac] sm:$0xf0]  ;;  %v7568_v46 = vld [vmem:[#allocation8 + $0x3ac] sm:$0xf] }
 0x192   :  { %4487 = vmatpush.bf16.msrb.mxu3 %v7094_v49  ;;  %v6051_v49 = vld [vmem:[#allocation8 + $0x54] sm:$0xf0] }
 0x193   :  { %4446 = vmatpush.bf16.msrb.mxu0 %v6794_v31  ;;  %v6063_v31 = vld [vmem:[#allocation8 + $0x6c] sm:$0xf0]  ;;  %v6054_v10 = vor.u32 %v7460_v51, %v6051_v49  ;;  %v6483_v51 = vld [vmem:[#allocation8 + $0x3b4] sm:$0xf0]  ;;  %v7592_v49 = vld [vmem:[#allocation8 + $0x46c] sm:$0xf] }
 0x194   :  { %4460 = vmatpush.bf16.msrb.mxu1 %v6890_v34  ;;  %v7541_v34 = vld [vmem:[#allocation8 + $0x2d4] sm:$0xf]  ;;  %v6066_v50 = vor.u32 %v7463_v30, %v6063_v31 }
 0x195   :  { %4474 = vmatpush.bf16.msrb.mxu2 %v6986_v44  ;;  %v6378_v55 = vor.u32 %v7541_v34, %v6375_v0  ;;  %v2248_v44 = vadd.f32 %v2247_v18, %v405_v22  ;;  %v7505_v18 = vld [vmem:[#allocation8 + $0x1b4] sm:$0xf]  ;;  %v7451_v34 = vld [vmem:[#allocation8 + $0x4] sm:$0xf]  ;;  %v6219_v0 = vld [vmem:[#allocation8 + $0x1a4] sm:$0xf0] }
 0x196   :  { %4488 = vmatpush.bf16.msrb.mxu3 %v7082_v8  ;;  %v7535_v8 = vld [vmem:[#allocation8 + $0x2a4] sm:$0xf] }
 0x197   :  { %4447 = vmatpush.bf16.msrb.mxu0 %v6782_v36  ;;  %v2261_v45 = vpop.f32.mrf.mxu0  ;;  %v6363_v36 = vld [vmem:[#allocation8 + $0x2c4] sm:$0xf0] }
 0x198   :  { %4461 = vmatpush.bf16.msrb.mxu1 %v6878_v62  ;;  %v2275_v59 = vpop.f32.mrf.mxu1  ;;  %v2249_v62 = vpop.f32.mrf.mxu3  ;;  %v6366_v13 = vor.u32 %v7538_v61, %v6363_v36  ;;  %v7499_v36 = vld [vmem:[#allocation8 + $0x184] sm:$0xf] }
 0x199   :  { %4475 = vmatpush.bf16.msrb.mxu2 %v6974_v7  ;;  %v6039_v7 = vld [vmem:[#allocation8 + $0x3c] sm:$0xf0] }
 0x19a   :  { %4448 = vmatmul.bf16.vlgmr.msrb.gmra.mxu0 %v8185_v9  ;;  %4489 = vmatpush.bf16.msrb.mxu3 %v7070_v24  ;;  %v6042_v38 = vor.u32 %v7457_v2, %v6039_v7  ;;  %v7454_v24 = vld [vmem:[#allocation8 + $0x1c] sm:$0xf]  ;;  %v6471_v2 = vld [vmem:[#allocation8 + $0x39c] sm:$0xf0]  ;;  %v7589_v7 = vld [vmem:[#allocation8 + $0x454] sm:$0xf] }
 0x19b   :  { %4496 = vmatpush.bf16.msra.mxu0 %v6102_v58  ;;  %v2262_v58 = vadd.f32 %v2261_v45, %v2248_v44  ;;  %v7475_v44 = vld [vmem:[#allocation8 + $0xc4] sm:$0xf] }
 0x19c   :  { %4510 = vmatpush.bf16.msra.mxu1 %v6198_v4  ;;  %v7508_v4 = vld [vmem:[#allocation8 + $0x1cc] sm:$0xf] }
 0x19d   :  { %4524 = vmatpush.bf16.msra.mxu2 %v6294_v15  ;;  %v2250_v15 = vadd.f32 %v2249_v62, %v405_v22  ;;  %v6246_v25 = vor.u32 %v7508_v4, %v6243_v6  ;;  %v6207_v62 = vld [vmem:[#allocation8 + $0x18c] sm:$0xf0]  ;;  %v6315_v4 = vld [vmem:[#allocation8 + $0x264] sm:$0xf0]  ;;  %v6486_v6 = vor.u32 %v7568_v46, %v6483_v51  ;;  %v407_v51 = vperm.slane %v8181_v1, 3 }
 0x19e   :  { %4538 = vmatpush.bf16.msra.mxu3 %v6390_v47  ;;  %v6339_v47 = vld [vmem:[#allocation8 + $0x294] sm:$0xf0] }
 0x19f   :  { %4497 = vmatpush.bf16.msra.mxu0 %v6090_v54  ;;  %v6354_v54 = vor.u32 %v7535_v8, %v6351_v28  ;;  %v2263_v63 = vpop.f32.mrf.mxu0  ;;  %v6567_v8 = vld [vmem:[#allocation8 + $0x45c] sm:$0xf0]  ;;  %v2289_v29 = vpop.f32.mrf.mxu2 }
 0x1a0   :  { %4511 = vmatpush.bf16.msra.mxu1 %v6186_v17  ;;  %v2276_v17 = vadd.f32 %v2275_v59, %v2262_v58  ;;  %v2264_v42 = vadd.f32 %v2263_v63, %v2250_v15  ;;  %v2277_v22 = vpop.f32.mrf.mxu1  ;;  %v6222_v59 = vor.u32 %v7502_v41, %v6219_v0  ;;  %v7526_v58 = vld [vmem:[#allocation8 + $0x25c] sm:$0xf]  ;;  %v6210_v15 = vor.u32 %v7499_v36, %v6207_v62  ;;  %v6459_v63 = vld [vmem:[#allocation8 + $0x384] sm:$0xf0]  ;;  %v6435_v41 = vld [vmem:[#allocation8 + $0x354] sm:$0xf0] }
 0x1a1   :  { %4525 = vmatpush.bf16.msra.mxu2 %v6282_v11  ;;  %v7478_v11 = vld [vmem:[#allocation8 + $0xdc] sm:$0xf]  ;;  %v6318_v52 = vor.u32 %v7526_v58, %v6315_v4  ;;  %v2303_v28 = vpop.f32.mrf.mxu3  ;;  %v7580_v0 = vld [vmem:[#allocation8 + $0x40c] sm:$0xf] }
 0x1a2   :  { %4539 = vmatpush.bf16.msra.mxu3 %v6378_v55  ;;  %v2373_v30 = vmax.f32 %v2276_v17, 0.0  ;;  %v2278_v31 = vadd.f32 %v2277_v22, %v2264_v42  ;;  %v6126_v55 = vor.u32 %v7478_v11, %v6123_v48  ;;  %v7559_v42 = vld [vmem:[#allocation8 + $0x364] sm:$0xf]  ;;  %v6447_v22 = vld [vmem:[#allocation8 + $0x36c] sm:$0xf0] }
 0x1a3   :  { %4498 = vmatpush.bf16.msra.mxu0 %v6078_v53  ;;  %v6234_v53 = vor.u32 %v7505_v18, %v6231_v3  ;;  %v6570_v18 = vor.u32 %v7589_v7, %v6567_v8  ;;  %v7562_v3 = vld [vmem:[#allocation8 + $0x37c] sm:$0xf]  ;;  %v7583_v48 = vld [vmem:[#allocation8 + $0x424] sm:$0xf]  ;;  %v6507_v7 = vld [vmem:[#allocation8 + $0x3e4] sm:$0xf0] }
 0x1a4   :  { %4512 = vmatpush.bf16.msra.mxu1 %v6174_v26  ;;  %v6342_v26 = vor.u32 %v7532_v23, %v6339_v47  ;;  %v2385_v45 = vmax.f32 %v2278_v31, 0.0  ;;  %v6543_v23 = vld [vmem:[#allocation8 + $0x42c] sm:$0xf0]  ;;  %v406_v47 = vperm.slane %v8181_v1, 2  ;;  %v7556_v31 = vld [vmem:[#allocation8 + $0x34c] sm:$0xf] }
 0x1a5   :  { %4526 = vmatpush.bf16.msra.mxu2 %v6270_v35  ;;  %v6030_v35 = vor.u32 %v7454_v24, %v6027_v39  ;;  %v6462_v39 = vor.u32 %v7562_v3, %v6459_v63  ;;  %v6438_v46 = vor.u32 %v7556_v31, %v6435_v41  ;;  %v7550_v58 = vld [vmem:[#allocation8 + $0x31c] sm:$0xf]  ;;  %v7616_v8 = vld [vmem:[#allocation8 + $0x52c] sm:$0xf]  ;;  %v7571_v63 = vld [vmem:[#allocation8 + $0x3c4] sm:$0xf] }
 0x1a6   :  { %4540 = vmatpush.bf16.msra.mxu3 %v6366_v13  ;;  %v8189_v61 = vpack.c.bf16 %v2385_v45, %v2373_v30  ;;  %v6114_v13 = vor.u32 %v7475_v44, %v6111_v12  ;;  %v6546_v30 = vor.u32 %v7583_v48, %v6543_v23  ;;  %v7613_v23 = vld [vmem:[#allocation8 + $0x514] sm:$0xf] }
 0x1a7   :  { %4499 = vmatpush.bf16.msra.mxu0 %v6066_v50  ;;  %v7529_v50 = vld [vmem:[#allocation8 + $0x274] sm:$0xf] }
 0x1a8   :  { %4513 = vmatpush.bf16.msra.mxu1 %v6162_v43  ;;  %v6327_v43 = vld [vmem:[#allocation8 + $0x27c] sm:$0xf0] }
 0x1a9   :  { %4527 = vmatpush.bf16.msra.mxu2 %v6258_v19  ;;  %v6330_v56 = vor.u32 %v7529_v50, %v6327_v43  ;;  %v6018_v19 = vor.u32 %v7451_v34, %v6015_v37  ;;  %4462 = vmatmul.bf16.vlgmr.msrb.gmra.mxu1 %v8189_v61  ;;  %v2305_v34 = vpop.f32.mrf.mxu3  ;;  %v7553_v50 = vld [vmem:[#allocation8 + $0x334] sm:$0xf]  ;;  %v6423_v43 = vld [vmem:[#allocation8 + $0x33c] sm:$0xf0] }
 0x1aa   :  { %4541 = vmatpush.bf16.msra.mxu3 %v6354_v54  ;;  %v6303_v54 = vld [vmem:[#allocation8 + $0x24c] sm:$0xf0] }
 0x1ab   :  { %4500 = vmatpush.bf16.msra.mxu0 %v6054_v10  ;;  %v6582_v10 = vor.u32 %v7592_v49, %v6579_v57  ;;  %v7577_v49 = vld [vmem:[#allocation8 + $0x3f4] sm:$0xf]  ;;  %v6519_v57 = vld [vmem:[#allocation8 + $0x3fc] sm:$0xf0] }
 0x1ac   :  { %4514 = vmatpush.bf16.msra.mxu1 %v6150_v60  ;;  %v7565_v60 = vld [vmem:[#allocation8 + $0x394] sm:$0xf] }
 0x1ad   :  { %4528 = vmatpush.bf16.msra.mxu2 %v6246_v25  ;;  %v7523_v25 = vld [vmem:[#allocation8 + $0x244] sm:$0xf]  ;;  %v6474_v17 = vor.u32 %v7565_v60, %v6471_v2  ;;  %v6411_v60 = vld [vmem:[#allocation8 + $0x324] sm:$0xf0]  ;;  %v7574_v2 = vld [vmem:[#allocation8 + $0x3dc] sm:$0xf] }
 0x1ae   :  { %4542 = vmatpush.bf16.msra.mxu3 %v6342_v26  ;;  %v6306_v24 = vor.u32 %v7523_v25, %v6303_v54  ;;  %v6450_v26 = vor.u32 %v7559_v42, %v6447_v22  ;;  %v6414_v25 = vor.u32 %v7550_v58, %v6411_v60  ;;  %v6510_v54 = vor.u32 %v7574_v2, %v6507_v7  ;;  %v7688_v42 = vld [vmem:[#allocation8 + $0x76c] sm:$0xf]  ;;  %v6963_v22 = vld [vmem:[#allocation8 + $0x774] sm:$0xf0]  ;;  %v7682_v58 = vld [vmem:[#allocation8 + $0x73c] sm:$0xf] }
 0x1af   :  { %4501 = vmatpush.bf16.msra.mxu0 %v6042_v38  ;;  %v7586_v38 = vld [vmem:[#allocation8 + $0x43c] sm:$0xf]  ;;  %v6966_v41 = vor.u32 %v7688_v42, %v6963_v22  ;;  %v7607_v60 = vld [vmem:[#allocation8 + $0x4e4] sm:$0xf]  ;;  %v6639_v2 = vld [vmem:[#allocation8 + $0x4ec] sm:$0xf0] }
 0x1b0   :  { %4515 = vmatpush.bf16.msra.mxu1 %v6138_v5  ;;  %v6555_v5 = vld [vmem:[#allocation8 + $0x444] sm:$0xf0]  ;;  %v7637_v7 = vld [vmem:[#allocation8 + $0x5d4] sm:$0xf]  ;;  %v6819_v42 = vld [vmem:[#allocation8 + $0x654] sm:$0xf0] }
 0x1b1   :  { %4529 = vmatpush.bf16.msra.mxu2 %v6234_v53  ;;  %v6558_v11 = vor.u32 %v7586_v38, %v6555_v5  ;;  %v2291_v53 = vpop.f32.mrf.mxu2  ;;  %v6495_v38 = vld [vmem:[#allocation8 + $0x3cc] sm:$0xf0]  ;;  %v7664_v5 = vld [vmem:[#allocation8 + $0x6ac] sm:$0xf] }
 0x1b2   :  { %4543 = vmatpush.bf16.msra.mxu3 %v6330_v56  ;;  %v2292_v12 = vadd.f32 %v2291_v53, %v406_v47  ;;  %v6426_v56 = vor.u32 %v7553_v50, %v6423_v43  ;;  %v7610_v50 = vld [vmem:[#allocation8 + $0x4fc] sm:$0xf]  ;;  %v6651_v43 = vld [vmem:[#allocation8 + $0x504] sm:$0xf0]  ;;  %v7676_v22 = vld [vmem:[#allocation8 + $0x70c] sm:$0xf] }
 0x1b3   :  { %4502 = vmatpush.bf16.msra.mxu0 %v6030_v35  ;;  %v6531_v35 = vld [vmem:[#allocation8 + $0x414] sm:$0xf0] }
 0x1b4   :  { %4516 = vmatpush.bf16.msra.mxu1 %v6126_v55  ;;  %v2290_v55 = vadd.f32 %v2289_v29, %v406_v47  ;;  %v6534_v45 = vor.u32 %v7580_v0, %v6531_v35  ;;  %v2306_v36 = vadd.f32 %v2305_v34, %v2292_v12  ;;  %v6663_v47 = vld [vmem:[#allocation8 + $0x51c] sm:$0xf0]  ;;  %v7661_v0 = vld [vmem:[#allocation8 + $0x694] sm:$0xf] }
 0x1b5   :  { %4530 = vmatpush.bf16.msra.mxu2 %v6222_v59  ;;  %v7685_v12 = vld [vmem:[#allocation8 + $0x754] sm:$0xf] }
 0x1b6   :  { %4544 = vmatpush.bf16.msra.mxu3 %v6318_v52  ;;  %v2304_v59 = vadd.f32 %v2303_v28, %v2290_v55  ;;  %v6666_v55 = vor.u32 %v7613_v23, %v6663_v47 }
 0x1b7   :  { %4503 = vmatpush.bf16.msra.mxu0 %v6018_v19  ;;  %v2317_v37 = vpop.f32.mrf.mxu0 }
 0x1b8   :  { %4517 = vmatpush.bf16.msra.mxu1 %v6114_v13  ;;  %v2331_v44 = vpop.f32.mrf.mxu1  ;;  %v2318_v62 = vadd.f32 %v2317_v37, %v2304_v59  ;;  %v6522_v13 = vor.u32 %v7577_v49, %v6519_v57  ;;  %v6771_v49 = vld [vmem:[#allocation8 + $0x5f4] sm:$0xf0] }
 0x1b9   :  { %4531 = vmatpush.bf16.msra.mxu2 %v6210_v15  ;;  %v2332_v4 = vadd.f32 %v2331_v44, %v407_v51  ;;  %v6675_v15 = vld [vmem:[#allocation8 + $0x534] sm:$0xf0]  ;;  %v6855_v44 = vld [vmem:[#allocation8 + $0x69c] sm:$0xf0] }
 0x1ba   :  { %4504 = vmatmul.bf16.vlgmr.msra.gmra.mxu0 %v8119_v14  ;;  %4545 = vmatpush.bf16.msra.mxu3 %v6306_v24  ;;  %v2374_v52 = vmax.f32 %v2318_v62, 0.0  ;;  %v7658_v62 = vld [vmem:[#allocation8 + $0x67c] sm:$0xf] }
 0x1bb   :  { %4552 = vmatpush.bf16.msrb.mxu0 %v6486_v6  ;;  %4518 = vmatmul.bf16.vlgmr.msra.gmra.mxu1 %v8121_v32 }
 0x1bc   :  { %4566 = vmatpush.bf16.msrb.mxu1 %v6582_v10 }
 0x1bf   :  { %4553 = vmatpush.bf16.msrb.mxu0 %v6474_v17  ;;  %v2345_v19 = vpop.f32.mrf.mxu2  ;;  %v2319_v10 = vpop.f32.mrf.mxu0  ;;  %v7547_v17 = vld [vmem:[#allocation8 + $0x304] sm:$0xf] }
 0x1c0   :  { %4567 = vmatpush.bf16.msrb.mxu1 %v6570_v18  ;;  %v2320_v1 = vadd.f32 %v2319_v10, %v2306_v36  ;;  %v2333_v28 = vpop.f32.mrf.mxu1  ;;  %v6399_v18 = vld [vmem:[#allocation8 + $0x30c] sm:$0xf0]  ;;  %v2346_v3 = vadd.f32 %v2345_v19, %v2332_v4  ;;  %v6654_v19 = vor.u32 %v7610_v50, %v6651_v43  ;;  %v6939_v4 = vld [vmem:[#allocation8 + $0x744] sm:$0xf0]  ;;  %v7628_v50 = vld [vmem:[#allocation8 + $0x58c] sm:$0xf] }
 0x1c1   :  { %v2359_v6 = vpop.f32.mrf.mxu3  ;;  %v2334_v48 = vadd.f32 %v2333_v28, %v407_v51  ;;  %v7640_v51 = vld [vmem:[#allocation8 + $0x5ec] sm:$0xf]  ;;  %v6831_v28 = vld [vmem:[#allocation8 + $0x66c] sm:$0xf0]  ;;  %v6723_v43 = vld [vmem:[#allocation8 + $0x594] sm:$0xf0] }
 0x1c2   :  { %v2386_v29 = vmax.f32 %v2320_v1, 0.0  ;;  %v2360_v31 = vadd.f32 %v2359_v6, %v2346_v3  ;;  %v6774_v10 = vor.u32 %v7640_v51, %v6771_v49  ;;  %v6759_v1 = vld [vmem:[#allocation8 + $0x5dc] sm:$0xf0]  ;;  %v6627_v3 = vld [vmem:[#allocation8 + $0x4d4] sm:$0xf0] }
 0x1c3   :  { %4554 = vmatpush.bf16.msrb.mxu0 %v6462_v39  ;;  %v6678_v39 = vor.u32 %v7616_v8, %v6675_v15  ;;  %v6942_v15 = vor.u32 %v7682_v58, %v6939_v4  ;;  %v6591_v58 = vld [vmem:[#allocation8 + $0x48c] sm:$0xf0]  ;;  %v7625_v4 = vld [vmem:[#allocation8 + $0x574] sm:$0xf] }
 0x1c4   :  { %4568 = vmatpush.bf16.msrb.mxu1 %v6558_v11  ;;  %v8196_v24 = vpack.c.bf16 %v2386_v29, %v2374_v52  ;;  %v6867_v11 = vld [vmem:[#allocation8 + $0x6b4] sm:$0xf0]  ;;  %v2375_v57 = vmax.f32 %v2360_v31, 0.0  ;;  %v7655_v52 = vld [vmem:[#allocation8 + $0x664] sm:$0xf]  ;;  %v6642_v29 = vor.u32 %v7607_v60, %v6639_v2 }
 0x1c5   :  { %v6870_v37 = vor.u32 %v7664_v5, %v6867_v11  ;;  %v6834_v5 = vor.u32 %v7655_v52, %v6831_v28  ;;  %v7652_v11 = vld [vmem:[#allocation8 + $0x64c] sm:$0xf]  ;;  %v6735_v31 = vld [vmem:[#allocation8 + $0x5ac] sm:$0xf0]  ;;  %v7667_v52 = vld [vmem:[#allocation8 + $0x6c4] sm:$0xf] }
 0x1c6   :  { %4476 = vmatmul.bf16.vlgmr.msrb.gmra.mxu2 %v8196_v24 }
 0x1c7   :  { %4555 = vmatpush.bf16.msrb.mxu0 %v6450_v26  ;;  %v2347_v53 = vpop.f32.mrf.mxu2  ;;  %v6402_v26 = vor.u32 %v7547_v17, %v6399_v18  ;;  %4580 = vmatpush.bf16.msrb.mxu2 %v6678_v39  ;;  %v6762_v17 = vor.u32 %v7637_v7, %v6759_v1  ;;  %v7604_v18 = vld [vmem:[#allocation8 + $0x4cc] sm:$0xf]  ;;  %v7059_v1 = vld [vmem:[#allocation8 + $0x834] sm:$0xf0] }
 0x1c8   :  { %4569 = vmatpush.bf16.msrb.mxu1 %v6546_v30  ;;  %v6498_v30 = vor.u32 %v7571_v63, %v6495_v38  ;;  %v2348_v34 = vadd.f32 %v2347_v53, %v2334_v48  ;;  %v7634_v63 = vld [vmem:[#allocation8 + $0x5bc] sm:$0xf]  ;;  %v6747_v38 = vld [vmem:[#allocation8 + $0x5c4] sm:$0xf0]  ;;  %v6915_v48 = vld [vmem:[#allocation8 + $0x714] sm:$0xf0]  ;;  %v6630_v23 = vor.u32 %v7604_v18, %v6627_v3 }
 0x1c9   :  { %v2361_v35 = vpop.f32.mrf.mxu3  ;;  %v6750_v47 = vor.u32 %v7634_v63, %v6747_v38  ;;  %v7601_v53 = vld [vmem:[#allocation8 + $0x4b4] sm:$0xf]  ;;  %v7712_v7 = vld [vmem:[#allocation8 + $0x82c] sm:$0xf]  ;;  %v7474_v18 = vld [vmem:[#allocation8 + $0xb8] sm:$0xf0] }
 0x1ca   :  { %v7062_v3 = vor.u32 %v7712_v7, %v7059_v1  ;;  %v6699_v63 = vld [vmem:[#allocation8 + $0x564] sm:$0xf0]  ;;  %v6201_v38 = vld [vmem:[#allocation8 + $0x170] sm:$0xf]  ;;  %v7489_v1 = vld [vmem:[#allocation8 + $0x130] sm:$0xf0] }
 0x1cb   :  { %4556 = vmatpush.bf16.msrb.mxu0 %v6438_v46  ;;  %v6951_v46 = vld [vmem:[#allocation8 + $0x75c] sm:$0xf0]  ;;  %4581 = vmatpush.bf16.msrb.mxu2 %v6666_v55  ;;  %v6165_v7 = vld [vmem:[#allocation8 + $0x128] sm:$0xf] }
 0x1cc   :  { %4570 = vmatpush.bf16.msrb.mxu1 %v6534_v45  ;;  %v2362_v45 = vadd.f32 %v2361_v35, %v2348_v34  ;;  %v6954_v36 = vor.u32 %v7685_v12, %v6951_v46  ;;  %v6822_v34 = vor.u32 %v7652_v11, %v6819_v42  ;;  %v7673_v35 = vld [vmem:[#allocation8 + $0x6f4] sm:$0xf]  ;;  %v6903_v55 = vld [vmem:[#allocation8 + $0x6fc] sm:$0xf0]  ;;  %v7598_v46 = vld [vmem:[#allocation8 + $0x49c] sm:$0xf] }
 0x1cd   :  { %v6906_v49 = vor.u32 %v7673_v35, %v6903_v55  ;;  %v7709_v42 = vld [vmem:[#allocation8 + $0x814] sm:$0xf]  ;;  %v7035_v35 = vld [vmem:[#allocation8 + $0x804] sm:$0xf0]  ;;  %v7736_v55 = vld [vmem:[#allocation8 + $0x8ec] sm:$0xf] }
 0x1ce   :  { %v2387_v59 = vmax.f32 %v2362_v45, 0.0  ;;  %v6603_v45 = vld [vmem:[#allocation8 + $0x4a4] sm:$0xf0] }
 0x1cf   :  { %4557 = vmatpush.bf16.msrb.mxu0 %v6426_v56  ;;  %v6858_v56 = vor.u32 %v7661_v0, %v6855_v44  ;;  %4582 = vmatpush.bf16.msrb.mxu2 %v6654_v19  ;;  %v6807_v0 = vld [vmem:[#allocation8 + $0x63c] sm:$0xf0]  ;;  %v6726_v19 = vor.u32 %v7628_v50, %v6723_v43  ;;  %v7468_v43 = vld [vmem:[#allocation8 + $0x88] sm:$0xf0] }
 0x1d0   :  { %4571 = vmatpush.bf16.msrb.mxu1 %v6522_v13  ;;  %v6843_v13 = vld [vmem:[#allocation8 + $0x684] sm:$0xf0]  ;;  %v8199_v6 = vpack.c.bf16 %v2387_v59, %v2375_v57  ;;  %v7646_v57 = vld [vmem:[#allocation8 + $0x61c] sm:$0xf]  ;;  %v6081_v50 = vld [vmem:[#allocation8 + $0x80] sm:$0xf] }
 0x1d1   :  { %v6846_v8 = vor.u32 %v7658_v62, %v6843_v13  ;;  %v6795_v59 = vld [vmem:[#allocation8 + $0x624] sm:$0xf0]  ;;  %v6606_v62 = vor.u32 %v7598_v46, %v6603_v45  ;;  %v7595_v13 = vld [vmem:[#allocation8 + $0x484] sm:$0xf] }
 0x1d2   :  { %4490 = vmatmul.bf16.vlgmr.msrb.gmra.mxu3 %v8199_v6  ;;  %v6798_v60 = vor.u32 %v7646_v57, %v6795_v59  ;;  %v6594_v28 = vor.u32 %v7595_v13, %v6591_v58  ;;  %v6177_v57 = vld [vmem:[#allocation8 + $0x140] sm:$0xf]  ;;  %v7492_v59 = vld [vmem:[#allocation8 + $0x148] sm:$0xf0]  ;;  %v6082_v13 = vor.u32 %v7468_v43, %v6081_v50 }
 0x1d3   :  { %4558 = vmatpush.bf16.msrb.mxu0 %v6414_v25  ;;  %v7679_v25 = vld [vmem:[#allocation8 + $0x724] sm:$0xf]  ;;  %4594 = vmatpush.bf16.msrb.mxu3 %v6774_v10  ;;  %v6711_v10 = vld [vmem:[#allocation8 + $0x57c] sm:$0xf0]  ;;  %v6178_v58 = vor.u32 %v7492_v59, %v6177_v57  ;;  %v7480_v43 = vld [vmem:[#allocation8 + $0xe8] sm:$0xf0] }
 0x1d4   :  { %4572 = vmatpush.bf16.msrb.mxu1 %v6510_v54  ;;  %v6927_v54 = vld [vmem:[#allocation8 + $0x72c] sm:$0xf0]  ;;  %4583 = vmatpush.bf16.msrb.mxu2 %v6642_v29  ;;  %v6129_v50 = vld [vmem:[#allocation8 + $0xe0] sm:$0xf]  ;;  %v7721_v57 = vld [vmem:[#allocation8 + $0x874] sm:$0xf] }
 0x1d5   :  { %v6930_v39 = vor.u32 %v7679_v25, %v6927_v54  ;;  %v6879_v29 = vld [vmem:[#allocation8 + $0x6cc] sm:$0xf0]  ;;  %v6714_v25 = vor.u32 %v7625_v4, %v6711_v10  ;;  %v7622_v54 = vld [vmem:[#allocation8 + $0x55c] sm:$0xf]  ;;  %v6069_v4 = vld [vmem:[#allocation8 + $0x68] sm:$0xf] }
 0x1d6   :  { %4532 = vmatmul.bf16.vlgmr.msra.gmra.mxu2 %v8123_v33  ;;  %v6882_v11 = vor.u32 %v7667_v52, %v6879_v29  ;;  %v7465_v10 = vld [vmem:[#allocation8 + $0x70] sm:$0xf0]  ;;  %v7730_v52 = vld [vmem:[#allocation8 + $0x8bc] sm:$0xf]  ;;  %v7131_v29 = vld [vmem:[#allocation8 + $0x8c4] sm:$0xf0] }
 0x1d7   :  { %4559 = vmatpush.bf16.msrb.mxu0 %v6402_v26  ;;  %4595 = vmatpush.bf16.msrb.mxu3 %v6762_v17  ;;  %v6615_v26 = vld [vmem:[#allocation8 + $0x4bc] sm:$0xf0]  ;;  %v6105_v17 = vld [vmem:[#allocation8 + $0xb0] sm:$0xf] }
 0x1d8   :  { %4573 = vmatpush.bf16.msrb.mxu1 %v6498_v30  ;;  %v7631_v30 = vld [vmem:[#allocation8 + $0x5a4] sm:$0xf]  ;;  %4584 = vmatpush.bf16.msrb.mxu2 %v6630_v23  ;;  %v6618_v44 = vor.u32 %v7601_v53, %v6615_v26  ;;  %v6687_v26 = vld [vmem:[#allocation8 + $0x54c] sm:$0xf0]  ;;  %v7095_v59 = vld [vmem:[#allocation8 + $0x87c] sm:$0xf0] }
 0x1d9   :  { %v6738_v12 = vor.u32 %v7631_v30, %v6735_v31  ;;  %v7619_v23 = vld [vmem:[#allocation8 + $0x544] sm:$0xf]  ;;  %v6093_v30 = vld [vmem:[#allocation8 + $0x98] sm:$0xf] }
 0x1da   :  { %4560 = vmatmul.bf16.vlgmr.msrb.gmra.mxu0 %v8170_v40  ;;  %v7471_v31 = vld [vmem:[#allocation8 + $0xa0] sm:$0xf0]  ;;  %v6690_v46 = vor.u32 %v7619_v23, %v6687_v26  ;;  %v6045_v23 = vld [vmem:[#allocation8 + $0x38] sm:$0xf] }
 0x1db   :  { %4608 = vmatpush.bf16.msra.mxu0 %v6870_v37  ;;  %4574 = vmatmul.bf16.vlgmr.msrb.gmra.mxu1 %v8172_v20  ;;  %v6918_v37 = vor.u32 %v7676_v22, %v6915_v48  ;;  %v7047_v22 = vld [vmem:[#allocation8 + $0x81c] sm:$0xf0]  ;;  %v6106_v48 = vor.u32 %v7474_v18, %v6105_v17  ;;  %v7462_v17 = vld [vmem:[#allocation8 + $0x58] sm:$0xf0] }
 0x1dc   :  { %4622 = vmatpush.bf16.msra.mxu1 %v6966_v41  ;;  %v7649_v41 = vld [vmem:[#allocation8 + $0x634] sm:$0xf]  ;;  %4596 = vmatpush.bf16.msrb.mxu3 %v6750_v47  ;;  %v6702_v47 = vor.u32 %v7622_v54, %v6699_v63  ;;  %v6057_v54 = vld [vmem:[#allocation8 + $0x50] sm:$0xf] }
 0x1dd   :  { %v6810_v51 = vor.u32 %v7649_v41, %v6807_v0  ;;  %4585 = vmatpush.bf16.msrb.mxu2 %v6618_v44  ;;  %v7495_v41 = vld [vmem:[#allocation8 + $0x160] sm:$0xf0]  ;;  %v7706_v0 = vld [vmem:[#allocation8 + $0x7fc] sm:$0xf]  ;;  %v7155_v44 = vld [vmem:[#allocation8 + $0x8f4] sm:$0xf0] }
 0x1de   :  { %v6153_v63 = vld [vmem:[#allocation8 + $0x110] sm:$0xf] }
 0x1df   :  { %4609 = vmatpush.bf16.msra.mxu0 %v6858_v56  ;;  %v7670_v56 = vld [vmem:[#allocation8 + $0x6dc] sm:$0xf] }
 0x1e0   :  { %4623 = vmatpush.bf16.msra.mxu1 %v6954_v36  ;;  %v6891_v36 = vld [vmem:[#allocation8 + $0x6e4] sm:$0xf0]  ;;  %4597 = vmatpush.bf16.msrb.mxu3 %v6738_v12  ;;  %v6094_v12 = vor.u32 %v7471_v31, %v6093_v30  ;;  %v6141_v30 = vld [vmem:[#allocation8 + $0xf8] sm:$0xf]  ;;  %v7483_v31 = vld [vmem:[#allocation8 + $0x100] sm:$0xf0] }
 0x1e1   :  { %v6894_v2 = vor.u32 %v7670_v56, %v6891_v36  ;;  %4586 = vmatpush.bf16.msrb.mxu2 %v6606_v62  ;;  %v7703_v56 = vld [vmem:[#allocation8 + $0x7e4] sm:$0xf]  ;;  %v7023_v36 = vld [vmem:[#allocation8 + $0x7ec] sm:$0xf0]  ;;  %v7733_v62 = vld [vmem:[#allocation8 + $0x8d4] sm:$0xf] }
 0x1e2   :  { %4546 = vmatmul.bf16.vlgmr.msra.gmra.mxu3 %v8125_v27 }
 0x1e3   :  { %4610 = vmatpush.bf16.msra.mxu0 %v6846_v8  ;;  %v7643_v8 = vld [vmem:[#allocation8 + $0x604] sm:$0xf] }
 0x1e4   :  { %4624 = vmatpush.bf16.msra.mxu1 %v6942_v15  ;;  %v6783_v15 = vld [vmem:[#allocation8 + $0x60c] sm:$0xf0]  ;;  %4598 = vmatpush.bf16.msrb.mxu3 %v6726_v19  ;;  %v7143_v19 = vld [vmem:[#allocation8 + $0x8dc] sm:$0xf0] }
 0x1e5   :  { %4587 = vmatpush.bf16.msrb.mxu2 %v6594_v28  ;;  %v6070_v28 = vor.u32 %v7465_v10, %v6069_v4  ;;  %v6117_v4 = vld [vmem:[#allocation8 + $0xc8] sm:$0xf] }
 0x1e7   :  { %4611 = vmatpush.bf16.msra.mxu0 %v6834_v5  ;;  %v7498_v5 = vld [vmem:[#allocation8 + $0x178] sm:$0xf0] }
 0x1e8   :  { %4625 = vmatpush.bf16.msra.mxu1 %v6930_v39  ;;  %v6786_v39 = vor.u32 %v7643_v8, %v6783_v15  ;;  %4599 = vmatpush.bf16.msrb.mxu3 %v6714_v25  ;;  %v6202_v53 = vor.u32 %v7498_v5, %v6201_v38  ;;  %v7700_v8 = vld [vmem:[#allocation8 + $0x7cc] sm:$0xf]  ;;  %v7011_v15 = vld [vmem:[#allocation8 + $0x7d4] sm:$0xf0]  ;;  %v6166_v25 = vor.u32 %v7489_v1, %v6165_v7  ;;  %v7486_v38 = vld [vmem:[#allocation8 + $0x118] sm:$0xf0] }
 0x1e9   :  { %4636 = vmatpush.bf16.msra.mxu2 %v7062_v3  ;;  %v7014_v18 = vor.u32 %v7700_v8, %v7011_v15  ;;  %v7134_v3 = vor.u32 %v7730_v52, %v7131_v29  ;;  %v7697_v5 = vld [vmem:[#allocation8 + $0x7b4] sm:$0xf]  ;;  %v7718_v7 = vld [vmem:[#allocation8 + $0x85c] sm:$0xf]  ;;  %v7083_v1 = vld [vmem:[#allocation8 + $0x864] sm:$0xf0] }
 0x1ea   :  { %4588 = vmatmul.bf16.vlgmr.msrb.gmra.mxu2 %v8174_v16  ;;  %v6489_v15 = vld [vmem:[#allocation8 + $0x3b0] sm:$0xf]  ;;  %v7570_v52 = vld [vmem:[#allocation8 + $0x3b8] sm:$0xf0] }
 0x1eb   :  { %4612 = vmatpush.bf16.msra.mxu0 %v6822_v34  ;;  %v7050_v34 = vor.u32 %v7709_v42, %v7047_v22  ;;  %v7119_v42 = vld [vmem:[#allocation8 + $0x8ac] sm:$0xf0]  ;;  %v6058_v22 = vor.u32 %v7462_v17, %v6057_v54  ;;  %v6285_v54 = vld [vmem:[#allocation8 + $0x218] sm:$0xf]  ;;  %v7519_v17 = vld [vmem:[#allocation8 + $0x220] sm:$0xf0] }
 0x1ec   :  { %4626 = vmatpush.bf16.msra.mxu1 %v6918_v37  ;;  %v6189_v37 = vld [vmem:[#allocation8 + $0x158] sm:$0xf]  ;;  %4600 = vmatpush.bf16.msrb.mxu3 %v6702_v47  ;;  %v7459_v47 = vld [vmem:[#allocation8 + $0x40] sm:$0xf0]  ;;  %v6585_v29 = vld [vmem:[#allocation8 + $0x470] sm:$0xf] }
 0x1ed   :  { %v6190_v45 = vor.u32 %v7495_v41, %v6189_v37  ;;  %4637 = vmatpush.bf16.msra.mxu2 %v7050_v34  ;;  %v7694_v34 = vld [vmem:[#allocation8 + $0x79c] sm:$0xf]  ;;  %v6987_v37 = vld [vmem:[#allocation8 + $0x7a4] sm:$0xf0]  ;;  %v7724_v41 = vld [vmem:[#allocation8 + $0x88c] sm:$0xf] }
 0x1ef   :  { %4613 = vmatpush.bf16.msra.mxu0 %v6810_v51  ;;  %v7038_v51 = vor.u32 %v7706_v0, %v7035_v35  ;;  %v7107_v0 = vld [vmem:[#allocation8 + $0x894] sm:$0xf0]  ;;  %v6046_v35 = vor.u32 %v7459_v47, %v6045_v23  ;;  %v7591_v23 = vld [vmem:[#allocation8 + $0x460] sm:$0xf0]  ;;  %v6273_v47 = vld [vmem:[#allocation8 + $0x200] sm:$0xf] }
 0x1f0   :  { %4627 = vmatpush.bf16.msra.mxu1 %v6906_v49  ;;  %v7158_v49 = vor.u32 %v7736_v55, %v7155_v44  ;;  %4601 = vmatpush.bf16.msrb.mxu3 %v6690_v46  ;;  %v6142_v55 = vor.u32 %v7483_v31, %v6141_v30  ;;  %v6033_v44 = vld [vmem:[#allocation8 + $0x20] sm:$0xf]  ;;  %v6990_v46 = vor.u32 %v7694_v34, %v6987_v37  ;;  %v7546_v30 = vld [vmem:[#allocation8 + $0x2f8] sm:$0xf0] }
 0x1f1   :  { %4638 = vmatpush.bf16.msra.mxu2 %v7038_v51  ;;  %v7691_v51 = vld [vmem:[#allocation8 + $0x784] sm:$0xf] }
 0x1f3   :  { %4614 = vmatpush.bf16.msra.mxu0 %v6798_v60  ;;  %v7026_v60 = vor.u32 %v7703_v56, %v7023_v36  ;;  %4602 = vmatmul.bf16.vlgmr.msrb.gmra.mxu3 %v8177_v21  ;;  %v6297_v36 = vld [vmem:[#allocation8 + $0x230] sm:$0xf] }
 0x1f4   :  { %4628 = vmatpush.bf16.msra.mxu1 %v6894_v2  ;;  %4650 = vmatpush.bf16.msra.mxu3 %v7158_v49  ;;  %v7146_v2 = vor.u32 %v7733_v62, %v7143_v19  ;;  %v6975_v49 = vld [vmem:[#allocation8 + $0x78c] sm:$0xf0]  ;;  %v7522_v62 = vld [vmem:[#allocation8 + $0x238] sm:$0xf0]  ;;  %v6130_v19 = vor.u32 %v7480_v43, %v6129_v50  ;;  %v6381_v50 = vld [vmem:[#allocation8 + $0x2d8] sm:$0xf] }
 0x1f5   :  { %4639 = vmatpush.bf16.msra.mxu2 %v7026_v60  ;;  %v6978_v10 = vor.u32 %v7691_v51, %v6975_v49  ;;  %v7098_v60 = vor.u32 %v7721_v57, %v7095_v59  ;;  %v6298_v8 = vor.u32 %v7522_v62, %v6297_v36  ;;  %v7543_v43 = vld [vmem:[#allocation8 + $0x2e0] sm:$0xf0]  ;;  %v6453_v59 = vld [vmem:[#allocation8 + $0x368] sm:$0xf]  ;;  %v7585_v62 = vld [vmem:[#allocation8 + $0x430] sm:$0xf0] }
 0x1f6   :  { %v6549_v36 = vld [vmem:[#allocation8 + $0x428] sm:$0xf] }
 0x1f7   :  { %4615 = vmatpush.bf16.msra.mxu0 %v6786_v39  ;;  %v6999_v39 = vld [vmem:[#allocation8 + $0x7bc] sm:$0xf0] }
 0x1f8   :  { %4629 = vmatpush.bf16.msra.mxu1 %v6882_v11  ;;  %4651 = vmatpush.bf16.msra.mxu3 %v7146_v2  ;;  %v7727_v11 = vld [vmem:[#allocation8 + $0x8a4] sm:$0xf]  ;;  %v7477_v2 = vld [vmem:[#allocation8 + $0xd0] sm:$0xf0] }
 0x1f9   :  { %4640 = vmatpush.bf16.msra.mxu2 %v7014_v18  ;;  %v7122_v26 = vor.u32 %v7727_v11, %v7119_v42  ;;  %v6118_v18 = vor.u32 %v7477_v2, %v6117_v4  ;;  %v6286_v11 = vor.u32 %v7519_v17, %v6285_v54  ;;  %v6477_v42 = vld [vmem:[#allocation8 + $0x398] sm:$0xf]  ;;  %v6441_v2 = vld [vmem:[#allocation8 + $0x350] sm:$0xf] }
 0x1fa   :  { %4616 = vmatmul.bf16.vlgmr.msra.gmra.mxu0 %v8185_v9 }
 0x1fb   :  { %4664 = vmatpush.bf16.msrb.mxu0 %v6106_v48  ;;  %4630 = vmatmul.bf16.vlgmr.msra.gmra.mxu1 %v8189_v61  ;;  %v6154_v48 = vor.u32 %v7486_v38, %v6153_v63  ;;  %v6490_v63 = vor.u32 %v7570_v52, %v6489_v15  ;;  %v7715_v38 = vld [vmem:[#allocation8 + $0x844] sm:$0xf]  ;;  %v7582_v15 = vld [vmem:[#allocation8 + $0x418] sm:$0xf0]  ;;  %v6237_v52 = vld [vmem:[#allocation8 + $0x1b8] sm:$0xf] }
 0x1fc   :  { %4678 = vmatpush.bf16.msrb.mxu1 %v6202_v53  ;;  %4652 = vmatpush.bf16.msra.mxu3 %v7134_v3  ;;  %v7002_v53 = vor.u32 %v7697_v5, %v6999_v39  ;;  %v7086_v3 = vor.u32 %v7718_v7, %v7083_v1  ;;  %v7071_v5 = vld [vmem:[#allocation8 + $0x84c] sm:$0xf0]  ;;  %v7558_v7 = vld [vmem:[#allocation8 + $0x358] sm:$0xf0] }
 0x1fd   :  { %v7074_v31 = vor.u32 %v7715_v38, %v7071_v5  ;;  %v6537_v1 = vld [vmem:[#allocation8 + $0x410] sm:$0xf]  ;;  %v6442_v54 = vor.u32 %v7558_v7, %v6441_v2  ;;  %v6525_v38 = vld [vmem:[#allocation8 + $0x3f8] sm:$0xf]  ;;  %v6309_v7 = vld [vmem:[#allocation8 + $0x248] sm:$0xf] }
 0x1fe   :  { %4641 = vmatpush.bf16.msra.mxu2 %v7002_v53  ;;  %v7516_v53 = vld [vmem:[#allocation8 + $0x208] sm:$0xf0]  ;;  %v6538_v17 = vor.u32 %v7582_v15, %v6537_v1  ;;  %v7525_v15 = vld [vmem:[#allocation8 + $0x250] sm:$0xf0] }
 0x1ff   :  { %4665 = vmatpush.bf16.msrb.mxu0 %v6094_v12  ;;  %v7456_v12 = vld [vmem:[#allocation8 + $0x28] sm:$0xf0] }
 0x200   :  { %4679 = vmatpush.bf16.msrb.mxu1 %v6190_v45  ;;  %4653 = vmatpush.bf16.msra.mxu3 %v7122_v26  ;;  %v7110_v45 = vor.u32 %v7724_v41, %v7107_v0  ;;  %v6034_v56 = vor.u32 %v7456_v12, %v6033_v44  ;;  %v6393_v26 = vld [vmem:[#allocation8 + $0x2f0] sm:$0xf]  ;;  %v6274_v41 = vor.u32 %v7516_v53, %v6273_v47  ;;  %v6465_v0 = vld [vmem:[#allocation8 + $0x380] sm:$0xf]  ;;  %v7588_v12 = vld [vmem:[#allocation8 + $0x448] sm:$0xf0] }
 0x201   :  { %v6394_v44 = vor.u32 %v7546_v30, %v6393_v26  ;;  %v6417_v47 = vld [vmem:[#allocation8 + $0x320] sm:$0xf]  ;;  %v7552_v30 = vld [vmem:[#allocation8 + $0x328] sm:$0xf0] }
 0x202   :  { %4642 = vmatpush.bf16.msra.mxu2 %v6990_v46  ;;  %v6261_v46 = vld [vmem:[#allocation8 + $0x1e8] sm:$0xf] }
 0x203   :  { %4666 = vmatpush.bf16.msrb.mxu0 %v6082_v13  ;;  %v6021_v13 = vld [vmem:[#allocation8 + $0x8] sm:$0xf] }
 0x204   :  { %4680 = vmatpush.bf16.msrb.mxu1 %v6178_v58  ;;  %v7453_v58 = vld [vmem:[#allocation8 + $0x10] sm:$0xf0]  ;;  %4654 = vmatpush.bf16.msra.mxu3 %v7110_v45 }
 0x205   :  { %v7513_v45 = vld [vmem:[#allocation8 + $0x1f0] sm:$0xf0] }
 0x206   :  { %4643 = vmatpush.bf16.msra.mxu2 %v6978_v10  ;;  %v6262_v57 = vor.u32 %v7513_v45, %v6261_v46  ;;  %v6550_v10 = vor.u32 %v7585_v62, %v6549_v36  ;;  %v6418_v46 = vor.u32 %v7552_v30, %v6417_v47  ;;  %v6405_v45 = vld [vmem:[#allocation8 + $0x308] sm:$0xf]  ;;  %v6321_v36 = vld [vmem:[#allocation8 + $0x260] sm:$0xf]  ;;  %v7666_v62 = vld [vmem:[#allocation8 + $0x6b8] sm:$0xf0] }
 0x207   :  { %4667 = vmatpush.bf16.msrb.mxu0 %v6070_v28  ;;  %v6022_v28 = vor.u32 %v7453_v58, %v6021_v13  ;;  %v6369_v13 = vld [vmem:[#allocation8 + $0x2c0] sm:$0xf]  ;;  %v7540_v58 = vld [vmem:[#allocation8 + $0x2c8] sm:$0xf0]  ;;  %v6765_v30 = vld [vmem:[#allocation8 + $0x5d8] sm:$0xf] }
 0x208   :  { %4681 = vmatpush.bf16.msrb.mxu1 %v6166_v25  ;;  %v7594_v25 = vld [vmem:[#allocation8 + $0x478] sm:$0xf0]  ;;  %4655 = vmatpush.bf16.msra.mxu3 %v7098_v60  ;;  %v7684_v47 = vld [vmem:[#allocation8 + $0x748] sm:$0xf0] }
 0x209   :  { %v6586_v39 = vor.u32 %v7594_v25, %v6585_v29  ;;  %4644 = vmatmul.bf16.vlgmr.msra.gmra.mxu2 %v8196_v24  ;;  %v7507_v29 = vld [vmem:[#allocation8 + $0x1c0] sm:$0xf0]  ;;  %v7537_v25 = vld [vmem:[#allocation8 + $0x2b0] sm:$0xf0] }
 0x20a   :  { %4692 = vmatpush.bf16.msrb.mxu2 %v6298_v8  ;;  %v6370_v8 = vor.u32 %v7540_v58, %v6369_v13  ;;  %v7690_v13 = vld [vmem:[#allocation8 + $0x778] sm:$0xf0] }
 0x20b   :  { %4668 = vmatpush.bf16.msrb.mxu0 %v6058_v22  ;;  %v7567_v22 = vld [vmem:[#allocation8 + $0x3a0] sm:$0xf0] }
 0x20c   :  { %4682 = vmatpush.bf16.msrb.mxu1 %v6154_v48  ;;  %v6573_v48 = vld [vmem:[#allocation8 + $0x458] sm:$0xf]  ;;  %4656 = vmatpush.bf16.msra.mxu3 %v7086_v3  ;;  %v6478_v34 = vor.u32 %v7567_v22, %v6477_v42  ;;  %v7504_v42 = vld [vmem:[#allocation8 + $0x1a8] sm:$0xf0]  ;;  %v6345_v22 = vld [vmem:[#allocation8 + $0x290] sm:$0xf] }
 0x20d   :  { %v6574_v37 = vor.u32 %v7591_v23, %v6573_v48  ;;  %v6429_v3 = vld [vmem:[#allocation8 + $0x338] sm:$0xf]  ;;  %v7534_v48 = vld [vmem:[#allocation8 + $0x298] sm:$0xf0] }
 0x20e   :  { %4693 = vmatpush.bf16.msrb.mxu2 %v6286_v11  ;;  %v6225_v11 = vld [vmem:[#allocation8 + $0x1a0] sm:$0xf] }
 0x20f   :  { %4669 = vmatpush.bf16.msrb.mxu0 %v6046_v35  ;;  %v7564_v35 = vld [vmem:[#allocation8 + $0x388] sm:$0xf0]  ;;  %v6226_v26 = vor.u32 %v7504_v42, %v6225_v11  ;;  %v6849_v11 = vld [vmem:[#allocation8 + $0x680] sm:$0xf] }
 0x210   :  { %4683 = vmatpush.bf16.msrb.mxu1 %v6142_v55  ;;  %v6561_v55 = vld [vmem:[#allocation8 + $0x440] sm:$0xf]  ;;  %4657 = vmatpush.bf16.msra.mxu3 %v7074_v31  ;;  %v6466_v51 = vor.u32 %v7564_v35, %v6465_v0  ;;  %v7501_v0 = vld [vmem:[#allocation8 + $0x190] sm:$0xf0]  ;;  %v6333_v35 = vld [vmem:[#allocation8 + $0x278] sm:$0xf] }
 0x211   :  { %v6562_v49 = vor.u32 %v7588_v12, %v6561_v55  ;;  %v6513_v31 = vld [vmem:[#allocation8 + $0x3e0] sm:$0xf]  ;;  %v7531_v55 = vld [vmem:[#allocation8 + $0x280] sm:$0xf0]  ;;  %v7618_v12 = vld [vmem:[#allocation8 + $0x538] sm:$0xf0] }
 0x212   :  { %4694 = vmatpush.bf16.msrb.mxu2 %v6274_v41  ;;  %v6213_v41 = vld [vmem:[#allocation8 + $0x188] sm:$0xf]  ;;  %v7660_v42 = vld [vmem:[#allocation8 + $0x688] sm:$0xf0] }
 0x213   :  { %4670 = vmatpush.bf16.msrb.mxu0 %v6034_v56  ;;  %v7561_v56 = vld [vmem:[#allocation8 + $0x370] sm:$0xf0]  ;;  %4658 = vmatmul.bf16.vlgmr.msra.gmra.mxu3 %v8199_v6 }
 0x214   :  { %4684 = vmatpush.bf16.msrb.mxu1 %v6130_v19  ;;  %4706 = vmatpush.bf16.msrb.mxu3 %v6394_v44  ;;  %v7510_v19 = vld [vmem:[#allocation8 + $0x1d8] sm:$0xf0]  ;;  %v6454_v4 = vor.u32 %v7561_v56, %v6453_v59  ;;  %v6681_v44 = vld [vmem:[#allocation8 + $0x530] sm:$0xf]  ;;  %v6334_v59 = vor.u32 %v7531_v55, %v6333_v35  ;;  %v7657_v35 = vld [vmem:[#allocation8 + $0x670] sm:$0xf0] }
 0x215   :  { %v6682_v56 = vor.u32 %v7618_v12, %v6681_v44  ;;  %v6933_v12 = vld [vmem:[#allocation8 + $0x728] sm:$0xf] }
 0x216   :  { %4695 = vmatpush.bf16.msrb.mxu2 %v6262_v57  ;;  %v7573_v57 = vld [vmem:[#allocation8 + $0x3d0] sm:$0xf0] }
 0x217   :  { %4671 = vmatpush.bf16.msrb.mxu0 %v6022_v28  ;;  %v6357_v28 = vld [vmem:[#allocation8 + $0x2a8] sm:$0xf] }
 0x218   :  { %4685 = vmatpush.bf16.msrb.mxu1 %v6118_v18  ;;  %v6238_v18 = vor.u32 %v7507_v29, %v6237_v52  ;;  %v6358_v5 = vor.u32 %v7537_v25, %v6357_v28  ;;  %v6861_v52 = vld [vmem:[#allocation8 + $0x698] sm:$0xf]  ;;  %v7663_v29 = vld [vmem:[#allocation8 + $0x6a0] sm:$0xf0] }
 0x219   :  { %v6957_v25 = vld [vmem:[#allocation8 + $0x758] sm:$0xf] }
 0x21a   :  { %4672 = vmatmul.bf16.vlgmr.msrb.gmra.mxu0 %v8119_v14  ;;  %v6382_v14 = vor.u32 %v7543_v43, %v6381_v50  ;;  %v6214_v43 = vor.u32 %v7501_v0, %v6213_v41  ;;  %v6837_v0 = vld [vmem:[#allocation8 + $0x668] sm:$0xf] }
 0x21b   :  { %4720 = vmatpush.bf16.msra.mxu0 %v6490_v63  ;;  %4686 = vmatmul.bf16.vlgmr.msrb.gmra.mxu1 %v8121_v32  ;;  %v6249_v32 = vld [vmem:[#allocation8 + $0x1d0] sm:$0xf]  ;;  %v7555_v63 = vld [vmem:[#allocation8 + $0x340] sm:$0xf0] }
 0x21c   :  { %4734 = vmatpush.bf16.msra.mxu1 %v6586_v39  ;;  %v6250_v60 = vor.u32 %v7510_v19, %v6249_v32  ;;  %4707 = vmatpush.bf16.msrb.mxu3 %v6382_v14  ;;  %v7579_v39 = vld [vmem:[#allocation8 + $0x400] sm:$0xf0]  ;;  %v6430_v23 = vor.u32 %v7555_v63, %v6429_v3  ;;  %v6873_v14 = vld [vmem:[#allocation8 + $0x6b0] sm:$0xf]  ;;  %v7528_v32 = vld [vmem:[#allocation8 + $0x268] sm:$0xf0] }
 0x21d   :  { %v6526_v53 = vor.u32 %v7579_v39, %v6525_v38  ;;  %v6969_v19 = vld [vmem:[#allocation8 + $0x770] sm:$0xf]  ;;  %v6874_v2 = vor.u32 %v7666_v62, %v6873_v14  ;;  %v6322_v1 = vor.u32 %v7528_v32, %v6321_v36  ;;  %v7642_v63 = vld [vmem:[#allocation8 + $0x5f8] sm:$0xf0]  ;;  %v6862_v38 = vor.u32 %v7663_v29, %v6861_v52 }
 0x21e   :  { %4696 = vmatpush.bf16.msrb.mxu2 %v6250_v60  ;;  %v6777_v3 = vld [vmem:[#allocation8 + $0x5f0] sm:$0xf]  ;;  %v7678_v32 = vld [vmem:[#allocation8 + $0x718] sm:$0xf0] }
 0x21f   :  { %4721 = vmatpush.bf16.msra.mxu0 %v6478_v34  ;;  %v7576_v34 = vld [vmem:[#allocation8 + $0x3e8] sm:$0xf0]  ;;  %v6921_v62 = vld [vmem:[#allocation8 + $0x710] sm:$0xf] }
 0x220   :  { %4735 = vmatpush.bf16.msra.mxu1 %v6574_v37  ;;  %4708 = vmatpush.bf16.msrb.mxu3 %v6370_v8  ;;  %v6346_v37 = vor.u32 %v7534_v48, %v6345_v22  ;;  %v6514_v50 = vor.u32 %v7576_v34, %v6513_v31  ;;  %v6970_v8 = vor.u32 %v7690_v13, %v6969_v19  ;;  %v8215_v22 = vpop.f32.mrf.mxu0  ;;  %v7639_v31 = vld [vmem:[#allocation8 + $0x5e0] sm:$0xf0]  ;;  %v8219_v34 = vpop.f32.mrf.mxu1  ;;  %v6621_v19 = vld [vmem:[#allocation8 + $0x4b8] sm:$0xf] }
 0x221   :  { %v6766_v44 = vor.u32 %v7639_v31, %v6765_v30  ;;  %v7603_v13 = vld [vmem:[#allocation8 + $0x4c0] sm:$0xf0]  ;;  %v6717_v30 = vld [vmem:[#allocation8 + $0x578] sm:$0xf] }
 0x222   :  { %4697 = vmatpush.bf16.msrb.mxu2 %v6238_v18  ;;  %v7612_v18 = vld [vmem:[#allocation8 + $0x508] sm:$0xf0]  ;;  %v6622_v52 = vor.u32 %v7603_v13, %v6621_v19  ;;  %v7627_v31 = vld [vmem:[#allocation8 + $0x580] sm:$0xf0] }
 0x223   :  { %4722 = vmatpush.bf16.msra.mxu0 %v6466_v51  ;;  %v7549_v51 = vld [vmem:[#allocation8 + $0x310] sm:$0xf0] }
 0x224   :  { %4736 = vmatpush.bf16.msra.mxu1 %v6562_v49  ;;  %4709 = vmatpush.bf16.msrb.mxu3 %v6358_v5  ;;  %v6501_v49 = vld [vmem:[#allocation8 + $0x3c8] sm:$0xf]  ;;  %v6406_v58 = vor.u32 %v7549_v51, %v6405_v45  ;;  %v6310_v5 = vor.u32 %v7525_v15, %v6309_v7  ;;  %v7606_v45 = vld [vmem:[#allocation8 + $0x4d8] sm:$0xf0]  ;;  %v6838_v51 = vor.u32 %v7657_v35, %v6837_v0  ;;  %v7065_v0 = vld [vmem:[#allocation8 + $0x830] sm:$0xf] }
 0x225   :  { %v6502_v60 = vor.u32 %v7573_v57, %v6501_v49  ;;  %v8224_v49 = vld [vmem:[#allocation10] sm:$0x7]  ;;  %v6922_v7 = vor.u32 %v7678_v32, %v6921_v62  ;;  %v7714_v35 = vld [vmem:[#allocation8 + $0x838] sm:$0xf0]  ;;  %v7053_v62 = vld [vmem:[#allocation8 + $0x818] sm:$0xf] }
 0x226   :  { %4698 = vmatpush.bf16.msrb.mxu2 %v6226_v26  ;;  %v7609_v26 = vld [vmem:[#allocation8 + $0x4f0] sm:$0xf0]  ;;  %v7711_v32 = vld [vmem:[#allocation8 + $0x820] sm:$0xf0] }
 0x227   :  { %4723 = vmatpush.bf16.msra.mxu0 %v6454_v4  ;;  %v6669_v4 = vld [vmem:[#allocation8 + $0x518] sm:$0xf] }
 0x228   :  { %4737 = vmatpush.bf16.msra.mxu1 %v6550_v10  ;;  %4710 = vmatpush.bf16.msrb.mxu3 %v6346_v37  ;;  %v7615_v10 = vld [vmem:[#allocation8 + $0x520] sm:$0xf0]  ;;  %v6850_v37 = vor.u32 %v7660_v42, %v6849_v11  ;;  %v8231_v15 = vpop.f32.mrf.mxu1  ;;  %v7648_v11 = vld [vmem:[#allocation8 + $0x628] sm:$0xf0] }
 0x229   :  { %v6670_v28 = vor.u32 %v7615_v10, %v6669_v4  ;;  %v7633_v4 = vld [vmem:[#allocation8 + $0x5b0] sm:$0xf0]  ;;  %v8226_v10 = vpop.f32.mrf.mxu3 }
 0x22a   :  { %4699 = vmatpush.bf16.msrb.mxu2 %v6214_v43  ;;  %v7636_v43 = vld [vmem:[#allocation8 + $0x5c8] sm:$0xf0] }
 0x22b   :  { %4724 = vmatpush.bf16.msra.mxu0 %v6442_v54  ;;  %v7687_v54 = vld [vmem:[#allocation8 + $0x760] sm:$0xf0] }
 0x22c   :  { %4738 = vmatpush.bf16.msra.mxu1 %v6538_v17  ;;  %4711 = vmatpush.bf16.msrb.mxu3 %v6334_v59  ;;  %v6657_v17 = vld [vmem:[#allocation8 + $0x500] sm:$0xf]  ;;  %v6958_v39 = vor.u32 %v7687_v54, %v6957_v25  ;;  %v6825_v59 = vld [vmem:[#allocation8 + $0x650] sm:$0xf]  ;;  %v7675_v25 = vld [vmem:[#allocation8 + $0x700] sm:$0xf0] }
 0x22d   :  { %4700 = vmatmul.bf16.vlgmr.msrb.gmra.mxu2 %v8123_v33  ;;  %v6658_v48 = vor.u32 %v7612_v18, %v6657_v17  ;;  %v6778_v33 = vor.u32 %v7642_v63, %v6777_v3  ;;  %v6609_v54 = vld [vmem:[#allocation8 + $0x4a0] sm:$0xf]  ;;  %v7600_v17 = vld [vmem:[#allocation8 + $0x4a8] sm:$0xf0]  ;;  %v6729_v18 = vld [vmem:[#allocation8 + $0x590] sm:$0xf] }
 0x22e   :  { %4748 = vmatpush.bf16.msra.mxu2 %v6682_v56  ;;  %v7654_v56 = vld [vmem:[#allocation8 + $0x658] sm:$0xf0]  ;;  %v6610_v42 = vor.u32 %v7600_v17, %v6609_v54 }
 0x22f   :  { %4725 = vmatpush.bf16.msra.mxu0 %v6430_v23  ;;  %v6945_v23 = vld [vmem:[#allocation8 + $0x740] sm:$0xf]  ;;  %v7630_v3 = vld [vmem:[#allocation8 + $0x598] sm:$0xf0] }
 0x230   :  { %4739 = vmatpush.bf16.msra.mxu1 %v6526_v53  ;;  %4712 = vmatpush.bf16.msrb.mxu3 %v6322_v1  ;;  %v6645_v53 = vld [vmem:[#allocation8 + $0x4e8] sm:$0xf]  ;;  %v6946_v41 = vor.u32 %v7684_v47, %v6945_v23  ;;  %v6813_v1 = vld [vmem:[#allocation8 + $0x638] sm:$0xf]  ;;  %v7672_v23 = vld [vmem:[#allocation8 + $0x6e8] sm:$0xf0] }
 0x231   :  { %v6646_v55 = vor.u32 %v7609_v26, %v6645_v53  ;;  %v6597_v47 = vld [vmem:[#allocation8 + $0x488] sm:$0xf]  ;;  %v7597_v26 = vld [vmem:[#allocation8 + $0x490] sm:$0xf0] }
 0x232   :  { %4749 = vmatpush.bf16.msra.mxu2 %v6670_v28  ;;  %v6909_v28 = vld [vmem:[#allocation8 + $0x6f8] sm:$0xf] }
 0x233   :  { %4726 = vmatpush.bf16.msra.mxu0 %v6418_v46  ;;  %v6633_v46 = vld [vmem:[#allocation8 + $0x4d0] sm:$0xf] }
 0x234   :  { %4740 = vmatpush.bf16.msra.mxu1 %v6514_v50  ;;  %4713 = vmatpush.bf16.msrb.mxu3 %v6310_v5  ;;  %v6753_v50 = vld [vmem:[#allocation8 + $0x5c0] sm:$0xf]  ;;  %v6634_v36 = vor.u32 %v7606_v45, %v6633_v46  ;;  %v6910_v5 = vor.u32 %v7675_v25, %v6909_v28  ;;  %v4407_v46 = vpop.f32.mrf.mxu1  ;;  %v6598_v45 = vor.u32 %v7597_v26, %v6597_v47 }
 0x235   :  { %v6754_v14 = vor.u32 %v7636_v43, %v6753_v50  ;;  %v6718_v50 = vor.u32 %v7627_v31, %v6717_v30  ;;  %v6885_v43 = vld [vmem:[#allocation8 + $0x6c8] sm:$0xf]  ;;  %v7137_v47 = vld [vmem:[#allocation8 + $0x8c0] sm:$0xf] }
 0x236   :  { %4750 = vmatpush.bf16.msra.mxu2 %v6658_v48  ;;  %v6730_v48 = vor.u32 %v7630_v3, %v6729_v18  ;;  %v7029_v3 = vld [vmem:[#allocation8 + $0x7e8] sm:$0xf] }
 0x237   :  { %4727 = vmatpush.bf16.msra.mxu0 %v6406_v58  ;;  %4714 = vmatmul.bf16.vlgmr.msrb.gmra.mxu3 %v8125_v27  ;;  %v6741_v58 = vld [vmem:[#allocation8 + $0x5a8] sm:$0xf]  ;;  %v8228_v27 = vpop.f32.mrf.mxu0 }
 0x238   :  { %4741 = vmatpush.bf16.msra.mxu1 %v6502_v60  ;;  %4762 = vmatpush.bf16.msra.mxu3 %v6778_v33  ;;  %v6826_v60 = vor.u32 %v7654_v56, %v6825_v59  ;;  %v6742_v29 = vor.u32 %v7633_v4, %v6741_v58  ;;  %v6897_v33 = vld [vmem:[#allocation8 + $0x6e0] sm:$0xf]  ;;  %v7624_v56 = vld [vmem:[#allocation8 + $0x568] sm:$0xf0] }
 0x239   :  { %v6705_v59 = vld [vmem:[#allocation8 + $0x560] sm:$0xf] }
 0x23a   :  { %4728 = vmatmul.bf16.vlgmr.msra.gmra.mxu0 %v8170_v40  ;;  %v8221_v40 = vpop.f32.mrf.mxu2  ;;  %4751 = vmatpush.bf16.msra.mxu2 %v6646_v55  ;;  %v6898_v55 = vor.u32 %v7672_v23, %v6897_v33  ;;  %v6706_v4 = vor.u32 %v7624_v56, %v6705_v59  ;;  %v7017_v33 = vld [vmem:[#allocation8 + $0x7d0] sm:$0xf]  ;;  %v7702_v23 = vld [vmem:[#allocation8 + $0x7d8] sm:$0xf0] }
 0x23b   :  { %4776 = vmatpush.bf16.msrb.mxu0 %v6874_v2  ;;  %4742 = vmatmul.bf16.vlgmr.msra.gmra.mxu1 %v8172_v20  ;;  %v7681_v20 = vld [vmem:[#allocation8 + $0x730] sm:$0xf0]  ;;  %v2786_v2 = vperm.slane %v8224_v49, 0  ;;  %v7018_v30 = vor.u32 %v7702_v23, %v7017_v33  ;;  %v2787_v33 = vperm.slane %v8224_v49, 1 }
 0x23c   :  { %4790 = vmatpush.bf16.msrb.mxu1 %v6970_v8  ;;  %v6934_v57 = vor.u32 %v7681_v20, %v6933_v12  ;;  %4763 = vmatpush.bf16.msra.mxu3 %v6766_v44  ;;  %v7651_v8 = vld [vmem:[#allocation8 + $0x640] sm:$0xf0]  ;;  %v6789_v44 = vld [vmem:[#allocation8 + $0x608] sm:$0xf]  ;;  %v7645_v12 = vld [vmem:[#allocation8 + $0x610] sm:$0xf0]  ;;  %v4381_v20 = vpop.f32.mrf.mxu3 }
 0x23d   :  { %v4338_v53 = vadd.f32 %v8215_v22, %v2786_v2  ;;  %v7669_v22 = vld [vmem:[#allocation8 + $0x6d0] sm:$0xf0]  ;;  %v4340_v58 = vadd.f32 %v8228_v27, %v2786_v2 }
 0x23e   :  { %4752 = vmatpush.bf16.msra.mxu2 %v6634_v36  ;;  %v6886_v13 = vor.u32 %v7669_v22, %v6885_v43  ;;  %v6993_v43 = vld [vmem:[#allocation8 + $0x7a0] sm:$0xf]  ;;  %v7696_v22 = vld [vmem:[#allocation8 + $0x7a8] sm:$0xf0] }
 0x23f   :  { %4777 = vmatpush.bf16.msrb.mxu0 %v6862_v38  ;;  %v6814_v38 = vor.u32 %v7651_v8, %v6813_v1  ;;  %v7041_v1 = vld [vmem:[#allocation8 + $0x800] sm:$0xf]  ;;  %v7708_v8 = vld [vmem:[#allocation8 + $0x808] sm:$0xf0]  ;;  %v4354_v28 = vadd.f32 %v8231_v15, %v4340_v58  ;;  %v7693_v58 = vld [vmem:[#allocation8 + $0x790] sm:$0xf0] }
 0x240   :  { %4791 = vmatpush.bf16.msrb.mxu1 %v6958_v39  ;;  %4764 = vmatpush.bf16.msra.mxu3 %v6754_v14  ;;  %v6801_v39 = vld [vmem:[#allocation8 + $0x620] sm:$0xf]  ;;  %v6790_v14 = vor.u32 %v7645_v12, %v6789_v44  ;;  %v7042_v17 = vor.u32 %v7708_v8, %v7041_v1  ;;  %v7729_v44 = vld [vmem:[#allocation8 + $0x8b0] sm:$0xf0] }
 0x242   :  { %v8233_v63 = vpop.f32.mrf.mxu2  ;;  %4753 = vmatpush.bf16.msra.mxu2 %v6622_v52  ;;  %v7161_v52 = vld [vmem:[#allocation8 + $0x8f0] sm:$0xf] }
 0x243   :  { %4778 = vmatpush.bf16.msrb.mxu0 %v6850_v37  ;;  %v4393_v37 = vpop.f32.mrf.mxu0 }
 0x244   :  { %4792 = vmatpush.bf16.msrb.mxu1 %v6946_v41  ;;  %4765 = vmatpush.bf16.msra.mxu3 %v6742_v29  ;;  %v6802_v41 = vor.u32 %v7648_v11, %v6801_v39  ;;  %v7738_v29 = vld [vmem:[#allocation8 + $0x8f8] sm:$0xf0]  ;;  %v4435_v2 = vpop.f32.mrf.mxu3  ;;  %v7735_v39 = vld [vmem:[#allocation8 + $0x8e0] sm:$0xf0] }
 0x245   :  { %v7162_v18 = vor.u32 %v7738_v29, %v7161_v52 }
 0x246   :  { %4754 = vmatpush.bf16.msra.mxu2 %v6610_v42 }
 0x247   :  { %4779 = vmatpush.bf16.msrb.mxu0 %v6838_v51  ;;  %v4352_v51 = vadd.f32 %v8219_v34, %v4338_v53  ;;  %v7054_v34 = vor.u32 %v7711_v32, %v7053_v62  ;;  %v7732_v53 = vld [vmem:[#allocation8 + $0x8c8] sm:$0xf0]  ;;  %v6981_v32 = vld [vmem:[#allocation8 + $0x788] sm:$0xf] }
 0x248   :  { %4793 = vmatpush.bf16.msrb.mxu1 %v6934_v57  ;;  %4766 = vmatpush.bf16.msra.mxu3 %v6730_v48  ;;  %v7066_v57 = vor.u32 %v7714_v35, %v7065_v0  ;;  %v7138_v31 = vor.u32 %v7732_v53, %v7137_v47  ;;  %v7699_v35 = vld [vmem:[#allocation8 + $0x7c0] sm:$0xf0]  ;;  %v6982_v52 = vor.u32 %v7693_v58, %v6981_v32 }
 0x249   :  { %v4366_v19 = vadd.f32 %v8221_v40, %v4352_v51  ;;  %v7113_v51 = vld [vmem:[#allocation8 + $0x890] sm:$0xf] }
 0x24a   :  { %v4421_v36 = vpop.f32.mrf.mxu2  ;;  %4755 = vmatpush.bf16.msra.mxu2 %v6598_v45 }
 0x24b   :  { %4780 = vmatpush.bf16.msrb.mxu0 %v6826_v60  ;;  %v6693_v60 = vld [vmem:[#allocation8 + $0x548] sm:$0xf]  ;;  %v4380_v40 = vadd.f32 %v8226_v10, %v4366_v19  ;;  %v4395_v27 = vpop.f32.mrf.mxu0  ;;  %v7149_v10 = vld [vmem:[#allocation8 + $0x8d8] sm:$0xf] }
 0x24c   :  { %4794 = vmatpush.bf16.msrb.mxu1 %v6922_v7  ;;  %4767 = vmatpush.bf16.msra.mxu3 %v6718_v50  ;;  %v7621_v7 = vld [vmem:[#allocation8 + $0x550] sm:$0xf0]  ;;  %v7150_v48 = vor.u32 %v7735_v39, %v7149_v10 }
 0x24d   :  { %4756 = vmatmul.bf16.vlgmr.msra.gmra.mxu2 %v8174_v16  ;;  %v6694_v25 = vor.u32 %v7621_v7, %v6693_v60  ;;  %v4394_v54 = vadd.f32 %v4393_v37, %v4380_v40  ;;  %v7705_v16 = vld [vmem:[#allocation8 + $0x7f0] sm:$0xf0]  ;;  %v7005_v37 = vld [vmem:[#allocation8 + $0x7b8] sm:$0xf] }
 0x24e   :  { %4804 = vmatpush.bf16.msrb.mxu2 %v7066_v57  ;;  %v7030_v42 = vor.u32 %v7705_v16, %v7029_v3  ;;  %v7006_v50 = vor.u32 %v7699_v35, %v7005_v37  ;;  %v7726_v57 = vld [vmem:[#allocation8 + $0x898] sm:$0xf0]  ;;  %v7717_v3 = vld [vmem:[#allocation8 + $0x850] sm:$0xf0] }
 0x24f   :  { %4781 = vmatpush.bf16.msrb.mxu0 %v6814_v38  ;;  %v4368_v38 = vadd.f32 %v8233_v63, %v4354_v28  ;;  %v4408_v11 = vadd.f32 %v4407_v46, %v4394_v54  ;;  %v7114_v62 = vor.u32 %v7726_v57, %v7113_v51  ;;  %v7089_v28 = vld [vmem:[#allocation8 + $0x860] sm:$0xf] }
 0x250   :  { %4795 = vmatpush.bf16.msrb.mxu1 %v6910_v5  ;;  %4768 = vmatpush.bf16.msra.mxu3 %v6706_v4  ;;  %v4409_v5 = vpop.f32.mrf.mxu1  ;;  %v7101_v4 = vld [vmem:[#allocation8 + $0x878] sm:$0xf] }
 0x251   :  { %v4422_v26 = vadd.f32 %v4421_v36, %v4408_v11 }
 0x252   :  { %4805 = vmatpush.bf16.msrb.mxu2 %v7054_v34  ;;  %v4423_v15 = vpop.f32.mrf.mxu2  ;;  %v7723_v34 = vld [vmem:[#allocation8 + $0x880] sm:$0xf0] }
 0x253   :  { %4782 = vmatpush.bf16.msrb.mxu0 %v6802_v41  ;;  %v4437_v41 = vpop.f32.mrf.mxu3  ;;  %v4436_v12 = vadd.f32 %v4435_v2, %v4422_v26  ;;  %v7102_v29 = vor.u32 %v7723_v34, %v7101_v4 }
 0x254   :  { %4796 = vmatpush.bf16.msrb.mxu1 %v6898_v55  ;;  %4769 = vmatpush.bf16.msra.mxu3 %v6694_v25  ;;  %v7125_v55 = vld [vmem:[#allocation8 + $0x8a8] sm:$0xf] }
 0x256   :  { %4806 = vmatpush.bf16.msrb.mxu2 %v7042_v17 }
 0x257   :  { %4783 = vmatpush.bf16.msrb.mxu0 %v6790_v14  ;;  %4770 = vmatmul.bf16.vlgmr.msra.gmra.mxu3 %v8177_v21  ;;  %v7126_v21 = vor.u32 %v7729_v44, %v7125_v55  ;;  %v6994_v14 = vor.u32 %v7696_v22, %v6993_v43 }
 0x258   :  { %4797 = vmatpush.bf16.msrb.mxu1 %v6886_v13  ;;  %4818 = vmatpush.bf16.msrb.mxu3 %v7162_v18  ;;  %v4463_v0 = vpop.f32.mrf.mxu1  ;;  %v7077_v18 = vld [vmem:[#allocation8 + $0x848] sm:$0xf] }
 0x25a   :  { %4784 = vmatmul.bf16.vlgmr.msrb.gmra.mxu0 %v8185_v9  ;;  %v4382_v9 = vadd.f32 %v4381_v20, %v4368_v38  ;;  %4807 = vmatpush.bf16.msrb.mxu2 %v7030_v42  ;;  %v4477_v46 = vpop.f32.mrf.mxu2 }
 0x25b   :  { %4798 = vmatmul.bf16.vlgmr.msrb.gmra.mxu1 %v8189_v61  ;;  %v4449_v61 = vpop.f32.mrf.mxu0  ;;  %v4491_v13 = vpop.f32.mrf.mxu3 }
 0x25c   :  { %v4396_v63 = vadd.f32 %v4395_v27, %v4382_v9  ;;  %4819 = vmatpush.bf16.msrb.mxu3 %v7150_v48  ;;  %v4450_v45 = vadd.f32 %v4449_v61, %v4436_v12  ;;  %v7720_v27 = vld [vmem:[#allocation8 + $0x868] sm:$0xf0] }
 0x25d   :  { %v7090_v54 = vor.u32 %v7720_v27, %v7089_v28  ;;  %v2788_v27 = vperm.slane %v8224_v49, 2 }
 0x25e   :  { %v4410_v20 = vadd.f32 %v4409_v5, %v4396_v63  ;;  %4808 = vmatpush.bf16.msrb.mxu2 %v7018_v30  ;;  %v4464_v56 = vadd.f32 %v4463_v0, %v4450_v45  ;;  %v7078_v5 = vor.u32 %v7717_v3, %v7077_v18 }
 0x260   :  { %4820 = vmatpush.bf16.msrb.mxu3 %v7138_v31  ;;  %v4424_v59 = vadd.f32 %v4423_v15, %v4410_v20  ;;  %v4478_v36 = vadd.f32 %v4477_v46, %v4464_v56  ;;  %v4465_v1 = vpop.f32.mrf.mxu1 }
 0x262   :  { %4809 = vmatpush.bf16.msrb.mxu2 %v7006_v50  ;;  %v4438_v60 = vadd.f32 %v4437_v41, %v4424_v59  ;;  %v4492_v7 = vadd.f32 %v4491_v13, %v4478_v36  ;;  %v4479_v40 = vpop.f32.mrf.mxu2 }
 0x263   :  { %v4451_v19 = vpop.f32.mrf.mxu0  ;;  %v4493_v17 = vpop.f32.mrf.mxu3 }
 0x264   :  { %4821 = vmatpush.bf16.msrb.mxu3 %v7126_v21  ;;  %v4452_v8 = vadd.f32 %v4451_v19, %v4438_v60  ;;  %4832 = vst [vmem:[#allocation11] sm:$0xff] %v4492_v7 }
 0x266   :  { %4810 = vmatpush.bf16.msrb.mxu2 %v6994_v14  ;;  %v4466_v2 = vadd.f32 %v4465_v1, %v4452_v8 }
 0x268   :  { %4822 = vmatpush.bf16.msrb.mxu3 %v7114_v62  ;;  %v4480_v25 = vadd.f32 %v4479_v40, %v4466_v2  ;;  %v4519_v10 = vpop.f32.mrf.mxu1 }
 0x26a   :  { %4811 = vmatpush.bf16.msrb.mxu2 %v6982_v52  ;;  %v4494_v38 = vadd.f32 %v4493_v17, %v4480_v25  ;;  %v4533_v39 = vpop.f32.mrf.mxu2 }
 0x26b   :  { %v4505_v16 = vpop.f32.mrf.mxu0  ;;  %v4547_v15 = vpop.f32.mrf.mxu3 }
 0x26c   :  { %4823 = vmatpush.bf16.msrb.mxu3 %v7102_v29  ;;  %4835 = vst [vmem:[#allocation11 + $0x18] sm:$0xff] %v4494_v38  ;;  %v4506_v9 = vadd.f32 %v4505_v16, %v2787_v33 }
 0x26d   :  { %4812 = vmatmul.bf16.vlgmr.msrb.gmra.mxu2 %v8196_v24 }
 0x26e   :  { %v4520_v53 = vadd.f32 %v4519_v10, %v4506_v9 }
 0x270   :  { %4824 = vmatpush.bf16.msrb.mxu3 %v7090_v54  ;;  %v4521_v42 = vpop.f32.mrf.mxu1  ;;  %v4534_v24 = vadd.f32 %v4533_v39, %v4520_v53 }
 0x272   :  { %v4535_v48 = vpop.f32.mrf.mxu2  ;;  %v4548_v61 = vadd.f32 %v4547_v15, %v4534_v24 }
 0x273   :  { %v4507_v11 = vpop.f32.mrf.mxu0  ;;  %v4549_v47 = vpop.f32.mrf.mxu3 }
 0x274   :  { %4825 = vmatpush.bf16.msrb.mxu3 %v7078_v5  ;;  %v4508_v30 = vadd.f32 %v4507_v11, %v2787_v33 }
 0x276   :  { %v4522_v31 = vadd.f32 %v4521_v42, %v4508_v30 }
 0x277   :  { %4826 = vmatmul.bf16.vlgmr.msrb.gmra.mxu3 %v8199_v6 }
 0x278   :  { %v4575_v26 = vpop.f32.mrf.mxu1  ;;  %v4536_v6 = vadd.f32 %v4535_v48, %v4522_v31 }
 0x27a   :  { %v4589_v63 = vpop.f32.mrf.mxu2  ;;  %v4550_v35 = vadd.f32 %v4549_v47, %v4536_v6 }
 0x27b   :  { %v4561_v23 = vpop.f32.mrf.mxu0  ;;  %v4603_v0 = vpop.f32.mrf.mxu3 }
 0x27c   :  { %v4562_v37 = vadd.f32 %v4561_v23, %v4548_v61 }
 0x27e   :  { %v4576_v55 = vadd.f32 %v4575_v26, %v4562_v37 }
 0x280   :  { %v4577_v44 = vpop.f32.mrf.mxu1  ;;  %v4590_v20 = vadd.f32 %v4589_v63, %v4576_v55 }
 0x282   :  { %v4591_v12 = vpop.f32.mrf.mxu2  ;;  %v4604_v45 = vadd.f32 %v4603_v0, %v4590_v20 }
 0x283   :  { %v4563_v41 = vpop.f32.mrf.mxu0  ;;  %v4605_v21 = vpop.f32.mrf.mxu3 }
 0x284   :  { %v4564_v46 = vadd.f32 %v4563_v41, %v4550_v35 }
 0x286   :  { %v4578_v43 = vadd.f32 %v4577_v44, %v4564_v46 }
 0x288   :  { %v4631_v51 = vpop.f32.mrf.mxu1  ;;  %v4592_v59 = vadd.f32 %v4591_v12, %v4578_v43 }
 0x28a   :  { %v4606_v56 = vadd.f32 %v4605_v21, %v4592_v59 }
 0x28b   :  { %v4617_v50 = vpop.f32.mrf.mxu0 }
 0x28c   :  { %v4618_v22 = vadd.f32 %v4617_v50, %v4604_v45  ;;  %v4645_v57 = vpop.f32.mrf.mxu2 }
 0x28e   :  { %v4632_v36 = vadd.f32 %v4631_v51, %v4618_v22 }
 0x290   :  { %v4646_v14 = vadd.f32 %v4645_v57, %v4632_v36  ;;  %v4633_v58 = vpop.f32.mrf.mxu1 }
 0x293   :  { %v4619_v62 = vpop.f32.mrf.mxu0 }
 0x294   :  { %v4620_v19 = vadd.f32 %v4619_v62, %v4606_v56  ;;  %v4647_v4 = vpop.f32.mrf.mxu2 }
 0x296   :  { %v4659_v32 = vpop.f32.mrf.mxu3  ;;  %v4634_v34 = vadd.f32 %v4633_v58, %v4620_v19 }
 0x297   :  { %v4660_v13 = vadd.f32 %v4659_v32, %v4646_v14 }
 0x298   :  { %v4648_v60 = vadd.f32 %v4647_v4, %v4634_v34  ;;  %v4687_v52 = vpop.f32.mrf.mxu1 }
 0x299   :  { %4833 = vst [vmem:[#allocation11 + $0x8] sm:$0xff] %v4660_v13 }
 0x29b   :  { %v4673_v8 = vpop.f32.mrf.mxu0 }
 0x29c   :  { %v4674_v54 = vadd.f32 %v4673_v8, %v2788_v27 }
 0x29e   :  { %v4661_v7 = vpop.f32.mrf.mxu3  ;;  %v4688_v18 = vadd.f32 %v4687_v52, %v4674_v54 }
 0x29f   :  { %v4662_v1 = vadd.f32 %v4661_v7, %v4648_v60 }
 0x2a0   :  { %v4689_v2 = vpop.f32.mrf.mxu1 }
 0x2a1   :  { %4836 = vst [vmem:[#allocation11 + $0x20] sm:$0xff] %v4662_v1 }
 0x2a3   :  { %v4675_v40 = vpop.f32.mrf.mxu0 }
 0x2a4   :  { %v4676_v10 = vadd.f32 %v4675_v40, %v2788_v27 }
 0x2a6   :  { %v4690_v15 = vadd.f32 %v4689_v2, %v4676_v10 }
 0x2b0   :  { %v4701_v29 = vpop.f32.mrf.mxu2 }
 0x2b1   :  { %v4702_v38 = vadd.f32 %v4701_v29, %v4688_v18 }
 0x2b7   :  { %v4729_v17 = vpop.f32.mrf.mxu0 }
 0x2b8   :  { %v4703_v25 = vpop.f32.mrf.mxu2  ;;  %v4743_v5 = vpop.f32.mrf.mxu1 }
 0x2b9   :  { %v4704_v33 = vadd.f32 %v4703_v25, %v4690_v15 }
 0x2ba   :  { %v4715_v28 = vpop.f32.mrf.mxu3 }
 0x2bb   :  { %v4716_v39 = vadd.f32 %v4715_v28, %v4702_v38 }
 0x2bd   :  { %v4730_v11 = vadd.f32 %v4729_v17, %v4716_v39 }
 0x2bf   :  { %v4731_v42 = vpop.f32.mrf.mxu0  ;;  %v4744_v23 = vadd.f32 %v4743_v5, %v4730_v11 }
 0x2c0   :  { %v4745_v47 = vpop.f32.mrf.mxu1 }
 0x2c2   :  { %v4717_v3 = vpop.f32.mrf.mxu3 }
 0x2c3   :  { %v4718_v9 = vadd.f32 %v4717_v3, %v4704_v33 }
 0x2c5   :  { %v4732_v24 = vadd.f32 %v4731_v42, %v4718_v9 }
 0x2c7   :  { %v4746_v30 = vadd.f32 %v4745_v47, %v4732_v24 }
 0x2d0   :  { %v4757_v16 = vpop.f32.mrf.mxu2 }
 0x2d1   :  { %v4758_v53 = vadd.f32 %v4757_v16, %v4744_v23 }
 0x2d7   :  { %v4785_v63 = vpop.f32.mrf.mxu0 }
 0x2d8   :  { %v4759_v49 = vpop.f32.mrf.mxu2  ;;  %v4799_v37 = vpop.f32.mrf.mxu1 }
 0x2d9   :  { %v4760_v0 = vadd.f32 %v4759_v49, %v4746_v30 }
 0x2da   :  { %v4771_v48 = vpop.f32.mrf.mxu3 }
 0x2db   :  { %v4772_v26 = vadd.f32 %v4771_v48, %v4758_v53 }
 0x2dd   :  { %v4786_v31 = vadd.f32 %v4785_v63, %v4772_v26 }
 0x2df   :  { %v4800_v35 = vadd.f32 %v4799_v37, %v4786_v31  ;;  %v4787_v44 = vpop.f32.mrf.mxu0 }
 0x2e0   :  { %v4801_v45 = vpop.f32.mrf.mxu1 }
 0x2e2   :  { %v4773_v61 = vpop.f32.mrf.mxu3 }
 0x2e3   :  { %v4774_v6 = vadd.f32 %v4773_v61, %v4760_v0 }
 0x2e5   :  { %v4788_v20 = vadd.f32 %v4787_v44, %v4774_v6 }
 0x2e7   :  { %v4802_v21 = vadd.f32 %v4801_v45, %v4788_v20 }
 0x2f0   :  { %v4813_v41 = vpop.f32.mrf.mxu2 }
 0x2f1   :  { %v4814_v55 = vadd.f32 %v4813_v41, %v4800_v35 }
 0x2f8   :  { %v4815_v50 = vpop.f32.mrf.mxu2 }
 0x2f9   :  { %v4816_v43 = vadd.f32 %v4815_v50, %v4802_v21 }
 0x2fa   :  { %v4827_v12 = vpop.f32.mrf.mxu3 }
 0x2fb   :  { %v4828_v46 = vadd.f32 %v4827_v12, %v4814_v55 }
 0x2fd   :  { %4834 = vst [vmem:[#allocation11 + $0x10] sm:$0xff] %v4828_v46 }
 0x302   :  { %v4829_v22 = vpop.f32.mrf.mxu3 }
 0x303   :  { %v4830_v51 = vadd.f32 %v4829_v22, %v4816_v43 }
 0x305   :  { %4837 = vst [vmem:[#allocation11 + $0x28] sm:$0xff] %v4830_v51 }
 0x306   :  { %4850 = dma.vmem_to_hbm [thread:$0]  %s4843_s4, 768, %s4845_s23, [#allocation4], %s7910_s13, %s7910_s13, %s7911_s14  }
 0x307   :  { %7901 = dma.done.wait [#allocation4], 768  }
 0x308   :  { %7902 = vsyncadd [#allocation4], 4294966528 }
 0x309   :  { %4855 = vsyncpa [#allocation3], 1 }
 0x30a   :  { %4856 = vsyncpa [#allocation6], 1 }
 0x30b   :  { %4857 = vsyncpa [#allocation9], 1 }
 0x30c   :  { %4858 = vsyncpa [#allocation4], 1 }

</bundles_post_ra>
